<compile_context>
chip_gen: v7x
topology: tpu7x:2x2x1
jax: 0.10.0
libtpu: 0.0.40
codegen_flags: <defaults>
</compile_context>

<pallas_src>
import functools

import jax
import jax.numpy as jnp
from jax.experimental import pallas as pl
from jax.experimental.pallas import tpu as pltpu


def _upsample_conv_kernel(xw_ref, w_ref, o_ref, *, taps, bias_row, hh, w_up,
                          c_out, rb, chunk, n_chunks):
    """One (batch, row-block) tile of the fused upsample + conv.

    xw_ref: (1, E, Hp, Wp2)   width-interleaved, zero-padded input (resident per batch)
    w_ref : (T+1, c_out) SMEM; rows 0..T-1 folded tap weights, row T = bias
    o_ref : (1, c_out, rb, 2*w_up)  = rows [2y, 2y+1] of the NCHW output packed on lanes
    """
    r = pl.program_id(1)
    base = r * rb + hh

    # Hoist every scalar weight read (SMEM) out of the compute loops.
    wsc = {(row, o): w_ref[row, o]
           for row in range(bias_row + 1) for o in range(c_out)}

    for ck in range(n_chunks):                      # 8-row chunks -> vreg-resident acc
        row0 = base + ck * chunk
        slabs = {}                                  # CSE of shifted input slabs

        def get_slab(e_idx, sy, dx):
            key = (e_idx, sy, dx)
            if key not in slabs:
                slabs[key] = xw_ref[
                    0, e_idx, pl.ds(row0 + sy, chunk), pl.ds(dx, w_up)
                ].astype(jnp.float32)
            return slabs[key]

        for py in (0, 1):                           # output-row parity
            col0 = py * w_up
            for o in range(c_out):
                acc = None
                for (sy, dx, e_idx, wrow) in taps[py]:
                    term = wsc[(wrow, o)] * get_slab(e_idx, sy, dx)
                    acc = term if acc is None else acc + term
                acc = acc + wsc[(bias_row, o)]      # bias folded, no zero-fill pass
                o_ref[0, o,
                      ck * chunk:(ck + 1) * chunk,
                      col0:col0 + w_up] = acc.astype(o_ref.dtype)


def _pick_row_block(h, c_out, w4, itemsize, budget=4 * 1024 * 1024):
    """Largest multiple-of-8 divisor of H whose output block fits the VMEM budget."""
    cap = max(8, budget // max(1, c_out * w4 * itemsize))
    best = 0
    d = 8
    while d <= min(h, cap):
        if h % d == 0:
            best = d
        d += 8
    return best if best else h


def upsample_conv(x_nchw, weight_oihw, bias, *, k):
    """Reproduces UpsampleConv.forward.

    x_nchw:      (N, C, H, W)
    weight_oihw: (Cout, C, k, k)   (PyTorch Conv2d layout)
    bias:        (Cout,)
    returns:     (N, Cout, 2H, 2W)
    """
    n, c, h, w = x_nchw.shape
    c_out = weight_oihw.shape[0]
    if k % 2 != 1:
        # TODO(synk): even k changes the output size under padding=(k-1)//2;
        # only the odd-k ("same" padding) fast path is implemented.
        raise NotImplementedError("Pallas upsample_conv supports odd k only")

    p = (k - 1) // 2
    hh = (p + 1) // 2                    # row halo in original-resolution rows
    w_up = 2 * w                         # upsampled width
    itemsize = jnp.dtype(x_nchw.dtype).itemsize

    # ---- "virtual channels": width-interleaved original channels ------------
    # Along a fixed upsampled-row parity i, the upsampled image row of conv
    # input channel c0 is the width-interleave of original channels e, (e+1)%C
    # with e = (4*c0 + 2*i) % C.  Only distinct e values are materialized.
    e_vals = sorted({(4 * c0 + 2 * i) % c for c0 in range(c) for i in (0, 1)})
    e_index = {e: idx for idx, e in enumerate(e_vals)}

    # Single cheap prep op on the ORIGINAL-resolution input (~1/8 of the output).
    xa = x_nchw[:, [e % c for e in e_vals], :, :]
    xb = x_nchw[:, [(e + 1) % c for e in e_vals], :, :]
    xw = jnp.stack([xa, xb], axis=-1).reshape(n, len(e_vals), h, w_up)
    xw = jnp.pad(xw, ((0, 0), (0, 0), (hh, hh), (p, p)))
    hp, wp2 = h + 2 * hh, w_up + 2 * p

    # ---- fold duplicated channels into the weights, per (row-phase, tap) ----
    taps = {0: [], 1: []}
    w_rows = []
    for py in (0, 1):
        for dy in range(k):
            a = py + dy - p
            i = a % 2                    # upsampled-row parity of this tap
            sy = a // 2                  # row offset in original resolution
            groups = {}
            for c0 in range(c):
                groups.setdefault((4 * c0 + 2 * i) % c, []).append(c0)
            for e, c0s in sorted(groups.items()):
                for dx in range(k):
                    wvec = weight_oihw[:, c0s[0], dy, dx]
                    for c0 in c0s[1:]:
                        wvec = wvec + weight_oihw[:, c0, dy, dx]
                    taps[py].append((sy, dx, e_index[e], len(w_rows)))
                    w_rows.append(wvec)
    bias_row = len(w_rows)
    w_table = jnp.stack(w_rows + [bias], axis=0).astype(jnp.float32)  # (T+1, Cout)

    # ---- tiling / grid -------------------------------------------------------
    rb = _pick_row_block(h, c_out, 2 * w_up, itemsize)
    n_row_blocks = h // rb
    chunk = 8 if rb % 8 == 0 else rb
    n_chunks = rb // chunk

    xw_block_bytes = len(e_vals) * hp * wp2 * itemsize
    out_block_bytes = c_out * rb * 2 * w_up * itemsize
    vmem_limit = int(min(128 * 1024 * 1024,
                         max(32 * 1024 * 1024,
                             2 * xw_block_bytes + 4 * out_block_bytes + (8 << 20))))

    kernel = functools.partial(
        _upsample_conv_kernel, taps=taps, bias_row=bias_row, hh=hh, w_up=w_up,
        c_out=c_out, rb=rb, chunk=chunk, n_chunks=n_chunks)

    out_view = pl.pallas_call(
        kernel,
        out_shape=jax.ShapeDtypeStruct((n, c_out, h, 2 * w_up), x_nchw.dtype),
        grid_spec=pltpu.PrefetchScalarGridSpec(
            num_scalar_prefetch=0,
            grid=(n, n_row_blocks),
            in_specs=[
                # full (padded) virtual-channel input, resident across row blocks
                pl.BlockSpec((1, len(e_vals), hp, wp2), lambda b, r: (b, 0, 0, 0)),
                # folded weights + bias live in SMEM (scalar reads, no VMEM block)
                pl.BlockSpec(memory_space=pltpu.MemorySpace.SMEM),
            ],
            out_specs=pl.BlockSpec((1, c_out, rb, 2 * w_up),
                                   lambda b, r: (b, 0, r, 0)),
        ),
        compiler_params=pltpu.CompilerParams(
            dimension_semantics=("parallel", "parallel"),
            vmem_limit_bytes=vmem_limit),
    )(xw, w_table)

    # (N, Cout, H, 4W) and (N, Cout, 2H, 2W) are the same row-major buffer:
    # this reshape is a free metadata change, no HBM pass.
    return out_view.reshape(n, c_out, 2 * h, 2 * w)


if __name__ == "__main__":
    # Small shapes consistent with the module: n_input=4, n_output=8, k_size=3.
    batch, n_input, n_output, k_size = 2, 4, 8, 3
    hgt = wid = 16

    key = jax.random.PRNGKey(0)
    kx, kw, kb = jax.random.split(key, 3)

    x = jax.random.normal(kx, (batch, n_input, hgt, wid), dtype=jnp.float32)

    fan_in = n_input * k_size * k_size
    bound = 1.0 / (fan_in ** 0.5)
    weight = jax.random.uniform(kw, (n_output, n_input, k_size, k_size),
                                minval=-bound, maxval=bound, dtype=jnp.float32)
    bias = jax.random.uniform(kb, (n_output,), minval=-bound, maxval=bound,
                              dtype=jnp.float32)

    fn = jax.jit(functools.partial(upsample_conv, k=k_size))
    out = fn(x, weight, bias)
    jax.block_until_ready(out)

    # Reference = exactly torch's repeat((1,4,1,1)) -> PixelShuffle(2) -> Conv2d.
    xr = jnp.tile(x, (1, 4, 1, 1))
    ps = xr.reshape(batch, n_input, 2, 2, hgt, wid).transpose(0, 1, 4, 2, 5, 3)
    ps = ps.reshape(batch, n_input, 2 * hgt, 2 * wid)
    ref = jax.lax.conv_general_dilated(
        ps, weight, window_strides=(1, 1),
        padding=[((k_size - 1) // 2,) * 2] * 2,
        dimension_numbers=("NCHW", "OIHW", "NCHW"),
    ) + bias[None, :, None, None]

    assert out.shape == ref.shape, (out.shape, ref.shape)
    assert jnp.allclose(out, ref, atol=1e-4, rtol=1e-4)

    print("KERNEL_OK")
</pallas_src>

<mosaic_0001>
module attributes {stable_mosaic.version = 11 : i64} {
  func.func @_upsample_conv_kernel(%arg0: i32, %arg1: i32, %arg2: memref<1x2x18x34xf32, #tpu.memory_space<vmem>>, %arg3: memref<19x8xf32, #tpu.memory_space<smem>>, %arg4: memref<1x8x16x64xf32, #tpu.memory_space<vmem>>) attributes {dimension_semantics = [#tpu.dimension_semantics<parallel>, #tpu.dimension_semantics<parallel>], iteration_bounds = array<i64: 2, 1>, scalar_prefetch = 0 : i64, scratch_operands = 0 : i64, tpu.core_type = #tpu.core_type<tc>, window_params = [{transform_indices = @transform_0, window_bounds = array<i64: 1, 2, 18, 34>}, {transform_indices = @transform_1, window_bounds = array<i64: 19, 8>}, {transform_indices = @transform_2, window_bounds = array<i64: 1, 8, 16, 64>}]} {
    %c16_i32 = arith.constant 16 : i32
    %0 = arith.muli %arg1, %c16_i32 : i32
    %c1_i32 = arith.constant 1 : i32
    %1 = arith.addi %0, %c1_i32 : i32
    %c0 = arith.constant 0 : index
    %c0_0 = arith.constant 0 : index
    %2 = memref.load %arg3[%c0, %c0_0] : memref<19x8xf32, #tpu.memory_space<smem>>
    %c0_1 = arith.constant 0 : index
    %c1 = arith.constant 1 : index
    %3 = memref.load %arg3[%c0_1, %c1] : memref<19x8xf32, #tpu.memory_space<smem>>
    %c0_2 = arith.constant 0 : index
    %c2 = arith.constant 2 : index
    %4 = memref.load %arg3[%c0_2, %c2] : memref<19x8xf32, #tpu.memory_space<smem>>
    %c0_3 = arith.constant 0 : index
    %c3 = arith.constant 3 : index
    %5 = memref.load %arg3[%c0_3, %c3] : memref<19x8xf32, #tpu.memory_space<smem>>
    %c0_4 = arith.constant 0 : index
    %c4 = arith.constant 4 : index
    %6 = memref.load %arg3[%c0_4, %c4] : memref<19x8xf32, #tpu.memory_space<smem>>
    %c0_5 = arith.constant 0 : index
    %c5 = arith.constant 5 : index
    %7 = memref.load %arg3[%c0_5, %c5] : memref<19x8xf32, #tpu.memory_space<smem>>
    %c0_6 = arith.constant 0 : index
    %c6 = arith.constant 6 : index
    %8 = memref.load %arg3[%c0_6, %c6] : memref<19x8xf32, #tpu.memory_space<smem>>
    %c0_7 = arith.constant 0 : index
    %c7 = arith.constant 7 : index
    %9 = memref.load %arg3[%c0_7, %c7] : memref<19x8xf32, #tpu.memory_space<smem>>
    %c1_8 = arith.constant 1 : index
    %c0_9 = arith.constant 0 : index
    %10 = memref.load %arg3[%c1_8, %c0_9] : memref<19x8xf32, #tpu.memory_space<smem>>
    %c1_10 = arith.constant 1 : index
    %c1_11 = arith.constant 1 : index
    %11 = memref.load %arg3[%c1_10, %c1_11] : memref<19x8xf32, #tpu.memory_space<smem>>
    %c1_12 = arith.constant 1 : index
    %c2_13 = arith.constant 2 : index
    %12 = memref.load %arg3[%c1_12, %c2_13] : memref<19x8xf32, #tpu.memory_space<smem>>
    %c1_14 = arith.constant 1 : index
    %c3_15 = arith.constant 3 : index
    %13 = memref.load %arg3[%c1_14, %c3_15] : memref<19x8xf32, #tpu.memory_space<smem>>
    %c1_16 = arith.constant 1 : index
    %c4_17 = arith.constant 4 : index
    %14 = memref.load %arg3[%c1_16, %c4_17] : memref<19x8xf32, #tpu.memory_space<smem>>
    %c1_18 = arith.constant 1 : index
    %c5_19 = arith.constant 5 : index
    %15 = memref.load %arg3[%c1_18, %c5_19] : memref<19x8xf32, #tpu.memory_space<smem>>
    %c1_20 = arith.constant 1 : index
    %c6_21 = arith.constant 6 : index
    %16 = memref.load %arg3[%c1_20, %c6_21] : memref<19x8xf32, #tpu.memory_space<smem>>
    %c1_22 = arith.constant 1 : index
    %c7_23 = arith.constant 7 : index
    %17 = memref.load %arg3[%c1_22, %c7_23] : memref<19x8xf32, #tpu.memory_space<smem>>
    %c2_24 = arith.constant 2 : index
    %c0_25 = arith.constant 0 : index
    %18 = memref.load %arg3[%c2_24, %c0_25] : memref<19x8xf32, #tpu.memory_space<smem>>
    %c2_26 = arith.constant 2 : index
    %c1_27 = arith.constant 1 : index
    %19 = memref.load %arg3[%c2_26, %c1_27] : memref<19x8xf32, #tpu.memory_space<smem>>
    %c2_28 = arith.constant 2 : index
    %c2_29 = arith.constant 2 : index
    %20 = memref.load %arg3[%c2_28, %c2_29] : memref<19x8xf32, #tpu.memory_space<smem>>
    %c2_30 = arith.constant 2 : index
    %c3_31 = arith.constant 3 : index
    %21 = memref.load %arg3[%c2_30, %c3_31] : memref<19x8xf32, #tpu.memory_space<smem>>
    %c2_32 = arith.constant 2 : index
    %c4_33 = arith.constant 4 : index
    %22 = memref.load %arg3[%c2_32, %c4_33] : memref<19x8xf32, #tpu.memory_space<smem>>
    %c2_34 = arith.constant 2 : index
    %c5_35 = arith.constant 5 : index
    %23 = memref.load %arg3[%c2_34, %c5_35] : memref<19x8xf32, #tpu.memory_space<smem>>
    %c2_36 = arith.constant 2 : index
    %c6_37 = arith.constant 6 : index
    %24 = memref.load %arg3[%c2_36, %c6_37] : memref<19x8xf32, #tpu.memory_space<smem>>
    %c2_38 = arith.constant 2 : index
    %c7_39 = arith.constant 7 : index
    %25 = memref.load %arg3[%c2_38, %c7_39] : memref<19x8xf32, #tpu.memory_space<smem>>
    %c3_40 = arith.constant 3 : index
    %c0_41 = arith.constant 0 : index
    %26 = memref.load %arg3[%c3_40, %c0_41] : memref<19x8xf32, #tpu.memory_space<smem>>
    %c3_42 = arith.constant 3 : index
    %c1_43 = arith.constant 1 : index
    %27 = memref.load %arg3[%c3_42, %c1_43] : memref<19x8xf32, #tpu.memory_space<smem>>
    %c3_44 = arith.constant 3 : index
    %c2_45 = arith.constant 2 : index
    %28 = memref.load %arg3[%c3_44, %c2_45] : memref<19x8xf32, #tpu.memory_space<smem>>
    %c3_46 = arith.constant 3 : index
    %c3_47 = arith.constant 3 : index
    %29 = memref.load %arg3[%c3_46, %c3_47] : memref<19x8xf32, #tpu.memory_space<smem>>
    %c3_48 = arith.constant 3 : index
    %c4_49 = arith.constant 4 : index
    %30 = memref.load %arg3[%c3_48, %c4_49] : memref<19x8xf32, #tpu.memory_space<smem>>
    %c3_50 = arith.constant 3 : index
    %c5_51 = arith.constant 5 : index
    %31 = memref.load %arg3[%c3_50, %c5_51] : memref<19x8xf32, #tpu.memory_space<smem>>
    %c3_52 = arith.constant 3 : index
    %c6_53 = arith.constant 6 : index
    %32 = memref.load %arg3[%c3_52, %c6_53] : memref<19x8xf32, #tpu.memory_space<smem>>
    %c3_54 = arith.constant 3 : index
    %c7_55 = arith.constant 7 : index
    %33 = memref.load %arg3[%c3_54, %c7_55] : memref<19x8xf32, #tpu.memory_space<smem>>
    %c4_56 = arith.constant 4 : index
    %c0_57 = arith.constant 0 : index
    %34 = memref.load %arg3[%c4_56, %c0_57] : memref<19x8xf32, #tpu.memory_space<smem>>
    %c4_58 = arith.constant 4 : index
    %c1_59 = arith.constant 1 : index
    %35 = memref.load %arg3[%c4_58, %c1_59] : memref<19x8xf32, #tpu.memory_space<smem>>
    %c4_60 = arith.constant 4 : index
    %c2_61 = arith.constant 2 : index
    %36 = memref.load %arg3[%c4_60, %c2_61] : memref<19x8xf32, #tpu.memory_space<smem>>
    %c4_62 = arith.constant 4 : index
    %c3_63 = arith.constant 3 : index
    %37 = memref.load %arg3[%c4_62, %c3_63] : memref<19x8xf32, #tpu.memory_space<smem>>
    %c4_64 = arith.constant 4 : index
    %c4_65 = arith.constant 4 : index
    %38 = memref.load %arg3[%c4_64, %c4_65] : memref<19x8xf32, #tpu.memory_space<smem>>
    %c4_66 = arith.constant 4 : index
    %c5_67 = arith.constant 5 : index
    %39 = memref.load %arg3[%c4_66, %c5_67] : memref<19x8xf32, #tpu.memory_space<smem>>
    %c4_68 = arith.constant 4 : index
    %c6_69 = arith.constant 6 : index
    %40 = memref.load %arg3[%c4_68, %c6_69] : memref<19x8xf32, #tpu.memory_space<smem>>
    %c4_70 = arith.constant 4 : index
    %c7_71 = arith.constant 7 : index
    %41 = memref.load %arg3[%c4_70, %c7_71] : memref<19x8xf32, #tpu.memory_space<smem>>
    %c5_72 = arith.constant 5 : index
    %c0_73 = arith.constant 0 : index
    %42 = memref.load %arg3[%c5_72, %c0_73] : memref<19x8xf32, #tpu.memory_space<smem>>
    %c5_74 = arith.constant 5 : index
    %c1_75 = arith.constant 1 : index
    %43 = memref.load %arg3[%c5_74, %c1_75] : memref<19x8xf32, #tpu.memory_space<smem>>
    %c5_76 = arith.constant 5 : index
    %c2_77 = arith.constant 2 : index
    %44 = memref.load %arg3[%c5_76, %c2_77] : memref<19x8xf32, #tpu.memory_space<smem>>
    %c5_78 = arith.constant 5 : index
    %c3_79 = arith.constant 3 : index
    %45 = memref.load %arg3[%c5_78, %c3_79] : memref<19x8xf32, #tpu.memory_space<smem>>
    %c5_80 = arith.constant 5 : index
    %c4_81 = arith.constant 4 : index
    %46 = memref.load %arg3[%c5_80, %c4_81] : memref<19x8xf32, #tpu.memory_space<smem>>
    %c5_82 = arith.constant 5 : index
    %c5_83 = arith.constant 5 : index
    %47 = memref.load %arg3[%c5_82, %c5_83] : memref<19x8xf32, #tpu.memory_space<smem>>
    %c5_84 = arith.constant 5 : index
    %c6_85 = arith.constant 6 : index
    %48 = memref.load %arg3[%c5_84, %c6_85] : memref<19x8xf32, #tpu.memory_space<smem>>
    %c5_86 = arith.constant 5 : index
    %c7_87 = arith.constant 7 : index
    %49 = memref.load %arg3[%c5_86, %c7_87] : memref<19x8xf32, #tpu.memory_space<smem>>
    %c6_88 = arith.constant 6 : index
    %c0_89 = arith.constant 0 : index
    %50 = memref.load %arg3[%c6_88, %c0_89] : memref<19x8xf32, #tpu.memory_space<smem>>
    %c6_90 = arith.constant 6 : index
    %c1_91 = arith.constant 1 : index
    %51 = memref.load %arg3[%c6_90, %c1_91] : memref<19x8xf32, #tpu.memory_space<smem>>
    %c6_92 = arith.constant 6 : index
    %c2_93 = arith.constant 2 : index
    %52 = memref.load %arg3[%c6_92, %c2_93] : memref<19x8xf32, #tpu.memory_space<smem>>
    %c6_94 = arith.constant 6 : index
    %c3_95 = arith.constant 3 : index
    %53 = memref.load %arg3[%c6_94, %c3_95] : memref<19x8xf32, #tpu.memory_space<smem>>
    %c6_96 = arith.constant 6 : index
    %c4_97 = arith.constant 4 : index
    %54 = memref.load %arg3[%c6_96, %c4_97] : memref<19x8xf32, #tpu.memory_space<smem>>
    %c6_98 = arith.constant 6 : index
    %c5_99 = arith.constant 5 : index
    %55 = memref.load %arg3[%c6_98, %c5_99] : memref<19x8xf32, #tpu.memory_space<smem>>
    %c6_100 = arith.constant 6 : index
    %c6_101 = arith.constant 6 : index
    %56 = memref.load %arg3[%c6_100, %c6_101] : memref<19x8xf32, #tpu.memory_space<smem>>
    %c6_102 = arith.constant 6 : index
    %c7_103 = arith.constant 7 : index
    %57 = memref.load %arg3[%c6_102, %c7_103] : memref<19x8xf32, #tpu.memory_space<smem>>
    %c7_104 = arith.constant 7 : index
    %c0_105 = arith.constant 0 : index
    %58 = memref.load %arg3[%c7_104, %c0_105] : memref<19x8xf32, #tpu.memory_space<smem>>
    %c7_106 = arith.constant 7 : index
    %c1_107 = arith.constant 1 : index
    %59 = memref.load %arg3[%c7_106, %c1_107] : memref<19x8xf32, #tpu.memory_space<smem>>
    %c7_108 = arith.constant 7 : index
    %c2_109 = arith.constant 2 : index
    %60 = memref.load %arg3[%c7_108, %c2_109] : memref<19x8xf32, #tpu.memory_space<smem>>
    %c7_110 = arith.constant 7 : index
    %c3_111 = arith.constant 3 : index
    %61 = memref.load %arg3[%c7_110, %c3_111] : memref<19x8xf32, #tpu.memory_space<smem>>
    %c7_112 = arith.constant 7 : index
    %c4_113 = arith.constant 4 : index
    %62 = memref.load %arg3[%c7_112, %c4_113] : memref<19x8xf32, #tpu.memory_space<smem>>
    %c7_114 = arith.constant 7 : index
    %c5_115 = arith.constant 5 : index
    %63 = memref.load %arg3[%c7_114, %c5_115] : memref<19x8xf32, #tpu.memory_space<smem>>
    %c7_116 = arith.constant 7 : index
    %c6_117 = arith.constant 6 : index
    %64 = memref.load %arg3[%c7_116, %c6_117] : memref<19x8xf32, #tpu.memory_space<smem>>
    %c7_118 = arith.constant 7 : index
    %c7_119 = arith.constant 7 : index
    %65 = memref.load %arg3[%c7_118, %c7_119] : memref<19x8xf32, #tpu.memory_space<smem>>
    %c8 = arith.constant 8 : index
    %c0_120 = arith.constant 0 : index
    %66 = memref.load %arg3[%c8, %c0_120] : memref<19x8xf32, #tpu.memory_space<smem>>
    %c8_121 = arith.constant 8 : index
    %c1_122 = arith.constant 1 : index
    %67 = memref.load %arg3[%c8_121, %c1_122] : memref<19x8xf32, #tpu.memory_space<smem>>
    %c8_123 = arith.constant 8 : index
    %c2_124 = arith.constant 2 : index
    %68 = memref.load %arg3[%c8_123, %c2_124] : memref<19x8xf32, #tpu.memory_space<smem>>
    %c8_125 = arith.constant 8 : index
    %c3_126 = arith.constant 3 : index
    %69 = memref.load %arg3[%c8_125, %c3_126] : memref<19x8xf32, #tpu.memory_space<smem>>
    %c8_127 = arith.constant 8 : index
    %c4_128 = arith.constant 4 : index
    %70 = memref.load %arg3[%c8_127, %c4_128] : memref<19x8xf32, #tpu.memory_space<smem>>
    %c8_129 = arith.constant 8 : index
    %c5_130 = arith.constant 5 : index
    %71 = memref.load %arg3[%c8_129, %c5_130] : memref<19x8xf32, #tpu.memory_space<smem>>
    %c8_131 = arith.constant 8 : index
    %c6_132 = arith.constant 6 : index
    %72 = memref.load %arg3[%c8_131, %c6_132] : memref<19x8xf32, #tpu.memory_space<smem>>
    %c8_133 = arith.constant 8 : index
    %c7_134 = arith.constant 7 : index
    %73 = memref.load %arg3[%c8_133, %c7_134] : memref<19x8xf32, #tpu.memory_space<smem>>
    %c9 = arith.constant 9 : index
    %c0_135 = arith.constant 0 : index
    %74 = memref.load %arg3[%c9, %c0_135] : memref<19x8xf32, #tpu.memory_space<smem>>
    %c9_136 = arith.constant 9 : index
    %c1_137 = arith.constant 1 : index
    %75 = memref.load %arg3[%c9_136, %c1_137] : memref<19x8xf32, #tpu.memory_space<smem>>
    %c9_138 = arith.constant 9 : index
    %c2_139 = arith.constant 2 : index
    %76 = memref.load %arg3[%c9_138, %c2_139] : memref<19x8xf32, #tpu.memory_space<smem>>
    %c9_140 = arith.constant 9 : index
    %c3_141 = arith.constant 3 : index
    %77 = memref.load %arg3[%c9_140, %c3_141] : memref<19x8xf32, #tpu.memory_space<smem>>
    %c9_142 = arith.constant 9 : index
    %c4_143 = arith.constant 4 : index
    %78 = memref.load %arg3[%c9_142, %c4_143] : memref<19x8xf32, #tpu.memory_space<smem>>
    %c9_144 = arith.constant 9 : index
    %c5_145 = arith.constant 5 : index
    %79 = memref.load %arg3[%c9_144, %c5_145] : memref<19x8xf32, #tpu.memory_space<smem>>
    %c9_146 = arith.constant 9 : index
    %c6_147 = arith.constant 6 : index
    %80 = memref.load %arg3[%c9_146, %c6_147] : memref<19x8xf32, #tpu.memory_space<smem>>
    %c9_148 = arith.constant 9 : index
    %c7_149 = arith.constant 7 : index
    %81 = memref.load %arg3[%c9_148, %c7_149] : memref<19x8xf32, #tpu.memory_space<smem>>
    %c10 = arith.constant 10 : index
    %c0_150 = arith.constant 0 : index
    %82 = memref.load %arg3[%c10, %c0_150] : memref<19x8xf32, #tpu.memory_space<smem>>
    %c10_151 = arith.constant 10 : index
    %c1_152 = arith.constant 1 : index
    %83 = memref.load %arg3[%c10_151, %c1_152] : memref<19x8xf32, #tpu.memory_space<smem>>
    %c10_153 = arith.constant 10 : index
    %c2_154 = arith.constant 2 : index
    %84 = memref.load %arg3[%c10_153, %c2_154] : memref<19x8xf32, #tpu.memory_space<smem>>
    %c10_155 = arith.constant 10 : index
    %c3_156 = arith.constant 3 : index
    %85 = memref.load %arg3[%c10_155, %c3_156] : memref<19x8xf32, #tpu.memory_space<smem>>
    %c10_157 = arith.constant 10 : index
    %c4_158 = arith.constant 4 : index
    %86 = memref.load %arg3[%c10_157, %c4_158] : memref<19x8xf32, #tpu.memory_space<smem>>
    %c10_159 = arith.constant 10 : index
    %c5_160 = arith.constant 5 : index
    %87 = memref.load %arg3[%c10_159, %c5_160] : memref<19x8xf32, #tpu.memory_space<smem>>
    %c10_161 = arith.constant 10 : index
    %c6_162 = arith.constant 6 : index
    %88 = memref.load %arg3[%c10_161, %c6_162] : memref<19x8xf32, #tpu.memory_space<smem>>
    %c10_163 = arith.constant 10 : index
    %c7_164 = arith.constant 7 : index
    %89 = memref.load %arg3[%c10_163, %c7_164] : memref<19x8xf32, #tpu.memory_space<smem>>
    %c11 = arith.constant 11 : index
    %c0_165 = arith.constant 0 : index
    %90 = memref.load %arg3[%c11, %c0_165] : memref<19x8xf32, #tpu.memory_space<smem>>
    %c11_166 = arith.constant 11 : index
    %c1_167 = arith.constant 1 : index
    %91 = memref.load %arg3[%c11_166, %c1_167] : memref<19x8xf32, #tpu.memory_space<smem>>
    %c11_168 = arith.constant 11 : index
    %c2_169 = arith.constant 2 : index
    %92 = memref.load %arg3[%c11_168, %c2_169] : memref<19x8xf32, #tpu.memory_space<smem>>
    %c11_170 = arith.constant 11 : index
    %c3_171 = arith.constant 3 : index
    %93 = memref.load %arg3[%c11_170, %c3_171] : memref<19x8xf32, #tpu.memory_space<smem>>
    %c11_172 = arith.constant 11 : index
    %c4_173 = arith.constant 4 : index
    %94 = memref.load %arg3[%c11_172, %c4_173] : memref<19x8xf32, #tpu.memory_space<smem>>
    %c11_174 = arith.constant 11 : index
    %c5_175 = arith.constant 5 : index
    %95 = memref.load %arg3[%c11_174, %c5_175] : memref<19x8xf32, #tpu.memory_space<smem>>
    %c11_176 = arith.constant 11 : index
    %c6_177 = arith.constant 6 : index
    %96 = memref.load %arg3[%c11_176, %c6_177] : memref<19x8xf32, #tpu.memory_space<smem>>
    %c11_178 = arith.constant 11 : index
    %c7_179 = arith.constant 7 : index
    %97 = memref.load %arg3[%c11_178, %c7_179] : memref<19x8xf32, #tpu.memory_space<smem>>
    %c12 = arith.constant 12 : index
    %c0_180 = arith.constant 0 : index
    %98 = memref.load %arg3[%c12, %c0_180] : memref<19x8xf32, #tpu.memory_space<smem>>
    %c12_181 = arith.constant 12 : index
    %c1_182 = arith.constant 1 : index
    %99 = memref.load %arg3[%c12_181, %c1_182] : memref<19x8xf32, #tpu.memory_space<smem>>
    %c12_183 = arith.constant 12 : index
    %c2_184 = arith.constant 2 : index
    %100 = memref.load %arg3[%c12_183, %c2_184] : memref<19x8xf32, #tpu.memory_space<smem>>
    %c12_185 = arith.constant 12 : index
    %c3_186 = arith.constant 3 : index
    %101 = memref.load %arg3[%c12_185, %c3_186] : memref<19x8xf32, #tpu.memory_space<smem>>
    %c12_187 = arith.constant 12 : index
    %c4_188 = arith.constant 4 : index
    %102 = memref.load %arg3[%c12_187, %c4_188] : memref<19x8xf32, #tpu.memory_space<smem>>
    %c12_189 = arith.constant 12 : index
    %c5_190 = arith.constant 5 : index
    %103 = memref.load %arg3[%c12_189, %c5_190] : memref<19x8xf32, #tpu.memory_space<smem>>
    %c12_191 = arith.constant 12 : index
    %c6_192 = arith.constant 6 : index
    %104 = memref.load %arg3[%c12_191, %c6_192] : memref<19x8xf32, #tpu.memory_space<smem>>
    %c12_193 = arith.constant 12 : index
    %c7_194 = arith.constant 7 : index
    %105 = memref.load %arg3[%c12_193, %c7_194] : memref<19x8xf32, #tpu.memory_space<smem>>
    %c13 = arith.constant 13 : index
    %c0_195 = arith.constant 0 : index
    %106 = memref.load %arg3[%c13, %c0_195] : memref<19x8xf32, #tpu.memory_space<smem>>
    %c13_196 = arith.constant 13 : index
    %c1_197 = arith.constant 1 : index
    %107 = memref.load %arg3[%c13_196, %c1_197] : memref<19x8xf32, #tpu.memory_space<smem>>
    %c13_198 = arith.constant 13 : index
    %c2_199 = arith.constant 2 : index
    %108 = memref.load %arg3[%c13_198, %c2_199] : memref<19x8xf32, #tpu.memory_space<smem>>
    %c13_200 = arith.constant 13 : index
    %c3_201 = arith.constant 3 : index
    %109 = memref.load %arg3[%c13_200, %c3_201] : memref<19x8xf32, #tpu.memory_space<smem>>
    %c13_202 = arith.constant 13 : index
    %c4_203 = arith.constant 4 : index
    %110 = memref.load %arg3[%c13_202, %c4_203] : memref<19x8xf32, #tpu.memory_space<smem>>
    %c13_204 = arith.constant 13 : index
    %c5_205 = arith.constant 5 : index
    %111 = memref.load %arg3[%c13_204, %c5_205] : memref<19x8xf32, #tpu.memory_space<smem>>
    %c13_206 = arith.constant 13 : index
    %c6_207 = arith.constant 6 : index
    %112 = memref.load %arg3[%c13_206, %c6_207] : memref<19x8xf32, #tpu.memory_space<smem>>
    %c13_208 = arith.constant 13 : index
    %c7_209 = arith.constant 7 : index
    %113 = memref.load %arg3[%c13_208, %c7_209] : memref<19x8xf32, #tpu.memory_space<smem>>
    %c14 = arith.constant 14 : index
    %c0_210 = arith.constant 0 : index
    %114 = memref.load %arg3[%c14, %c0_210] : memref<19x8xf32, #tpu.memory_space<smem>>
    %c14_211 = arith.constant 14 : index
    %c1_212 = arith.constant 1 : index
    %115 = memref.load %arg3[%c14_211, %c1_212] : memref<19x8xf32, #tpu.memory_space<smem>>
    %c14_213 = arith.constant 14 : index
    %c2_214 = arith.constant 2 : index
    %116 = memref.load %arg3[%c14_213, %c2_214] : memref<19x8xf32, #tpu.memory_space<smem>>
    %c14_215 = arith.constant 14 : index
    %c3_216 = arith.constant 3 : index
    %117 = memref.load %arg3[%c14_215, %c3_216] : memref<19x8xf32, #tpu.memory_space<smem>>
    %c14_217 = arith.constant 14 : index
    %c4_218 = arith.constant 4 : index
    %118 = memref.load %arg3[%c14_217, %c4_218] : memref<19x8xf32, #tpu.memory_space<smem>>
    %c14_219 = arith.constant 14 : index
    %c5_220 = arith.constant 5 : index
    %119 = memref.load %arg3[%c14_219, %c5_220] : memref<19x8xf32, #tpu.memory_space<smem>>
    %c14_221 = arith.constant 14 : index
    %c6_222 = arith.constant 6 : index
    %120 = memref.load %arg3[%c14_221, %c6_222] : memref<19x8xf32, #tpu.memory_space<smem>>
    %c14_223 = arith.constant 14 : index
    %c7_224 = arith.constant 7 : index
    %121 = memref.load %arg3[%c14_223, %c7_224] : memref<19x8xf32, #tpu.memory_space<smem>>
    %c15 = arith.constant 15 : index
    %c0_225 = arith.constant 0 : index
    %122 = memref.load %arg3[%c15, %c0_225] : memref<19x8xf32, #tpu.memory_space<smem>>
    %c15_226 = arith.constant 15 : index
    %c1_227 = arith.constant 1 : index
    %123 = memref.load %arg3[%c15_226, %c1_227] : memref<19x8xf32, #tpu.memory_space<smem>>
    %c15_228 = arith.constant 15 : index
    %c2_229 = arith.constant 2 : index
    %124 = memref.load %arg3[%c15_228, %c2_229] : memref<19x8xf32, #tpu.memory_space<smem>>
    %c15_230 = arith.constant 15 : index
    %c3_231 = arith.constant 3 : index
    %125 = memref.load %arg3[%c15_230, %c3_231] : memref<19x8xf32, #tpu.memory_space<smem>>
    %c15_232 = arith.constant 15 : index
    %c4_233 = arith.constant 4 : index
    %126 = memref.load %arg3[%c15_232, %c4_233] : memref<19x8xf32, #tpu.memory_space<smem>>
    %c15_234 = arith.constant 15 : index
    %c5_235 = arith.constant 5 : index
    %127 = memref.load %arg3[%c15_234, %c5_235] : memref<19x8xf32, #tpu.memory_space<smem>>
    %c15_236 = arith.constant 15 : index
    %c6_237 = arith.constant 6 : index
    %128 = memref.load %arg3[%c15_236, %c6_237] : memref<19x8xf32, #tpu.memory_space<smem>>
    %c15_238 = arith.constant 15 : index
    %c7_239 = arith.constant 7 : index
    %129 = memref.load %arg3[%c15_238, %c7_239] : memref<19x8xf32, #tpu.memory_space<smem>>
    %c16 = arith.constant 16 : index
    %c0_240 = arith.constant 0 : index
    %130 = memref.load %arg3[%c16, %c0_240] : memref<19x8xf32, #tpu.memory_space<smem>>
    %c16_241 = arith.constant 16 : index
    %c1_242 = arith.constant 1 : index
    %131 = memref.load %arg3[%c16_241, %c1_242] : memref<19x8xf32, #tpu.memory_space<smem>>
    %c16_243 = arith.constant 16 : index
    %c2_244 = arith.constant 2 : index
    %132 = memref.load %arg3[%c16_243, %c2_244] : memref<19x8xf32, #tpu.memory_space<smem>>
    %c16_245 = arith.constant 16 : index
    %c3_246 = arith.constant 3 : index
    %133 = memref.load %arg3[%c16_245, %c3_246] : memref<19x8xf32, #tpu.memory_space<smem>>
    %c16_247 = arith.constant 16 : index
    %c4_248 = arith.constant 4 : index
    %134 = memref.load %arg3[%c16_247, %c4_248] : memref<19x8xf32, #tpu.memory_space<smem>>
    %c16_249 = arith.constant 16 : index
    %c5_250 = arith.constant 5 : index
    %135 = memref.load %arg3[%c16_249, %c5_250] : memref<19x8xf32, #tpu.memory_space<smem>>
    %c16_251 = arith.constant 16 : index
    %c6_252 = arith.constant 6 : index
    %136 = memref.load %arg3[%c16_251, %c6_252] : memref<19x8xf32, #tpu.memory_space<smem>>
    %c16_253 = arith.constant 16 : index
    %c7_254 = arith.constant 7 : index
    %137 = memref.load %arg3[%c16_253, %c7_254] : memref<19x8xf32, #tpu.memory_space<smem>>
    %c17 = arith.constant 17 : index
    %c0_255 = arith.constant 0 : index
    %138 = memref.load %arg3[%c17, %c0_255] : memref<19x8xf32, #tpu.memory_space<smem>>
    %c17_256 = arith.constant 17 : index
    %c1_257 = arith.constant 1 : index
    %139 = memref.load %arg3[%c17_256, %c1_257] : memref<19x8xf32, #tpu.memory_space<smem>>
    %c17_258 = arith.constant 17 : index
    %c2_259 = arith.constant 2 : index
    %140 = memref.load %arg3[%c17_258, %c2_259] : memref<19x8xf32, #tpu.memory_space<smem>>
    %c17_260 = arith.constant 17 : index
    %c3_261 = arith.constant 3 : index
    %141 = memref.load %arg3[%c17_260, %c3_261] : memref<19x8xf32, #tpu.memory_space<smem>>
    %c17_262 = arith.constant 17 : index
    %c4_263 = arith.constant 4 : index
    %142 = memref.load %arg3[%c17_262, %c4_263] : memref<19x8xf32, #tpu.memory_space<smem>>
    %c17_264 = arith.constant 17 : index
    %c5_265 = arith.constant 5 : index
    %143 = memref.load %arg3[%c17_264, %c5_265] : memref<19x8xf32, #tpu.memory_space<smem>>
    %c17_266 = arith.constant 17 : index
    %c6_267 = arith.constant 6 : index
    %144 = memref.load %arg3[%c17_266, %c6_267] : memref<19x8xf32, #tpu.memory_space<smem>>
    %c17_268 = arith.constant 17 : index
    %c7_269 = arith.constant 7 : index
    %145 = memref.load %arg3[%c17_268, %c7_269] : memref<19x8xf32, #tpu.memory_space<smem>>
    %c18 = arith.constant 18 : index
    %c0_270 = arith.constant 0 : index
    %146 = memref.load %arg3[%c18, %c0_270] : memref<19x8xf32, #tpu.memory_space<smem>>
    %c18_271 = arith.constant 18 : index
    %c1_272 = arith.constant 1 : index
    %147 = memref.load %arg3[%c18_271, %c1_272] : memref<19x8xf32, #tpu.memory_space<smem>>
    %c18_273 = arith.constant 18 : index
    %c2_274 = arith.constant 2 : index
    %148 = memref.load %arg3[%c18_273, %c2_274] : memref<19x8xf32, #tpu.memory_space<smem>>
    %c18_275 = arith.constant 18 : index
    %c3_276 = arith.constant 3 : index
    %149 = memref.load %arg3[%c18_275, %c3_276] : memref<19x8xf32, #tpu.memory_space<smem>>
    %c18_277 = arith.constant 18 : index
    %c4_278 = arith.constant 4 : index
    %150 = memref.load %arg3[%c18_277, %c4_278] : memref<19x8xf32, #tpu.memory_space<smem>>
    %c18_279 = arith.constant 18 : index
    %c5_280 = arith.constant 5 : index
    %151 = memref.load %arg3[%c18_279, %c5_280] : memref<19x8xf32, #tpu.memory_space<smem>>
    %c18_281 = arith.constant 18 : index
    %c6_282 = arith.constant 6 : index
    %152 = memref.load %arg3[%c18_281, %c6_282] : memref<19x8xf32, #tpu.memory_space<smem>>
    %c18_283 = arith.constant 18 : index
    %c7_284 = arith.constant 7 : index
    %153 = memref.load %arg3[%c18_283, %c7_284] : memref<19x8xf32, #tpu.memory_space<smem>>
    %c0_i32 = arith.constant 0 : i32
    %154 = arith.addi %1, %c0_i32 : i32
    %c-1_i32 = arith.constant -1 : i32
    %155 = arith.addi %154, %c-1_i32 : i32
    %c0_285 = arith.constant 0 : index
    %c1_286 = arith.constant 1 : index
    %156 = arith.index_cast %155 : i32 to index
    %c0_287 = arith.constant 0 : index
    %157 = vector.load %arg2[%c0_285, %c1_286, %156, %c0_287] : memref<1x2x18x34xf32, #tpu.memory_space<vmem>>, vector<1x1x8x32xf32>
    %158 = vector.shape_cast %157 : vector<1x1x8x32xf32> to vector<8x32xf32>
    %159 = vector.broadcast %2 : f32 to vector<8x32xf32>
    %160 = arith.mulf %159, %158 : vector<8x32xf32>
    %c-1_i32_288 = arith.constant -1 : i32
    %161 = arith.addi %154, %c-1_i32_288 : i32
    %c0_289 = arith.constant 0 : index
    %c1_290 = arith.constant 1 : index
    %162 = arith.index_cast %161 : i32 to index
    %c1_291 = arith.constant 1 : index
    %163 = vector.load %arg2[%c0_289, %c1_290, %162, %c1_291] : memref<1x2x18x34xf32, #tpu.memory_space<vmem>>, vector<1x1x8x32xf32>
    %164 = vector.shape_cast %163 : vector<1x1x8x32xf32> to vector<8x32xf32>
    %165 = vector.broadcast %10 : f32 to vector<8x32xf32>
    %166 = arith.mulf %165, %164 : vector<8x32xf32>
    %167 = arith.addf %160, %166 : vector<8x32xf32>
    %c-1_i32_292 = arith.constant -1 : i32
    %168 = arith.addi %154, %c-1_i32_292 : i32
    %c0_293 = arith.constant 0 : index
    %c1_294 = arith.constant 1 : index
    %169 = arith.index_cast %168 : i32 to index
    %c2_295 = arith.constant 2 : index
    %170 = vector.load %arg2[%c0_293, %c1_294, %169, %c2_295] : memref<1x2x18x34xf32, #tpu.memory_space<vmem>>, vector<1x1x8x32xf32>
    %171 = vector.shape_cast %170 : vector<1x1x8x32xf32> to vector<8x32xf32>
    %172 = vector.broadcast %18 : f32 to vector<8x32xf32>
    %173 = arith.mulf %172, %171 : vector<8x32xf32>
    %174 = arith.addf %167, %173 : vector<8x32xf32>
    %c0_i32_296 = arith.constant 0 : i32
    %175 = arith.addi %154, %c0_i32_296 : i32
    %c0_297 = arith.constant 0 : index
    %c0_298 = arith.constant 0 : index
    %176 = arith.index_cast %175 : i32 to index
    %c0_299 = arith.constant 0 : index
    %177 = vector.load %arg2[%c0_297, %c0_298, %176, %c0_299] : memref<1x2x18x34xf32, #tpu.memory_space<vmem>>, vector<1x1x8x32xf32>
    %178 = vector.shape_cast %177 : vector<1x1x8x32xf32> to vector<8x32xf32>
    %179 = vector.broadcast %26 : f32 to vector<8x32xf32>
    %180 = arith.mulf %179, %178 : vector<8x32xf32>
    %181 = arith.addf %174, %180 : vector<8x32xf32>
    %c0_i32_300 = arith.constant 0 : i32
    %182 = arith.addi %154, %c0_i32_300 : i32
    %c0_301 = arith.constant 0 : index
    %c0_302 = arith.constant 0 : index
    %183 = arith.index_cast %182 : i32 to index
    %c1_303 = arith.constant 1 : index
    %184 = vector.load %arg2[%c0_301, %c0_302, %183, %c1_303] : memref<1x2x18x34xf32, #tpu.memory_space<vmem>>, vector<1x1x8x32xf32>
    %185 = vector.shape_cast %184 : vector<1x1x8x32xf32> to vector<8x32xf32>
    %186 = vector.broadcast %34 : f32 to vector<8x32xf32>
    %187 = arith.mulf %186, %185 : vector<8x32xf32>
    %188 = arith.addf %181, %187 : vector<8x32xf32>
    %c0_i32_304 = arith.constant 0 : i32
    %189 = arith.addi %154, %c0_i32_304 : i32
    %c0_305 = arith.constant 0 : index
    %c0_306 = arith.constant 0 : index
    %190 = arith.index_cast %189 : i32 to index
    %c2_307 = arith.constant 2 : index
    %191 = vector.load %arg2[%c0_305, %c0_306, %190, %c2_307] : memref<1x2x18x34xf32, #tpu.memory_space<vmem>>, vector<1x1x8x32xf32>
    %192 = vector.shape_cast %191 : vector<1x1x8x32xf32> to vector<8x32xf32>
    %193 = vector.broadcast %42 : f32 to vector<8x32xf32>
    %194 = arith.mulf %193, %192 : vector<8x32xf32>
    %195 = arith.addf %188, %194 : vector<8x32xf32>
    %c0_i32_308 = arith.constant 0 : i32
    %196 = arith.addi %154, %c0_i32_308 : i32
    %c0_309 = arith.constant 0 : index
    %c1_310 = arith.constant 1 : index
    %197 = arith.index_cast %196 : i32 to index
    %c0_311 = arith.constant 0 : index
    %198 = vector.load %arg2[%c0_309, %c1_310, %197, %c0_311] : memref<1x2x18x34xf32, #tpu.memory_space<vmem>>, vector<1x1x8x32xf32>
    %199 = vector.shape_cast %198 : vector<1x1x8x32xf32> to vector<8x32xf32>
    %200 = vector.broadcast %50 : f32 to vector<8x32xf32>
    %201 = arith.mulf %200, %199 : vector<8x32xf32>
    %202 = arith.addf %195, %201 : vector<8x32xf32>
    %c0_i32_312 = arith.constant 0 : i32
    %203 = arith.addi %154, %c0_i32_312 : i32
    %c0_313 = arith.constant 0 : index
    %c1_314 = arith.constant 1 : index
    %204 = arith.index_cast %203 : i32 to index
    %c1_315 = arith.constant 1 : index
    %205 = vector.load %arg2[%c0_313, %c1_314, %204, %c1_315] : memref<1x2x18x34xf32, #tpu.memory_space<vmem>>, vector<1x1x8x32xf32>
    %206 = vector.shape_cast %205 : vector<1x1x8x32xf32> to vector<8x32xf32>
    %207 = vector.broadcast %58 : f32 to vector<8x32xf32>
    %208 = arith.mulf %207, %206 : vector<8x32xf32>
    %209 = arith.addf %202, %208 : vector<8x32xf32>
    %c0_i32_316 = arith.constant 0 : i32
    %210 = arith.addi %154, %c0_i32_316 : i32
    %c0_317 = arith.constant 0 : index
    %c1_318 = arith.constant 1 : index
    %211 = arith.index_cast %210 : i32 to index
    %c2_319 = arith.constant 2 : index
    %212 = vector.load %arg2[%c0_317, %c1_318, %211, %c2_319] : memref<1x2x18x34xf32, #tpu.memory_space<vmem>>, vector<1x1x8x32xf32>
    %213 = vector.shape_cast %212 : vector<1x1x8x32xf32> to vector<8x32xf32>
    %214 = vector.broadcast %66 : f32 to vector<8x32xf32>
    %215 = arith.mulf %214, %213 : vector<8x32xf32>
    %216 = arith.addf %209, %215 : vector<8x32xf32>
    %217 = vector.broadcast %146 : f32 to vector<8x32xf32>
    %218 = arith.addf %216, %217 : vector<8x32xf32>
    %c0_320 = arith.constant 0 : index
    %c0_321 = arith.constant 0 : index
    %c0_322 = arith.constant 0 : index
    %c0_323 = arith.constant 0 : index
    %219 = vector.load %arg4[%c0_320, %c0_321, %c0_322, %c0_323] : memref<1x8x16x64xf32, #tpu.memory_space<vmem>>, vector<1x1x8x32xf32>
    %220 = vector.shape_cast %219 : vector<1x1x8x32xf32> to vector<8x32xf32>
    %221 = vector.shape_cast %218 : vector<8x32xf32> to vector<1x1x8x32xf32>
    tpu.vector_store %arg4[%c0_320, %c0_321, %c0_322, %c0_323], %221 {strides = array<i32>} : memref<1x8x16x64xf32, #tpu.memory_space<vmem>>, vector<1x1x8x32xf32>,
    %222 = vector.broadcast %3 : f32 to vector<8x32xf32>
    %223 = arith.mulf %222, %158 : vector<8x32xf32>
    %224 = vector.broadcast %11 : f32 to vector<8x32xf32>
    %225 = arith.mulf %224, %164 : vector<8x32xf32>
    %226 = arith.addf %223, %225 : vector<8x32xf32>
    %227 = vector.broadcast %19 : f32 to vector<8x32xf32>
    %228 = arith.mulf %227, %171 : vector<8x32xf32>
    %229 = arith.addf %226, %228 : vector<8x32xf32>
    %230 = vector.broadcast %27 : f32 to vector<8x32xf32>
    %231 = arith.mulf %230, %178 : vector<8x32xf32>
    %232 = arith.addf %229, %231 : vector<8x32xf32>
    %233 = vector.broadcast %35 : f32 to vector<8x32xf32>
    %234 = arith.mulf %233, %185 : vector<8x32xf32>
    %235 = arith.addf %232, %234 : vector<8x32xf32>
    %236 = vector.broadcast %43 : f32 to vector<8x32xf32>
    %237 = arith.mulf %236, %192 : vector<8x32xf32>
    %238 = arith.addf %235, %237 : vector<8x32xf32>
    %239 = vector.broadcast %51 : f32 to vector<8x32xf32>
    %240 = arith.mulf %239, %199 : vector<8x32xf32>
    %241 = arith.addf %238, %240 : vector<8x32xf32>
    %242 = vector.broadcast %59 : f32 to vector<8x32xf32>
    %243 = arith.mulf %242, %206 : vector<8x32xf32>
    %244 = arith.addf %241, %243 : vector<8x32xf32>
    %245 = vector.broadcast %67 : f32 to vector<8x32xf32>
    %246 = arith.mulf %245, %213 : vector<8x32xf32>
    %247 = arith.addf %244, %246 : vector<8x32xf32>
    %248 = vector.broadcast %147 : f32 to vector<8x32xf32>
    %249 = arith.addf %247, %248 : vector<8x32xf32>
    %c0_324 = arith.constant 0 : index
    %c1_325 = arith.constant 1 : index
    %c0_326 = arith.constant 0 : index
    %c0_327 = arith.constant 0 : index
    %250 = vector.load %arg4[%c0_324, %c1_325, %c0_326, %c0_327] : memref<1x8x16x64xf32, #tpu.memory_space<vmem>>, vector<1x1x8x32xf32>
    %251 = vector.shape_cast %250 : vector<1x1x8x32xf32> to vector<8x32xf32>
    %252 = vector.shape_cast %249 : vector<8x32xf32> to vector<1x1x8x32xf32>
    tpu.vector_store %arg4[%c0_324, %c1_325, %c0_326, %c0_327], %252 {strides = array<i32>} : memref<1x8x16x64xf32, #tpu.memory_space<vmem>>, vector<1x1x8x32xf32>,
    %253 = vector.broadcast %4 : f32 to vector<8x32xf32>
    %254 = arith.mulf %253, %158 : vector<8x32xf32>
    %255 = vector.broadcast %12 : f32 to vector<8x32xf32>
    %256 = arith.mulf %255, %164 : vector<8x32xf32>
    %257 = arith.addf %254, %256 : vector<8x32xf32>
    %258 = vector.broadcast %20 : f32 to vector<8x32xf32>
    %259 = arith.mulf %258, %171 : vector<8x32xf32>
    %260 = arith.addf %257, %259 : vector<8x32xf32>
    %261 = vector.broadcast %28 : f32 to vector<8x32xf32>
    %262 = arith.mulf %261, %178 : vector<8x32xf32>
    %263 = arith.addf %260, %262 : vector<8x32xf32>
    %264 = vector.broadcast %36 : f32 to vector<8x32xf32>
    %265 = arith.mulf %264, %185 : vector<8x32xf32>
    %266 = arith.addf %263, %265 : vector<8x32xf32>
    %267 = vector.broadcast %44 : f32 to vector<8x32xf32>
    %268 = arith.mulf %267, %192 : vector<8x32xf32>
    %269 = arith.addf %266, %268 : vector<8x32xf32>
    %270 = vector.broadcast %52 : f32 to vector<8x32xf32>
    %271 = arith.mulf %270, %199 : vector<8x32xf32>
    %272 = arith.addf %269, %271 : vector<8x32xf32>
    %273 = vector.broadcast %60 : f32 to vector<8x32xf32>
    %274 = arith.mulf %273, %206 : vector<8x32xf32>
    %275 = arith.addf %272, %274 : vector<8x32xf32>
    %276 = vector.broadcast %68 : f32 to vector<8x32xf32>
    %277 = arith.mulf %276, %213 : vector<8x32xf32>
    %278 = arith.addf %275, %277 : vector<8x32xf32>
    %279 = vector.broadcast %148 : f32 to vector<8x32xf32>
    %280 = arith.addf %278, %279 : vector<8x32xf32>
    %c0_328 = arith.constant 0 : index
    %c2_329 = arith.constant 2 : index
    %c0_330 = arith.constant 0 : index
    %c0_331 = arith.constant 0 : index
    %281 = vector.load %arg4[%c0_328, %c2_329, %c0_330, %c0_331] : memref<1x8x16x64xf32, #tpu.memory_space<vmem>>, vector<1x1x8x32xf32>
    %282 = vector.shape_cast %281 : vector<1x1x8x32xf32> to vector<8x32xf32>
    %283 = vector.shape_cast %280 : vector<8x32xf32> to vector<1x1x8x32xf32>
    tpu.vector_store %arg4[%c0_328, %c2_329, %c0_330, %c0_331], %283 {strides = array<i32>} : memref<1x8x16x64xf32, #tpu.memory_space<vmem>>, vector<1x1x8x32xf32>,
    %284 = vector.broadcast %5 : f32 to vector<8x32xf32>
    %285 = arith.mulf %284, %158 : vector<8x32xf32>
    %286 = vector.broadcast %13 : f32 to vector<8x32xf32>
    %287 = arith.mulf %286, %164 : vector<8x32xf32>
    %288 = arith.addf %285, %287 : vector<8x32xf32>
    %289 = vector.broadcast %21 : f32 to vector<8x32xf32>
    %290 = arith.mulf %289, %171 : vector<8x32xf32>
    %291 = arith.addf %288, %290 : vector<8x32xf32>
    %292 = vector.broadcast %29 : f32 to vector<8x32xf32>
    %293 = arith.mulf %292, %178 : vector<8x32xf32>
    %294 = arith.addf %291, %293 : vector<8x32xf32>
    %295 = vector.broadcast %37 : f32 to vector<8x32xf32>
    %296 = arith.mulf %295, %185 : vector<8x32xf32>
    %297 = arith.addf %294, %296 : vector<8x32xf32>
    %298 = vector.broadcast %45 : f32 to vector<8x32xf32>
    %299 = arith.mulf %298, %192 : vector<8x32xf32>
    %300 = arith.addf %297, %299 : vector<8x32xf32>
    %301 = vector.broadcast %53 : f32 to vector<8x32xf32>
    %302 = arith.mulf %301, %199 : vector<8x32xf32>
    %303 = arith.addf %300, %302 : vector<8x32xf32>
    %304 = vector.broadcast %61 : f32 to vector<8x32xf32>
    %305 = arith.mulf %304, %206 : vector<8x32xf32>
    %306 = arith.addf %303, %305 : vector<8x32xf32>
    %307 = vector.broadcast %69 : f32 to vector<8x32xf32>
    %308 = arith.mulf %307, %213 : vector<8x32xf32>
    %309 = arith.addf %306, %308 : vector<8x32xf32>
    %310 = vector.broadcast %149 : f32 to vector<8x32xf32>
    %311 = arith.addf %309, %310 : vector<8x32xf32>
    %c0_332 = arith.constant 0 : index
    %c3_333 = arith.constant 3 : index
    %c0_334 = arith.constant 0 : index
    %c0_335 = arith.constant 0 : index
    %312 = vector.load %arg4[%c0_332, %c3_333, %c0_334, %c0_335] : memref<1x8x16x64xf32, #tpu.memory_space<vmem>>, vector<1x1x8x32xf32>
    %313 = vector.shape_cast %312 : vector<1x1x8x32xf32> to vector<8x32xf32>
    %314 = vector.shape_cast %311 : vector<8x32xf32> to vector<1x1x8x32xf32>
    tpu.vector_store %arg4[%c0_332, %c3_333, %c0_334, %c0_335], %314 {strides = array<i32>} : memref<1x8x16x64xf32, #tpu.memory_space<vmem>>, vector<1x1x8x32xf32>,
    %315 = vector.broadcast %6 : f32 to vector<8x32xf32>
    %316 = arith.mulf %315, %158 : vector<8x32xf32>
    %317 = vector.broadcast %14 : f32 to vector<8x32xf32>
    %318 = arith.mulf %317, %164 : vector<8x32xf32>
    %319 = arith.addf %316, %318 : vector<8x32xf32>
    %320 = vector.broadcast %22 : f32 to vector<8x32xf32>
    %321 = arith.mulf %320, %171 : vector<8x32xf32>
    %322 = arith.addf %319, %321 : vector<8x32xf32>
    %323 = vector.broadcast %30 : f32 to vector<8x32xf32>
    %324 = arith.mulf %323, %178 : vector<8x32xf32>
    %325 = arith.addf %322, %324 : vector<8x32xf32>
    %326 = vector.broadcast %38 : f32 to vector<8x32xf32>
    %327 = arith.mulf %326, %185 : vector<8x32xf32>
    %328 = arith.addf %325, %327 : vector<8x32xf32>
    %329 = vector.broadcast %46 : f32 to vector<8x32xf32>
    %330 = arith.mulf %329, %192 : vector<8x32xf32>
    %331 = arith.addf %328, %330 : vector<8x32xf32>
    %332 = vector.broadcast %54 : f32 to vector<8x32xf32>
    %333 = arith.mulf %332, %199 : vector<8x32xf32>
    %334 = arith.addf %331, %333 : vector<8x32xf32>
    %335 = vector.broadcast %62 : f32 to vector<8x32xf32>
    %336 = arith.mulf %335, %206 : vector<8x32xf32>
    %337 = arith.addf %334, %336 : vector<8x32xf32>
    %338 = vector.broadcast %70 : f32 to vector<8x32xf32>
    %339 = arith.mulf %338, %213 : vector<8x32xf32>
    %340 = arith.addf %337, %339 : vector<8x32xf32>
    %341 = vector.broadcast %150 : f32 to vector<8x32xf32>
    %342 = arith.addf %340, %341 : vector<8x32xf32>
    %c0_336 = arith.constant 0 : index
    %c4_337 = arith.constant 4 : index
    %c0_338 = arith.constant 0 : index
    %c0_339 = arith.constant 0 : index
    %343 = vector.load %arg4[%c0_336, %c4_337, %c0_338, %c0_339] : memref<1x8x16x64xf32, #tpu.memory_space<vmem>>, vector<1x1x8x32xf32>
    %344 = vector.shape_cast %343 : vector<1x1x8x32xf32> to vector<8x32xf32>
    %345 = vector.shape_cast %342 : vector<8x32xf32> to vector<1x1x8x32xf32>
    tpu.vector_store %arg4[%c0_336, %c4_337, %c0_338, %c0_339], %345 {strides = array<i32>} : memref<1x8x16x64xf32, #tpu.memory_space<vmem>>, vector<1x1x8x32xf32>,
    %346 = vector.broadcast %7 : f32 to vector<8x32xf32>
    %347 = arith.mulf %346, %158 : vector<8x32xf32>
    %348 = vector.broadcast %15 : f32 to vector<8x32xf32>
    %349 = arith.mulf %348, %164 : vector<8x32xf32>
    %350 = arith.addf %347, %349 : vector<8x32xf32>
    %351 = vector.broadcast %23 : f32 to vector<8x32xf32>
    %352 = arith.mulf %351, %171 : vector<8x32xf32>
    %353 = arith.addf %350, %352 : vector<8x32xf32>
    %354 = vector.broadcast %31 : f32 to vector<8x32xf32>
    %355 = arith.mulf %354, %178 : vector<8x32xf32>
    %356 = arith.addf %353, %355 : vector<8x32xf32>
    %357 = vector.broadcast %39 : f32 to vector<8x32xf32>
    %358 = arith.mulf %357, %185 : vector<8x32xf32>
    %359 = arith.addf %356, %358 : vector<8x32xf32>
    %360 = vector.broadcast %47 : f32 to vector<8x32xf32>
    %361 = arith.mulf %360, %192 : vector<8x32xf32>
    %362 = arith.addf %359, %361 : vector<8x32xf32>
    %363 = vector.broadcast %55 : f32 to vector<8x32xf32>
    %364 = arith.mulf %363, %199 : vector<8x32xf32>
    %365 = arith.addf %362, %364 : vector<8x32xf32>
    %366 = vector.broadcast %63 : f32 to vector<8x32xf32>
    %367 = arith.mulf %366, %206 : vector<8x32xf32>
    %368 = arith.addf %365, %367 : vector<8x32xf32>
    %369 = vector.broadcast %71 : f32 to vector<8x32xf32>
    %370 = arith.mulf %369, %213 : vector<8x32xf32>
    %371 = arith.addf %368, %370 : vector<8x32xf32>
    %372 = vector.broadcast %151 : f32 to vector<8x32xf32>
    %373 = arith.addf %371, %372 : vector<8x32xf32>
    %c0_340 = arith.constant 0 : index
    %c5_341 = arith.constant 5 : index
    %c0_342 = arith.constant 0 : index
    %c0_343 = arith.constant 0 : index
    %374 = vector.load %arg4[%c0_340, %c5_341, %c0_342, %c0_343] : memref<1x8x16x64xf32, #tpu.memory_space<vmem>>, vector<1x1x8x32xf32>
    %375 = vector.shape_cast %374 : vector<1x1x8x32xf32> to vector<8x32xf32>
    %376 = vector.shape_cast %373 : vector<8x32xf32> to vector<1x1x8x32xf32>
    tpu.vector_store %arg4[%c0_340, %c5_341, %c0_342, %c0_343], %376 {strides = array<i32>} : memref<1x8x16x64xf32, #tpu.memory_space<vmem>>, vector<1x1x8x32xf32>,
    %377 = vector.broadcast %8 : f32 to vector<8x32xf32>
    %378 = arith.mulf %377, %158 : vector<8x32xf32>
    %379 = vector.broadcast %16 : f32 to vector<8x32xf32>
    %380 = arith.mulf %379, %164 : vector<8x32xf32>
    %381 = arith.addf %378, %380 : vector<8x32xf32>
    %382 = vector.broadcast %24 : f32 to vector<8x32xf32>
    %383 = arith.mulf %382, %171 : vector<8x32xf32>
    %384 = arith.addf %381, %383 : vector<8x32xf32>
    %385 = vector.broadcast %32 : f32 to vector<8x32xf32>
    %386 = arith.mulf %385, %178 : vector<8x32xf32>
    %387 = arith.addf %384, %386 : vector<8x32xf32>
    %388 = vector.broadcast %40 : f32 to vector<8x32xf32>
    %389 = arith.mulf %388, %185 : vector<8x32xf32>
    %390 = arith.addf %387, %389 : vector<8x32xf32>
    %391 = vector.broadcast %48 : f32 to vector<8x32xf32>
    %392 = arith.mulf %391, %192 : vector<8x32xf32>
    %393 = arith.addf %390, %392 : vector<8x32xf32>
    %394 = vector.broadcast %56 : f32 to vector<8x32xf32>
    %395 = arith.mulf %394, %199 : vector<8x32xf32>
    %396 = arith.addf %393, %395 : vector<8x32xf32>
    %397 = vector.broadcast %64 : f32 to vector<8x32xf32>
    %398 = arith.mulf %397, %206 : vector<8x32xf32>
    %399 = arith.addf %396, %398 : vector<8x32xf32>
    %400 = vector.broadcast %72 : f32 to vector<8x32xf32>
    %401 = arith.mulf %400, %213 : vector<8x32xf32>
    %402 = arith.addf %399, %401 : vector<8x32xf32>
    %403 = vector.broadcast %152 : f32 to vector<8x32xf32>
    %404 = arith.addf %402, %403 : vector<8x32xf32>
    %c0_344 = arith.constant 0 : index
    %c6_345 = arith.constant 6 : index
    %c0_346 = arith.constant 0 : index
    %c0_347 = arith.constant 0 : index
    %405 = vector.load %arg4[%c0_344, %c6_345, %c0_346, %c0_347] : memref<1x8x16x64xf32, #tpu.memory_space<vmem>>, vector<1x1x8x32xf32>
    %406 = vector.shape_cast %405 : vector<1x1x8x32xf32> to vector<8x32xf32>
    %407 = vector.shape_cast %404 : vector<8x32xf32> to vector<1x1x8x32xf32>
    tpu.vector_store %arg4[%c0_344, %c6_345, %c0_346, %c0_347], %407 {strides = array<i32>} : memref<1x8x16x64xf32, #tpu.memory_space<vmem>>, vector<1x1x8x32xf32>,
    %408 = vector.broadcast %9 : f32 to vector<8x32xf32>
    %409 = arith.mulf %408, %158 : vector<8x32xf32>
    %410 = vector.broadcast %17 : f32 to vector<8x32xf32>
    %411 = arith.mulf %410, %164 : vector<8x32xf32>
    %412 = arith.addf %409, %411 : vector<8x32xf32>
    %413 = vector.broadcast %25 : f32 to vector<8x32xf32>
    %414 = arith.mulf %413, %171 : vector<8x32xf32>
    %415 = arith.addf %412, %414 : vector<8x32xf32>
    %416 = vector.broadcast %33 : f32 to vector<8x32xf32>
    %417 = arith.mulf %416, %178 : vector<8x32xf32>
    %418 = arith.addf %415, %417 : vector<8x32xf32>
    %419 = vector.broadcast %41 : f32 to vector<8x32xf32>
    %420 = arith.mulf %419, %185 : vector<8x32xf32>
    %421 = arith.addf %418, %420 : vector<8x32xf32>
    %422 = vector.broadcast %49 : f32 to vector<8x32xf32>
    %423 = arith.mulf %422, %192 : vector<8x32xf32>
    %424 = arith.addf %421, %423 : vector<8x32xf32>
    %425 = vector.broadcast %57 : f32 to vector<8x32xf32>
    %426 = arith.mulf %425, %199 : vector<8x32xf32>
    %427 = arith.addf %424, %426 : vector<8x32xf32>
    %428 = vector.broadcast %65 : f32 to vector<8x32xf32>
    %429 = arith.mulf %428, %206 : vector<8x32xf32>
    %430 = arith.addf %427, %429 : vector<8x32xf32>
    %431 = vector.broadcast %73 : f32 to vector<8x32xf32>
    %432 = arith.mulf %431, %213 : vector<8x32xf32>
    %433 = arith.addf %430, %432 : vector<8x32xf32>
    %434 = vector.broadcast %153 : f32 to vector<8x32xf32>
    %435 = arith.addf %433, %434 : vector<8x32xf32>
    %c0_348 = arith.constant 0 : index
    %c7_349 = arith.constant 7 : index
    %c0_350 = arith.constant 0 : index
    %c0_351 = arith.constant 0 : index
    %436 = vector.load %arg4[%c0_348, %c7_349, %c0_350, %c0_351] : memref<1x8x16x64xf32, #tpu.memory_space<vmem>>, vector<1x1x8x32xf32>
    %437 = vector.shape_cast %436 : vector<1x1x8x32xf32> to vector<8x32xf32>
    %438 = vector.shape_cast %435 : vector<8x32xf32> to vector<1x1x8x32xf32>
    tpu.vector_store %arg4[%c0_348, %c7_349, %c0_350, %c0_351], %438 {strides = array<i32>} : memref<1x8x16x64xf32, #tpu.memory_space<vmem>>, vector<1x1x8x32xf32>,
    %439 = vector.broadcast %74 : f32 to vector<8x32xf32>
    %440 = arith.mulf %439, %178 : vector<8x32xf32>
    %441 = vector.broadcast %82 : f32 to vector<8x32xf32>
    %442 = arith.mulf %441, %185 : vector<8x32xf32>
    %443 = arith.addf %440, %442 : vector<8x32xf32>
    %444 = vector.broadcast %90 : f32 to vector<8x32xf32>
    %445 = arith.mulf %444, %192 : vector<8x32xf32>
    %446 = arith.addf %443, %445 : vector<8x32xf32>
    %447 = vector.broadcast %98 : f32 to vector<8x32xf32>
    %448 = arith.mulf %447, %199 : vector<8x32xf32>
    %449 = arith.addf %446, %448 : vector<8x32xf32>
    %450 = vector.broadcast %106 : f32 to vector<8x32xf32>
    %451 = arith.mulf %450, %206 : vector<8x32xf32>
    %452 = arith.addf %449, %451 : vector<8x32xf32>
    %453 = vector.broadcast %114 : f32 to vector<8x32xf32>
    %454 = arith.mulf %453, %213 : vector<8x32xf32>
    %455 = arith.addf %452, %454 : vector<8x32xf32>
    %c1_i32_352 = arith.constant 1 : i32
    %456 = arith.addi %154, %c1_i32_352 : i32
    %c0_353 = arith.constant 0 : index
    %c0_354 = arith.constant 0 : index
    %457 = arith.index_cast %456 : i32 to index
    %c0_355 = arith.constant 0 : index
    %458 = vector.load %arg2[%c0_353, %c0_354, %457, %c0_355] : memref<1x2x18x34xf32, #tpu.memory_space<vmem>>, vector<1x1x8x32xf32>
    %459 = vector.shape_cast %458 : vector<1x1x8x32xf32> to vector<8x32xf32>
    %460 = vector.broadcast %122 : f32 to vector<8x32xf32>
    %461 = arith.mulf %460, %459 : vector<8x32xf32>
    %462 = arith.addf %455, %461 : vector<8x32xf32>
    %c1_i32_356 = arith.constant 1 : i32
    %463 = arith.addi %154, %c1_i32_356 : i32
    %c0_357 = arith.constant 0 : index
    %c0_358 = arith.constant 0 : index
    %464 = arith.index_cast %463 : i32 to index
    %c1_359 = arith.constant 1 : index
    %465 = vector.load %arg2[%c0_357, %c0_358, %464, %c1_359] : memref<1x2x18x34xf32, #tpu.memory_space<vmem>>, vector<1x1x8x32xf32>
    %466 = vector.shape_cast %465 : vector<1x1x8x32xf32> to vector<8x32xf32>
    %467 = vector.broadcast %130 : f32 to vector<8x32xf32>
    %468 = arith.mulf %467, %466 : vector<8x32xf32>
    %469 = arith.addf %462, %468 : vector<8x32xf32>
    %c1_i32_360 = arith.constant 1 : i32
    %470 = arith.addi %154, %c1_i32_360 : i32
    %c0_361 = arith.constant 0 : index
    %c0_362 = arith.constant 0 : index
    %471 = arith.index_cast %470 : i32 to index
    %c2_363 = arith.constant 2 : index
    %472 = vector.load %arg2[%c0_361, %c0_362, %471, %c2_363] : memref<1x2x18x34xf32, #tpu.memory_space<vmem>>, vector<1x1x8x32xf32>
    %473 = vector.shape_cast %472 : vector<1x1x8x32xf32> to vector<8x32xf32>
    %474 = vector.broadcast %138 : f32 to vector<8x32xf32>
    %475 = arith.mulf %474, %473 : vector<8x32xf32>
    %476 = arith.addf %469, %475 : vector<8x32xf32>
    %477 = vector.broadcast %146 : f32 to vector<8x32xf32>
    %478 = arith.addf %476, %477 : vector<8x32xf32>
    %c0_364 = arith.constant 0 : index
    %c0_365 = arith.constant 0 : index
    %c0_366 = arith.constant 0 : index
    %c32 = arith.constant 32 : index
    %479 = vector.load %arg4[%c0_364, %c0_365, %c0_366, %c32] : memref<1x8x16x64xf32, #tpu.memory_space<vmem>>, vector<1x1x8x32xf32>
    %480 = vector.shape_cast %479 : vector<1x1x8x32xf32> to vector<8x32xf32>
    %481 = vector.shape_cast %478 : vector<8x32xf32> to vector<1x1x8x32xf32>
    tpu.vector_store %arg4[%c0_364, %c0_365, %c0_366, %c32], %481 {strides = array<i32>} : memref<1x8x16x64xf32, #tpu.memory_space<vmem>>, vector<1x1x8x32xf32>,
    %482 = vector.broadcast %75 : f32 to vector<8x32xf32>
    %483 = arith.mulf %482, %178 : vector<8x32xf32>
    %484 = vector.broadcast %83 : f32 to vector<8x32xf32>
    %485 = arith.mulf %484, %185 : vector<8x32xf32>
    %486 = arith.addf %483, %485 : vector<8x32xf32>
    %487 = vector.broadcast %91 : f32 to vector<8x32xf32>
    %488 = arith.mulf %487, %192 : vector<8x32xf32>
    %489 = arith.addf %486, %488 : vector<8x32xf32>
    %490 = vector.broadcast %99 : f32 to vector<8x32xf32>
    %491 = arith.mulf %490, %199 : vector<8x32xf32>
    %492 = arith.addf %489, %491 : vector<8x32xf32>
    %493 = vector.broadcast %107 : f32 to vector<8x32xf32>
    %494 = arith.mulf %493, %206 : vector<8x32xf32>
    %495 = arith.addf %492, %494 : vector<8x32xf32>
    %496 = vector.broadcast %115 : f32 to vector<8x32xf32>
    %497 = arith.mulf %496, %213 : vector<8x32xf32>
    %498 = arith.addf %495, %497 : vector<8x32xf32>
    %499 = vector.broadcast %123 : f32 to vector<8x32xf32>
    %500 = arith.mulf %499, %459 : vector<8x32xf32>
    %501 = arith.addf %498, %500 : vector<8x32xf32>
    %502 = vector.broadcast %131 : f32 to vector<8x32xf32>
    %503 = arith.mulf %502, %466 : vector<8x32xf32>
    %504 = arith.addf %501, %503 : vector<8x32xf32>
    %505 = vector.broadcast %139 : f32 to vector<8x32xf32>
    %506 = arith.mulf %505, %473 : vector<8x32xf32>
    %507 = arith.addf %504, %506 : vector<8x32xf32>
    %508 = vector.broadcast %147 : f32 to vector<8x32xf32>
    %509 = arith.addf %507, %508 : vector<8x32xf32>
    %c0_367 = arith.constant 0 : index
    %c1_368 = arith.constant 1 : index
    %c0_369 = arith.constant 0 : index
    %c32_370 = arith.constant 32 : index
    %510 = vector.load %arg4[%c0_367, %c1_368, %c0_369, %c32_370] : memref<1x8x16x64xf32, #tpu.memory_space<vmem>>, vector<1x1x8x32xf32>
    %511 = vector.shape_cast %510 : vector<1x1x8x32xf32> to vector<8x32xf32>
    %512 = vector.shape_cast %509 : vector<8x32xf32> to vector<1x1x8x32xf32>
    tpu.vector_store %arg4[%c0_367, %c1_368, %c0_369, %c32_370], %512 {strides = array<i32>} : memref<1x8x16x64xf32, #tpu.memory_space<vmem>>, vector<1x1x8x32xf32>,
    %513 = vector.broadcast %76 : f32 to vector<8x32xf32>
    %514 = arith.mulf %513, %178 : vector<8x32xf32>
    %515 = vector.broadcast %84 : f32 to vector<8x32xf32>
    %516 = arith.mulf %515, %185 : vector<8x32xf32>
    %517 = arith.addf %514, %516 : vector<8x32xf32>
    %518 = vector.broadcast %92 : f32 to vector<8x32xf32>
    %519 = arith.mulf %518, %192 : vector<8x32xf32>
    %520 = arith.addf %517, %519 : vector<8x32xf32>
    %521 = vector.broadcast %100 : f32 to vector<8x32xf32>
    %522 = arith.mulf %521, %199 : vector<8x32xf32>
    %523 = arith.addf %520, %522 : vector<8x32xf32>
    %524 = vector.broadcast %108 : f32 to vector<8x32xf32>
    %525 = arith.mulf %524, %206 : vector<8x32xf32>
    %526 = arith.addf %523, %525 : vector<8x32xf32>
    %527 = vector.broadcast %116 : f32 to vector<8x32xf32>
    %528 = arith.mulf %527, %213 : vector<8x32xf32>
    %529 = arith.addf %526, %528 : vector<8x32xf32>
    %530 = vector.broadcast %124 : f32 to vector<8x32xf32>
    %531 = arith.mulf %530, %459 : vector<8x32xf32>
    %532 = arith.addf %529, %531 : vector<8x32xf32>
    %533 = vector.broadcast %132 : f32 to vector<8x32xf32>
    %534 = arith.mulf %533, %466 : vector<8x32xf32>
    %535 = arith.addf %532, %534 : vector<8x32xf32>
    %536 = vector.broadcast %140 : f32 to vector<8x32xf32>
    %537 = arith.mulf %536, %473 : vector<8x32xf32>
    %538 = arith.addf %535, %537 : vector<8x32xf32>
    %539 = vector.broadcast %148 : f32 to vector<8x32xf32>
    %540 = arith.addf %538, %539 : vector<8x32xf32>
    %c0_371 = arith.constant 0 : index
    %c2_372 = arith.constant 2 : index
    %c0_373 = arith.constant 0 : index
    %c32_374 = arith.constant 32 : index
    %541 = vector.load %arg4[%c0_371, %c2_372, %c0_373, %c32_374] : memref<1x8x16x64xf32, #tpu.memory_space<vmem>>, vector<1x1x8x32xf32>
    %542 = vector.shape_cast %541 : vector<1x1x8x32xf32> to vector<8x32xf32>
    %543 = vector.shape_cast %540 : vector<8x32xf32> to vector<1x1x8x32xf32>
    tpu.vector_store %arg4[%c0_371, %c2_372, %c0_373, %c32_374], %543 {strides = array<i32>} : memref<1x8x16x64xf32, #tpu.memory_space<vmem>>, vector<1x1x8x32xf32>,
    %544 = vector.broadcast %77 : f32 to vector<8x32xf32>
    %545 = arith.mulf %544, %178 : vector<8x32xf32>
    %546 = vector.broadcast %85 : f32 to vector<8x32xf32>
    %547 = arith.mulf %546, %185 : vector<8x32xf32>
    %548 = arith.addf %545, %547 : vector<8x32xf32>
    %549 = vector.broadcast %93 : f32 to vector<8x32xf32>
    %550 = arith.mulf %549, %192 : vector<8x32xf32>
    %551 = arith.addf %548, %550 : vector<8x32xf32>
    %552 = vector.broadcast %101 : f32 to vector<8x32xf32>
    %553 = arith.mulf %552, %199 : vector<8x32xf32>
    %554 = arith.addf %551, %553 : vector<8x32xf32>
    %555 = vector.broadcast %109 : f32 to vector<8x32xf32>
    %556 = arith.mulf %555, %206 : vector<8x32xf32>
    %557 = arith.addf %554, %556 : vector<8x32xf32>
    %558 = vector.broadcast %117 : f32 to vector<8x32xf32>
    %559 = arith.mulf %558, %213 : vector<8x32xf32>
    %560 = arith.addf %557, %559 : vector<8x32xf32>
    %561 = vector.broadcast %125 : f32 to vector<8x32xf32>
    %562 = arith.mulf %561, %459 : vector<8x32xf32>
    %563 = arith.addf %560, %562 : vector<8x32xf32>
    %564 = vector.broadcast %133 : f32 to vector<8x32xf32>
    %565 = arith.mulf %564, %466 : vector<8x32xf32>
    %566 = arith.addf %563, %565 : vector<8x32xf32>
    %567 = vector.broadcast %141 : f32 to vector<8x32xf32>
    %568 = arith.mulf %567, %473 : vector<8x32xf32>
    %569 = arith.addf %566, %568 : vector<8x32xf32>
    %570 = vector.broadcast %149 : f32 to vector<8x32xf32>
    %571 = arith.addf %569, %570 : vector<8x32xf32>
    %c0_375 = arith.constant 0 : index
    %c3_376 = arith.constant 3 : index
    %c0_377 = arith.constant 0 : index
    %c32_378 = arith.constant 32 : index
    %572 = vector.load %arg4[%c0_375, %c3_376, %c0_377, %c32_378] : memref<1x8x16x64xf32, #tpu.memory_space<vmem>>, vector<1x1x8x32xf32>
    %573 = vector.shape_cast %572 : vector<1x1x8x32xf32> to vector<8x32xf32>
    %574 = vector.shape_cast %571 : vector<8x32xf32> to vector<1x1x8x32xf32>
    tpu.vector_store %arg4[%c0_375, %c3_376, %c0_377, %c32_378], %574 {strides = array<i32>} : memref<1x8x16x64xf32, #tpu.memory_space<vmem>>, vector<1x1x8x32xf32>,
    %575 = vector.broadcast %78 : f32 to vector<8x32xf32>
    %576 = arith.mulf %575, %178 : vector<8x32xf32>
    %577 = vector.broadcast %86 : f32 to vector<8x32xf32>
    %578 = arith.mulf %577, %185 : vector<8x32xf32>
    %579 = arith.addf %576, %578 : vector<8x32xf32>
    %580 = vector.broadcast %94 : f32 to vector<8x32xf32>
    %581 = arith.mulf %580, %192 : vector<8x32xf32>
    %582 = arith.addf %579, %581 : vector<8x32xf32>
    %583 = vector.broadcast %102 : f32 to vector<8x32xf32>
    %584 = arith.mulf %583, %199 : vector<8x32xf32>
    %585 = arith.addf %582, %584 : vector<8x32xf32>
    %586 = vector.broadcast %110 : f32 to vector<8x32xf32>
    %587 = arith.mulf %586, %206 : vector<8x32xf32>
    %588 = arith.addf %585, %587 : vector<8x32xf32>
    %589 = vector.broadcast %118 : f32 to vector<8x32xf32>
    %590 = arith.mulf %589, %213 : vector<8x32xf32>
    %591 = arith.addf %588, %590 : vector<8x32xf32>
    %592 = vector.broadcast %126 : f32 to vector<8x32xf32>
    %593 = arith.mulf %592, %459 : vector<8x32xf32>
    %594 = arith.addf %591, %593 : vector<8x32xf32>
    %595 = vector.broadcast %134 : f32 to vector<8x32xf32>
    %596 = arith.mulf %595, %466 : vector<8x32xf32>
    %597 = arith.addf %594, %596 : vector<8x32xf32>
    %598 = vector.broadcast %142 : f32 to vector<8x32xf32>
    %599 = arith.mulf %598, %473 : vector<8x32xf32>
    %600 = arith.addf %597, %599 : vector<8x32xf32>
    %601 = vector.broadcast %150 : f32 to vector<8x32xf32>
    %602 = arith.addf %600, %601 : vector<8x32xf32>
    %c0_379 = arith.constant 0 : index
    %c4_380 = arith.constant 4 : index
    %c0_381 = arith.constant 0 : index
    %c32_382 = arith.constant 32 : index
    %603 = vector.load %arg4[%c0_379, %c4_380, %c0_381, %c32_382] : memref<1x8x16x64xf32, #tpu.memory_space<vmem>>, vector<1x1x8x32xf32>
    %604 = vector.shape_cast %603 : vector<1x1x8x32xf32> to vector<8x32xf32>
    %605 = vector.shape_cast %602 : vector<8x32xf32> to vector<1x1x8x32xf32>
    tpu.vector_store %arg4[%c0_379, %c4_380, %c0_381, %c32_382], %605 {strides = array<i32>} : memref<1x8x16x64xf32, #tpu.memory_space<vmem>>, vector<1x1x8x32xf32>,
    %606 = vector.broadcast %79 : f32 to vector<8x32xf32>
    %607 = arith.mulf %606, %178 : vector<8x32xf32>
    %608 = vector.broadcast %87 : f32 to vector<8x32xf32>
    %609 = arith.mulf %608, %185 : vector<8x32xf32>
    %610 = arith.addf %607, %609 : vector<8x32xf32>
    %611 = vector.broadcast %95 : f32 to vector<8x32xf32>
    %612 = arith.mulf %611, %192 : vector<8x32xf32>
    %613 = arith.addf %610, %612 : vector<8x32xf32>
    %614 = vector.broadcast %103 : f32 to vector<8x32xf32>
    %615 = arith.mulf %614, %199 : vector<8x32xf32>
    %616 = arith.addf %613, %615 : vector<8x32xf32>
    %617 = vector.broadcast %111 : f32 to vector<8x32xf32>
    %618 = arith.mulf %617, %206 : vector<8x32xf32>
    %619 = arith.addf %616, %618 : vector<8x32xf32>
    %620 = vector.broadcast %119 : f32 to vector<8x32xf32>
    %621 = arith.mulf %620, %213 : vector<8x32xf32>
    %622 = arith.addf %619, %621 : vector<8x32xf32>
    %623 = vector.broadcast %127 : f32 to vector<8x32xf32>
    %624 = arith.mulf %623, %459 : vector<8x32xf32>
    %625 = arith.addf %622, %624 : vector<8x32xf32>
    %626 = vector.broadcast %135 : f32 to vector<8x32xf32>
    %627 = arith.mulf %626, %466 : vector<8x32xf32>
    %628 = arith.addf %625, %627 : vector<8x32xf32>
    %629 = vector.broadcast %143 : f32 to vector<8x32xf32>
    %630 = arith.mulf %629, %473 : vector<8x32xf32>
    %631 = arith.addf %628, %630 : vector<8x32xf32>
    %632 = vector.broadcast %151 : f32 to vector<8x32xf32>
    %633 = arith.addf %631, %632 : vector<8x32xf32>
    %c0_383 = arith.constant 0 : index
    %c5_384 = arith.constant 5 : index
    %c0_385 = arith.constant 0 : index
    %c32_386 = arith.constant 32 : index
    %634 = vector.load %arg4[%c0_383, %c5_384, %c0_385, %c32_386] : memref<1x8x16x64xf32, #tpu.memory_space<vmem>>, vector<1x1x8x32xf32>
    %635 = vector.shape_cast %634 : vector<1x1x8x32xf32> to vector<8x32xf32>
    %636 = vector.shape_cast %633 : vector<8x32xf32> to vector<1x1x8x32xf32>
    tpu.vector_store %arg4[%c0_383, %c5_384, %c0_385, %c32_386], %636 {strides = array<i32>} : memref<1x8x16x64xf32, #tpu.memory_space<vmem>>, vector<1x1x8x32xf32>,
    %637 = vector.broadcast %80 : f32 to vector<8x32xf32>
    %638 = arith.mulf %637, %178 : vector<8x32xf32>
    %639 = vector.broadcast %88 : f32 to vector<8x32xf32>
    %640 = arith.mulf %639, %185 : vector<8x32xf32>
    %641 = arith.addf %638, %640 : vector<8x32xf32>
    %642 = vector.broadcast %96 : f32 to vector<8x32xf32>
    %643 = arith.mulf %642, %192 : vector<8x32xf32>
    %644 = arith.addf %641, %643 : vector<8x32xf32>
    %645 = vector.broadcast %104 : f32 to vector<8x32xf32>
    %646 = arith.mulf %645, %199 : vector<8x32xf32>
    %647 = arith.addf %644, %646 : vector<8x32xf32>
    %648 = vector.broadcast %112 : f32 to vector<8x32xf32>
    %649 = arith.mulf %648, %206 : vector<8x32xf32>
    %650 = arith.addf %647, %649 : vector<8x32xf32>
    %651 = vector.broadcast %120 : f32 to vector<8x32xf32>
    %652 = arith.mulf %651, %213 : vector<8x32xf32>
    %653 = arith.addf %650, %652 : vector<8x32xf32>
    %654 = vector.broadcast %128 : f32 to vector<8x32xf32>
    %655 = arith.mulf %654, %459 : vector<8x32xf32>
    %656 = arith.addf %653, %655 : vector<8x32xf32>
    %657 = vector.broadcast %136 : f32 to vector<8x32xf32>
    %658 = arith.mulf %657, %466 : vector<8x32xf32>
    %659 = arith.addf %656, %658 : vector<8x32xf32>
    %660 = vector.broadcast %144 : f32 to vector<8x32xf32>
    %661 = arith.mulf %660, %473 : vector<8x32xf32>
    %662 = arith.addf %659, %661 : vector<8x32xf32>
    %663 = vector.broadcast %152 : f32 to vector<8x32xf32>
    %664 = arith.addf %662, %663 : vector<8x32xf32>
    %c0_387 = arith.constant 0 : index
    %c6_388 = arith.constant 6 : index
    %c0_389 = arith.constant 0 : index
    %c32_390 = arith.constant 32 : index
    %665 = vector.load %arg4[%c0_387, %c6_388, %c0_389, %c32_390] : memref<1x8x16x64xf32, #tpu.memory_space<vmem>>, vector<1x1x8x32xf32>
    %666 = vector.shape_cast %665 : vector<1x1x8x32xf32> to vector<8x32xf32>
    %667 = vector.shape_cast %664 : vector<8x32xf32> to vector<1x1x8x32xf32>
    tpu.vector_store %arg4[%c0_387, %c6_388, %c0_389, %c32_390], %667 {strides = array<i32>} : memref<1x8x16x64xf32, #tpu.memory_space<vmem>>, vector<1x1x8x32xf32>,
    %668 = vector.broadcast %81 : f32 to vector<8x32xf32>
    %669 = arith.mulf %668, %178 : vector<8x32xf32>
    %670 = vector.broadcast %89 : f32 to vector<8x32xf32>
    %671 = arith.mulf %670, %185 : vector<8x32xf32>
    %672 = arith.addf %669, %671 : vector<8x32xf32>
    %673 = vector.broadcast %97 : f32 to vector<8x32xf32>
    %674 = arith.mulf %673, %192 : vector<8x32xf32>
    %675 = arith.addf %672, %674 : vector<8x32xf32>
    %676 = vector.broadcast %105 : f32 to vector<8x32xf32>
    %677 = arith.mulf %676, %199 : vector<8x32xf32>
    %678 = arith.addf %675, %677 : vector<8x32xf32>
    %679 = vector.broadcast %113 : f32 to vector<8x32xf32>
    %680 = arith.mulf %679, %206 : vector<8x32xf32>
    %681 = arith.addf %678, %680 : vector<8x32xf32>
    %682 = vector.broadcast %121 : f32 to vector<8x32xf32>
    %683 = arith.mulf %682, %213 : vector<8x32xf32>
    %684 = arith.addf %681, %683 : vector<8x32xf32>
    %685 = vector.broadcast %129 : f32 to vector<8x32xf32>
    %686 = arith.mulf %685, %459 : vector<8x32xf32>
    %687 = arith.addf %684, %686 : vector<8x32xf32>
    %688 = vector.broadcast %137 : f32 to vector<8x32xf32>
    %689 = arith.mulf %688, %466 : vector<8x32xf32>
    %690 = arith.addf %687, %689 : vector<8x32xf32>
    %691 = vector.broadcast %145 : f32 to vector<8x32xf32>
    %692 = arith.mulf %691, %473 : vector<8x32xf32>
    %693 = arith.addf %690, %692 : vector<8x32xf32>
    %694 = vector.broadcast %153 : f32 to vector<8x32xf32>
    %695 = arith.addf %693, %694 : vector<8x32xf32>
    %c0_391 = arith.constant 0 : index
    %c7_392 = arith.constant 7 : index
    %c0_393 = arith.constant 0 : index
    %c32_394 = arith.constant 32 : index
    %696 = vector.load %arg4[%c0_391, %c7_392, %c0_393, %c32_394] : memref<1x8x16x64xf32, #tpu.memory_space<vmem>>, vector<1x1x8x32xf32>
    %697 = vector.shape_cast %696 : vector<1x1x8x32xf32> to vector<8x32xf32>
    %698 = vector.shape_cast %695 : vector<8x32xf32> to vector<1x1x8x32xf32>
    tpu.vector_store %arg4[%c0_391, %c7_392, %c0_393, %c32_394], %698 {strides = array<i32>} : memref<1x8x16x64xf32, #tpu.memory_space<vmem>>, vector<1x1x8x32xf32>,
    %c8_i32 = arith.constant 8 : i32
    %699 = arith.addi %1, %c8_i32 : i32
    %c-1_i32_395 = arith.constant -1 : i32
    %700 = arith.addi %699, %c-1_i32_395 : i32
    %c0_396 = arith.constant 0 : index
    %c1_397 = arith.constant 1 : index
    %701 = arith.index_cast %700 : i32 to index
    %c0_398 = arith.constant 0 : index
    %702 = vector.load %arg2[%c0_396, %c1_397, %701, %c0_398] : memref<1x2x18x34xf32, #tpu.memory_space<vmem>>, vector<1x1x8x32xf32>
    %703 = vector.shape_cast %702 : vector<1x1x8x32xf32> to vector<8x32xf32>
    %704 = vector.broadcast %2 : f32 to vector<8x32xf32>
    %705 = arith.mulf %704, %703 : vector<8x32xf32>
    %c-1_i32_399 = arith.constant -1 : i32
    %706 = arith.addi %699, %c-1_i32_399 : i32
    %c0_400 = arith.constant 0 : index
    %c1_401 = arith.constant 1 : index
    %707 = arith.index_cast %706 : i32 to index
    %c1_402 = arith.constant 1 : index
    %708 = vector.load %arg2[%c0_400, %c1_401, %707, %c1_402] : memref<1x2x18x34xf32, #tpu.memory_space<vmem>>, vector<1x1x8x32xf32>
    %709 = vector.shape_cast %708 : vector<1x1x8x32xf32> to vector<8x32xf32>
    %710 = vector.broadcast %10 : f32 to vector<8x32xf32>
    %711 = arith.mulf %710, %709 : vector<8x32xf32>
    %712 = arith.addf %705, %711 : vector<8x32xf32>
    %c-1_i32_403 = arith.constant -1 : i32
    %713 = arith.addi %699, %c-1_i32_403 : i32
    %c0_404 = arith.constant 0 : index
    %c1_405 = arith.constant 1 : index
    %714 = arith.index_cast %713 : i32 to index
    %c2_406 = arith.constant 2 : index
    %715 = vector.load %arg2[%c0_404, %c1_405, %714, %c2_406] : memref<1x2x18x34xf32, #tpu.memory_space<vmem>>, vector<1x1x8x32xf32>
    %716 = vector.shape_cast %715 : vector<1x1x8x32xf32> to vector<8x32xf32>
    %717 = vector.broadcast %18 : f32 to vector<8x32xf32>
    %718 = arith.mulf %717, %716 : vector<8x32xf32>
    %719 = arith.addf %712, %718 : vector<8x32xf32>
    %c0_i32_407 = arith.constant 0 : i32
    %720 = arith.addi %699, %c0_i32_407 : i32
    %c0_408 = arith.constant 0 : index
    %c0_409 = arith.constant 0 : index
    %721 = arith.index_cast %720 : i32 to index
    %c0_410 = arith.constant 0 : index
    %722 = vector.load %arg2[%c0_408, %c0_409, %721, %c0_410] : memref<1x2x18x34xf32, #tpu.memory_space<vmem>>, vector<1x1x8x32xf32>
    %723 = vector.shape_cast %722 : vector<1x1x8x32xf32> to vector<8x32xf32>
    %724 = vector.broadcast %26 : f32 to vector<8x32xf32>
    %725 = arith.mulf %724, %723 : vector<8x32xf32>
    %726 = arith.addf %719, %725 : vector<8x32xf32>
    %c0_i32_411 = arith.constant 0 : i32
    %727 = arith.addi %699, %c0_i32_411 : i32
    %c0_412 = arith.constant 0 : index
    %c0_413 = arith.constant 0 : index
    %728 = arith.index_cast %727 : i32 to index
    %c1_414 = arith.constant 1 : index
    %729 = vector.load %arg2[%c0_412, %c0_413, %728, %c1_414] : memref<1x2x18x34xf32, #tpu.memory_space<vmem>>, vector<1x1x8x32xf32>
    %730 = vector.shape_cast %729 : vector<1x1x8x32xf32> to vector<8x32xf32>
    %731 = vector.broadcast %34 : f32 to vector<8x32xf32>
    %732 = arith.mulf %731, %730 : vector<8x32xf32>
    %733 = arith.addf %726, %732 : vector<8x32xf32>
    %c0_i32_415 = arith.constant 0 : i32
    %734 = arith.addi %699, %c0_i32_415 : i32
    %c0_416 = arith.constant 0 : index
    %c0_417 = arith.constant 0 : index
    %735 = arith.index_cast %734 : i32 to index
    %c2_418 = arith.constant 2 : index
    %736 = vector.load %arg2[%c0_416, %c0_417, %735, %c2_418] : memref<1x2x18x34xf32, #tpu.memory_space<vmem>>, vector<1x1x8x32xf32>
    %737 = vector.shape_cast %736 : vector<1x1x8x32xf32> to vector<8x32xf32>
    %738 = vector.broadcast %42 : f32 to vector<8x32xf32>
    %739 = arith.mulf %738, %737 : vector<8x32xf32>
    %740 = arith.addf %733, %739 : vector<8x32xf32>
    %c0_i32_419 = arith.constant 0 : i32
    %741 = arith.addi %699, %c0_i32_419 : i32
    %c0_420 = arith.constant 0 : index
    %c1_421 = arith.constant 1 : index
    %742 = arith.index_cast %741 : i32 to index
    %c0_422 = arith.constant 0 : index
    %743 = vector.load %arg2[%c0_420, %c1_421, %742, %c0_422] : memref<1x2x18x34xf32, #tpu.memory_space<vmem>>, vector<1x1x8x32xf32>
    %744 = vector.shape_cast %743 : vector<1x1x8x32xf32> to vector<8x32xf32>
    %745 = vector.broadcast %50 : f32 to vector<8x32xf32>
    %746 = arith.mulf %745, %744 : vector<8x32xf32>
    %747 = arith.addf %740, %746 : vector<8x32xf32>
    %c0_i32_423 = arith.constant 0 : i32
    %748 = arith.addi %699, %c0_i32_423 : i32
    %c0_424 = arith.constant 0 : index
    %c1_425 = arith.constant 1 : index
    %749 = arith.index_cast %748 : i32 to index
    %c1_426 = arith.constant 1 : index
    %750 = vector.load %arg2[%c0_424, %c1_425, %749, %c1_426] : memref<1x2x18x34xf32, #tpu.memory_space<vmem>>, vector<1x1x8x32xf32>
    %751 = vector.shape_cast %750 : vector<1x1x8x32xf32> to vector<8x32xf32>
    %752 = vector.broadcast %58 : f32 to vector<8x32xf32>
    %753 = arith.mulf %752, %751 : vector<8x32xf32>
    %754 = arith.addf %747, %753 : vector<8x32xf32>
    %c0_i32_427 = arith.constant 0 : i32
    %755 = arith.addi %699, %c0_i32_427 : i32
    %c0_428 = arith.constant 0 : index
    %c1_429 = arith.constant 1 : index
    %756 = arith.index_cast %755 : i32 to index
    %c2_430 = arith.constant 2 : index
    %757 = vector.load %arg2[%c0_428, %c1_429, %756, %c2_430] : memref<1x2x18x34xf32, #tpu.memory_space<vmem>>, vector<1x1x8x32xf32>
    %758 = vector.shape_cast %757 : vector<1x1x8x32xf32> to vector<8x32xf32>
    %759 = vector.broadcast %66 : f32 to vector<8x32xf32>
    %760 = arith.mulf %759, %758 : vector<8x32xf32>
    %761 = arith.addf %754, %760 : vector<8x32xf32>
    %762 = vector.broadcast %146 : f32 to vector<8x32xf32>
    %763 = arith.addf %761, %762 : vector<8x32xf32>
    %c0_431 = arith.constant 0 : index
    %c0_432 = arith.constant 0 : index
    %c8_433 = arith.constant 8 : index
    %c0_434 = arith.constant 0 : index
    %764 = vector.load %arg4[%c0_431, %c0_432, %c8_433, %c0_434] : memref<1x8x16x64xf32, #tpu.memory_space<vmem>>, vector<1x1x8x32xf32>
    %765 = vector.shape_cast %764 : vector<1x1x8x32xf32> to vector<8x32xf32>
    %766 = vector.shape_cast %763 : vector<8x32xf32> to vector<1x1x8x32xf32>
    tpu.vector_store %arg4[%c0_431, %c0_432, %c8_433, %c0_434], %766 {strides = array<i32>} : memref<1x8x16x64xf32, #tpu.memory_space<vmem>>, vector<1x1x8x32xf32>,
    %767 = vector.broadcast %3 : f32 to vector<8x32xf32>
    %768 = arith.mulf %767, %703 : vector<8x32xf32>
    %769 = vector.broadcast %11 : f32 to vector<8x32xf32>
    %770 = arith.mulf %769, %709 : vector<8x32xf32>
    %771 = arith.addf %768, %770 : vector<8x32xf32>
    %772 = vector.broadcast %19 : f32 to vector<8x32xf32>
    %773 = arith.mulf %772, %716 : vector<8x32xf32>
    %774 = arith.addf %771, %773 : vector<8x32xf32>
    %775 = vector.broadcast %27 : f32 to vector<8x32xf32>
    %776 = arith.mulf %775, %723 : vector<8x32xf32>
    %777 = arith.addf %774, %776 : vector<8x32xf32>
    %778 = vector.broadcast %35 : f32 to vector<8x32xf32>
    %779 = arith.mulf %778, %730 : vector<8x32xf32>
    %780 = arith.addf %777, %779 : vector<8x32xf32>
    %781 = vector.broadcast %43 : f32 to vector<8x32xf32>
    %782 = arith.mulf %781, %737 : vector<8x32xf32>
    %783 = arith.addf %780, %782 : vector<8x32xf32>
    %784 = vector.broadcast %51 : f32 to vector<8x32xf32>
    %785 = arith.mulf %784, %744 : vector<8x32xf32>
    %786 = arith.addf %783, %785 : vector<8x32xf32>
    %787 = vector.broadcast %59 : f32 to vector<8x32xf32>
    %788 = arith.mulf %787, %751 : vector<8x32xf32>
    %789 = arith.addf %786, %788 : vector<8x32xf32>
    %790 = vector.broadcast %67 : f32 to vector<8x32xf32>
    %791 = arith.mulf %790, %758 : vector<8x32xf32>
    %792 = arith.addf %789, %791 : vector<8x32xf32>
    %793 = vector.broadcast %147 : f32 to vector<8x32xf32>
    %794 = arith.addf %792, %793 : vector<8x32xf32>
    %c0_435 = arith.constant 0 : index
    %c1_436 = arith.constant 1 : index
    %c8_437 = arith.constant 8 : index
    %c0_438 = arith.constant 0 : index
    %795 = vector.load %arg4[%c0_435, %c1_436, %c8_437, %c0_438] : memref<1x8x16x64xf32, #tpu.memory_space<vmem>>, vector<1x1x8x32xf32>
    %796 = vector.shape_cast %795 : vector<1x1x8x32xf32> to vector<8x32xf32>
    %797 = vector.shape_cast %794 : vector<8x32xf32> to vector<1x1x8x32xf32>
    tpu.vector_store %arg4[%c0_435, %c1_436, %c8_437, %c0_438], %797 {strides = array<i32>} : memref<1x8x16x64xf32, #tpu.memory_space<vmem>>, vector<1x1x8x32xf32>,
    %798 = vector.broadcast %4 : f32 to vector<8x32xf32>
    %799 = arith.mulf %798, %703 : vector<8x32xf32>
    %800 = vector.broadcast %12 : f32 to vector<8x32xf32>
    %801 = arith.mulf %800, %709 : vector<8x32xf32>
    %802 = arith.addf %799, %801 : vector<8x32xf32>
    %803 = vector.broadcast %20 : f32 to vector<8x32xf32>
    %804 = arith.mulf %803, %716 : vector<8x32xf32>
    %805 = arith.addf %802, %804 : vector<8x32xf32>
    %806 = vector.broadcast %28 : f32 to vector<8x32xf32>
    %807 = arith.mulf %806, %723 : vector<8x32xf32>
    %808 = arith.addf %805, %807 : vector<8x32xf32>
    %809 = vector.broadcast %36 : f32 to vector<8x32xf32>
    %810 = arith.mulf %809, %730 : vector<8x32xf32>
    %811 = arith.addf %808, %810 : vector<8x32xf32>
    %812 = vector.broadcast %44 : f32 to vector<8x32xf32>
    %813 = arith.mulf %812, %737 : vector<8x32xf32>
    %814 = arith.addf %811, %813 : vector<8x32xf32>
    %815 = vector.broadcast %52 : f32 to vector<8x32xf32>
    %816 = arith.mulf %815, %744 : vector<8x32xf32>
    %817 = arith.addf %814, %816 : vector<8x32xf32>
    %818 = vector.broadcast %60 : f32 to vector<8x32xf32>
    %819 = arith.mulf %818, %751 : vector<8x32xf32>
    %820 = arith.addf %817, %819 : vector<8x32xf32>
    %821 = vector.broadcast %68 : f32 to vector<8x32xf32>
    %822 = arith.mulf %821, %758 : vector<8x32xf32>
    %823 = arith.addf %820, %822 : vector<8x32xf32>
    %824 = vector.broadcast %148 : f32 to vector<8x32xf32>
    %825 = arith.addf %823, %824 : vector<8x32xf32>
    %c0_439 = arith.constant 0 : index
    %c2_440 = arith.constant 2 : index
    %c8_441 = arith.constant 8 : index
    %c0_442 = arith.constant 0 : index
    %826 = vector.load %arg4[%c0_439, %c2_440, %c8_441, %c0_442] : memref<1x8x16x64xf32, #tpu.memory_space<vmem>>, vector<1x1x8x32xf32>
    %827 = vector.shape_cast %826 : vector<1x1x8x32xf32> to vector<8x32xf32>
    %828 = vector.shape_cast %825 : vector<8x32xf32> to vector<1x1x8x32xf32>
    tpu.vector_store %arg4[%c0_439, %c2_440, %c8_441, %c0_442], %828 {strides = array<i32>} : memref<1x8x16x64xf32, #tpu.memory_space<vmem>>, vector<1x1x8x32xf32>,
    %829 = vector.broadcast %5 : f32 to vector<8x32xf32>
    %830 = arith.mulf %829, %703 : vector<8x32xf32>
    %831 = vector.broadcast %13 : f32 to vector<8x32xf32>
    %832 = arith.mulf %831, %709 : vector<8x32xf32>
    %833 = arith.addf %830, %832 : vector<8x32xf32>
    %834 = vector.broadcast %21 : f32 to vector<8x32xf32>
    %835 = arith.mulf %834, %716 : vector<8x32xf32>
    %836 = arith.addf %833, %835 : vector<8x32xf32>
    %837 = vector.broadcast %29 : f32 to vector<8x32xf32>
    %838 = arith.mulf %837, %723 : vector<8x32xf32>
    %839 = arith.addf %836, %838 : vector<8x32xf32>
    %840 = vector.broadcast %37 : f32 to vector<8x32xf32>
    %841 = arith.mulf %840, %730 : vector<8x32xf32>
    %842 = arith.addf %839, %841 : vector<8x32xf32>
    %843 = vector.broadcast %45 : f32 to vector<8x32xf32>
    %844 = arith.mulf %843, %737 : vector<8x32xf32>
    %845 = arith.addf %842, %844 : vector<8x32xf32>
    %846 = vector.broadcast %53 : f32 to vector<8x32xf32>
    %847 = arith.mulf %846, %744 : vector<8x32xf32>
    %848 = arith.addf %845, %847 : vector<8x32xf32>
    %849 = vector.broadcast %61 : f32 to vector<8x32xf32>
    %850 = arith.mulf %849, %751 : vector<8x32xf32>
    %851 = arith.addf %848, %850 : vector<8x32xf32>
    %852 = vector.broadcast %69 : f32 to vector<8x32xf32>
    %853 = arith.mulf %852, %758 : vector<8x32xf32>
    %854 = arith.addf %851, %853 : vector<8x32xf32>
    %855 = vector.broadcast %149 : f32 to vector<8x32xf32>
    %856 = arith.addf %854, %855 : vector<8x32xf32>
    %c0_443 = arith.constant 0 : index
    %c3_444 = arith.constant 3 : index
    %c8_445 = arith.constant 8 : index
    %c0_446 = arith.constant 0 : index
    %857 = vector.load %arg4[%c0_443, %c3_444, %c8_445, %c0_446] : memref<1x8x16x64xf32, #tpu.memory_space<vmem>>, vector<1x1x8x32xf32>
    %858 = vector.shape_cast %857 : vector<1x1x8x32xf32> to vector<8x32xf32>
    %859 = vector.shape_cast %856 : vector<8x32xf32> to vector<1x1x8x32xf32>
    tpu.vector_store %arg4[%c0_443, %c3_444, %c8_445, %c0_446], %859 {strides = array<i32>} : memref<1x8x16x64xf32, #tpu.memory_space<vmem>>, vector<1x1x8x32xf32>,
    %860 = vector.broadcast %6 : f32 to vector<8x32xf32>
    %861 = arith.mulf %860, %703 : vector<8x32xf32>
    %862 = vector.broadcast %14 : f32 to vector<8x32xf32>
    %863 = arith.mulf %862, %709 : vector<8x32xf32>
    %864 = arith.addf %861, %863 : vector<8x32xf32>
    %865 = vector.broadcast %22 : f32 to vector<8x32xf32>
    %866 = arith.mulf %865, %716 : vector<8x32xf32>
    %867 = arith.addf %864, %866 : vector<8x32xf32>
    %868 = vector.broadcast %30 : f32 to vector<8x32xf32>
    %869 = arith.mulf %868, %723 : vector<8x32xf32>
    %870 = arith.addf %867, %869 : vector<8x32xf32>
    %871 = vector.broadcast %38 : f32 to vector<8x32xf32>
    %872 = arith.mulf %871, %730 : vector<8x32xf32>
    %873 = arith.addf %870, %872 : vector<8x32xf32>
    %874 = vector.broadcast %46 : f32 to vector<8x32xf32>
    %875 = arith.mulf %874, %737 : vector<8x32xf32>
    %876 = arith.addf %873, %875 : vector<8x32xf32>
    %877 = vector.broadcast %54 : f32 to vector<8x32xf32>
    %878 = arith.mulf %877, %744 : vector<8x32xf32>
    %879 = arith.addf %876, %878 : vector<8x32xf32>
    %880 = vector.broadcast %62 : f32 to vector<8x32xf32>
    %881 = arith.mulf %880, %751 : vector<8x32xf32>
    %882 = arith.addf %879, %881 : vector<8x32xf32>
    %883 = vector.broadcast %70 : f32 to vector<8x32xf32>
    %884 = arith.mulf %883, %758 : vector<8x32xf32>
    %885 = arith.addf %882, %884 : vector<8x32xf32>
    %886 = vector.broadcast %150 : f32 to vector<8x32xf32>
    %887 = arith.addf %885, %886 : vector<8x32xf32>
    %c0_447 = arith.constant 0 : index
    %c4_448 = arith.constant 4 : index
    %c8_449 = arith.constant 8 : index
    %c0_450 = arith.constant 0 : index
    %888 = vector.load %arg4[%c0_447, %c4_448, %c8_449, %c0_450] : memref<1x8x16x64xf32, #tpu.memory_space<vmem>>, vector<1x1x8x32xf32>
    %889 = vector.shape_cast %888 : vector<1x1x8x32xf32> to vector<8x32xf32>
    %890 = vector.shape_cast %887 : vector<8x32xf32> to vector<1x1x8x32xf32>
    tpu.vector_store %arg4[%c0_447, %c4_448, %c8_449, %c0_450], %890 {strides = array<i32>} : memref<1x8x16x64xf32, #tpu.memory_space<vmem>>, vector<1x1x8x32xf32>,
    %891 = vector.broadcast %7 : f32 to vector<8x32xf32>
    %892 = arith.mulf %891, %703 : vector<8x32xf32>
    %893 = vector.broadcast %15 : f32 to vector<8x32xf32>
    %894 = arith.mulf %893, %709 : vector<8x32xf32>
    %895 = arith.addf %892, %894 : vector<8x32xf32>
    %896 = vector.broadcast %23 : f32 to vector<8x32xf32>
    %897 = arith.mulf %896, %716 : vector<8x32xf32>
    %898 = arith.addf %895, %897 : vector<8x32xf32>
    %899 = vector.broadcast %31 : f32 to vector<8x32xf32>
    %900 = arith.mulf %899, %723 : vector<8x32xf32>
    %901 = arith.addf %898, %900 : vector<8x32xf32>
    %902 = vector.broadcast %39 : f32 to vector<8x32xf32>
    %903 = arith.mulf %902, %730 : vector<8x32xf32>
    %904 = arith.addf %901, %903 : vector<8x32xf32>
    %905 = vector.broadcast %47 : f32 to vector<8x32xf32>
    %906 = arith.mulf %905, %737 : vector<8x32xf32>
    %907 = arith.addf %904, %906 : vector<8x32xf32>
    %908 = vector.broadcast %55 : f32 to vector<8x32xf32>
    %909 = arith.mulf %908, %744 : vector<8x32xf32>
    %910 = arith.addf %907, %909 : vector<8x32xf32>
    %911 = vector.broadcast %63 : f32 to vector<8x32xf32>
    %912 = arith.mulf %911, %751 : vector<8x32xf32>
    %913 = arith.addf %910, %912 : vector<8x32xf32>
    %914 = vector.broadcast %71 : f32 to vector<8x32xf32>
    %915 = arith.mulf %914, %758 : vector<8x32xf32>
    %916 = arith.addf %913, %915 : vector<8x32xf32>
    %917 = vector.broadcast %151 : f32 to vector<8x32xf32>
    %918 = arith.addf %916, %917 : vector<8x32xf32>
    %c0_451 = arith.constant 0 : index
    %c5_452 = arith.constant 5 : index
    %c8_453 = arith.constant 8 : index
    %c0_454 = arith.constant 0 : index
    %919 = vector.load %arg4[%c0_451, %c5_452, %c8_453, %c0_454] : memref<1x8x16x64xf32, #tpu.memory_space<vmem>>, vector<1x1x8x32xf32>
    %920 = vector.shape_cast %919 : vector<1x1x8x32xf32> to vector<8x32xf32>
    %921 = vector.shape_cast %918 : vector<8x32xf32> to vector<1x1x8x32xf32>
    tpu.vector_store %arg4[%c0_451, %c5_452, %c8_453, %c0_454], %921 {strides = array<i32>} : memref<1x8x16x64xf32, #tpu.memory_space<vmem>>, vector<1x1x8x32xf32>,
    %922 = vector.broadcast %8 : f32 to vector<8x32xf32>
    %923 = arith.mulf %922, %703 : vector<8x32xf32>
    %924 = vector.broadcast %16 : f32 to vector<8x32xf32>
    %925 = arith.mulf %924, %709 : vector<8x32xf32>
    %926 = arith.addf %923, %925 : vector<8x32xf32>
    %927 = vector.broadcast %24 : f32 to vector<8x32xf32>
    %928 = arith.mulf %927, %716 : vector<8x32xf32>
    %929 = arith.addf %926, %928 : vector<8x32xf32>
    %930 = vector.broadcast %32 : f32 to vector<8x32xf32>
    %931 = arith.mulf %930, %723 : vector<8x32xf32>
    %932 = arith.addf %929, %931 : vector<8x32xf32>
    %933 = vector.broadcast %40 : f32 to vector<8x32xf32>
    %934 = arith.mulf %933, %730 : vector<8x32xf32>
    %935 = arith.addf %932, %934 : vector<8x32xf32>
    %936 = vector.broadcast %48 : f32 to vector<8x32xf32>
    %937 = arith.mulf %936, %737 : vector<8x32xf32>
    %938 = arith.addf %935, %937 : vector<8x32xf32>
    %939 = vector.broadcast %56 : f32 to vector<8x32xf32>
    %940 = arith.mulf %939, %744 : vector<8x32xf32>
    %941 = arith.addf %938, %940 : vector<8x32xf32>
    %942 = vector.broadcast %64 : f32 to vector<8x32xf32>
    %943 = arith.mulf %942, %751 : vector<8x32xf32>
    %944 = arith.addf %941, %943 : vector<8x32xf32>
    %945 = vector.broadcast %72 : f32 to vector<8x32xf32>
    %946 = arith.mulf %945, %758 : vector<8x32xf32>
    %947 = arith.addf %944, %946 : vector<8x32xf32>
    %948 = vector.broadcast %152 : f32 to vector<8x32xf32>
    %949 = arith.addf %947, %948 : vector<8x32xf32>
    %c0_455 = arith.constant 0 : index
    %c6_456 = arith.constant 6 : index
    %c8_457 = arith.constant 8 : index
    %c0_458 = arith.constant 0 : index
    %950 = vector.load %arg4[%c0_455, %c6_456, %c8_457, %c0_458] : memref<1x8x16x64xf32, #tpu.memory_space<vmem>>, vector<1x1x8x32xf32>
    %951 = vector.shape_cast %950 : vector<1x1x8x32xf32> to vector<8x32xf32>
    %952 = vector.shape_cast %949 : vector<8x32xf32> to vector<1x1x8x32xf32>
    tpu.vector_store %arg4[%c0_455, %c6_456, %c8_457, %c0_458], %952 {strides = array<i32>} : memref<1x8x16x64xf32, #tpu.memory_space<vmem>>, vector<1x1x8x32xf32>,
    %953 = vector.broadcast %9 : f32 to vector<8x32xf32>
    %954 = arith.mulf %953, %703 : vector<8x32xf32>
    %955 = vector.broadcast %17 : f32 to vector<8x32xf32>
    %956 = arith.mulf %955, %709 : vector<8x32xf32>
    %957 = arith.addf %954, %956 : vector<8x32xf32>
    %958 = vector.broadcast %25 : f32 to vector<8x32xf32>
    %959 = arith.mulf %958, %716 : vector<8x32xf32>
    %960 = arith.addf %957, %959 : vector<8x32xf32>
    %961 = vector.broadcast %33 : f32 to vector<8x32xf32>
    %962 = arith.mulf %961, %723 : vector<8x32xf32>
    %963 = arith.addf %960, %962 : vector<8x32xf32>
    %964 = vector.broadcast %41 : f32 to vector<8x32xf32>
    %965 = arith.mulf %964, %730 : vector<8x32xf32>
    %966 = arith.addf %963, %965 : vector<8x32xf32>
    %967 = vector.broadcast %49 : f32 to vector<8x32xf32>
    %968 = arith.mulf %967, %737 : vector<8x32xf32>
    %969 = arith.addf %966, %968 : vector<8x32xf32>
    %970 = vector.broadcast %57 : f32 to vector<8x32xf32>
    %971 = arith.mulf %970, %744 : vector<8x32xf32>
    %972 = arith.addf %969, %971 : vector<8x32xf32>
    %973 = vector.broadcast %65 : f32 to vector<8x32xf32>
    %974 = arith.mulf %973, %751 : vector<8x32xf32>
    %975 = arith.addf %972, %974 : vector<8x32xf32>
    %976 = vector.broadcast %73 : f32 to vector<8x32xf32>
    %977 = arith.mulf %976, %758 : vector<8x32xf32>
    %978 = arith.addf %975, %977 : vector<8x32xf32>
    %979 = vector.broadcast %153 : f32 to vector<8x32xf32>
    %980 = arith.addf %978, %979 : vector<8x32xf32>
    %c0_459 = arith.constant 0 : index
    %c7_460 = arith.constant 7 : index
    %c8_461 = arith.constant 8 : index
    %c0_462 = arith.constant 0 : index
    %981 = vector.load %arg4[%c0_459, %c7_460, %c8_461, %c0_462] : memref<1x8x16x64xf32, #tpu.memory_space<vmem>>, vector<1x1x8x32xf32>
    %982 = vector.shape_cast %981 : vector<1x1x8x32xf32> to vector<8x32xf32>
    %983 = vector.shape_cast %980 : vector<8x32xf32> to vector<1x1x8x32xf32>
    tpu.vector_store %arg4[%c0_459, %c7_460, %c8_461, %c0_462], %983 {strides = array<i32>} : memref<1x8x16x64xf32, #tpu.memory_space<vmem>>, vector<1x1x8x32xf32>,
    %984 = vector.broadcast %74 : f32 to vector<8x32xf32>
    %985 = arith.mulf %984, %723 : vector<8x32xf32>
    %986 = vector.broadcast %82 : f32 to vector<8x32xf32>
    %987 = arith.mulf %986, %730 : vector<8x32xf32>
    %988 = arith.addf %985, %987 : vector<8x32xf32>
    %989 = vector.broadcast %90 : f32 to vector<8x32xf32>
    %990 = arith.mulf %989, %737 : vector<8x32xf32>
    %991 = arith.addf %988, %990 : vector<8x32xf32>
    %992 = vector.broadcast %98 : f32 to vector<8x32xf32>
    %993 = arith.mulf %992, %744 : vector<8x32xf32>
    %994 = arith.addf %991, %993 : vector<8x32xf32>
    %995 = vector.broadcast %106 : f32 to vector<8x32xf32>
    %996 = arith.mulf %995, %751 : vector<8x32xf32>
    %997 = arith.addf %994, %996 : vector<8x32xf32>
    %998 = vector.broadcast %114 : f32 to vector<8x32xf32>
    %999 = arith.mulf %998, %758 : vector<8x32xf32>
    %1000 = arith.addf %997, %999 : vector<8x32xf32>
    %c1_i32_463 = arith.constant 1 : i32
    %1001 = arith.addi %699, %c1_i32_463 : i32
    %c0_464 = arith.constant 0 : index
    %c0_465 = arith.constant 0 : index
    %1002 = arith.index_cast %1001 : i32 to index
    %c0_466 = arith.constant 0 : index
    %1003 = vector.load %arg2[%c0_464, %c0_465, %1002, %c0_466] : memref<1x2x18x34xf32, #tpu.memory_space<vmem>>, vector<1x1x8x32xf32>
    %1004 = vector.shape_cast %1003 : vector<1x1x8x32xf32> to vector<8x32xf32>
    %1005 = vector.broadcast %122 : f32 to vector<8x32xf32>
    %1006 = arith.mulf %1005, %1004 : vector<8x32xf32>
    %1007 = arith.addf %1000, %1006 : vector<8x32xf32>
    %c1_i32_467 = arith.constant 1 : i32
    %1008 = arith.addi %699, %c1_i32_467 : i32
    %c0_468 = arith.constant 0 : index
    %c0_469 = arith.constant 0 : index
    %1009 = arith.index_cast %1008 : i32 to index
    %c1_470 = arith.constant 1 : index
    %1010 = vector.load %arg2[%c0_468, %c0_469, %1009, %c1_470] : memref<1x2x18x34xf32, #tpu.memory_space<vmem>>, vector<1x1x8x32xf32>
    %1011 = vector.shape_cast %1010 : vector<1x1x8x32xf32> to vector<8x32xf32>
    %1012 = vector.broadcast %130 : f32 to vector<8x32xf32>
    %1013 = arith.mulf %1012, %1011 : vector<8x32xf32>
    %1014 = arith.addf %1007, %1013 : vector<8x32xf32>
    %c1_i32_471 = arith.constant 1 : i32
    %1015 = arith.addi %699, %c1_i32_471 : i32
    %c0_472 = arith.constant 0 : index
    %c0_473 = arith.constant 0 : index
    %1016 = arith.index_cast %1015 : i32 to index
    %c2_474 = arith.constant 2 : index
    %1017 = vector.load %arg2[%c0_472, %c0_473, %1016, %c2_474] : memref<1x2x18x34xf32, #tpu.memory_space<vmem>>, vector<1x1x8x32xf32>
    %1018 = vector.shape_cast %1017 : vector<1x1x8x32xf32> to vector<8x32xf32>
    %1019 = vector.broadcast %138 : f32 to vector<8x32xf32>
    %1020 = arith.mulf %1019, %1018 : vector<8x32xf32>
    %1021 = arith.addf %1014, %1020 : vector<8x32xf32>
    %1022 = vector.broadcast %146 : f32 to vector<8x32xf32>
    %1023 = arith.addf %1021, %1022 : vector<8x32xf32>
    %c0_475 = arith.constant 0 : index
    %c0_476 = arith.constant 0 : index
    %c8_477 = arith.constant 8 : index
    %c32_478 = arith.constant 32 : index
    %1024 = vector.load %arg4[%c0_475, %c0_476, %c8_477, %c32_478] : memref<1x8x16x64xf32, #tpu.memory_space<vmem>>, vector<1x1x8x32xf32>
    %1025 = vector.shape_cast %1024 : vector<1x1x8x32xf32> to vector<8x32xf32>
    %1026 = vector.shape_cast %1023 : vector<8x32xf32> to vector<1x1x8x32xf32>
    tpu.vector_store %arg4[%c0_475, %c0_476, %c8_477, %c32_478], %1026 {strides = array<i32>} : memref<1x8x16x64xf32, #tpu.memory_space<vmem>>, vector<1x1x8x32xf32>,
    %1027 = vector.broadcast %75 : f32 to vector<8x32xf32>
    %1028 = arith.mulf %1027, %723 : vector<8x32xf32>
    %1029 = vector.broadcast %83 : f32 to vector<8x32xf32>
    %1030 = arith.mulf %1029, %730 : vector<8x32xf32>
    %1031 = arith.addf %1028, %1030 : vector<8x32xf32>
    %1032 = vector.broadcast %91 : f32 to vector<8x32xf32>
    %1033 = arith.mulf %1032, %737 : vector<8x32xf32>
    %1034 = arith.addf %1031, %1033 : vector<8x32xf32>
    %1035 = vector.broadcast %99 : f32 to vector<8x32xf32>
    %1036 = arith.mulf %1035, %744 : vector<8x32xf32>
    %1037 = arith.addf %1034, %1036 : vector<8x32xf32>
    %1038 = vector.broadcast %107 : f32 to vector<8x32xf32>
    %1039 = arith.mulf %1038, %751 : vector<8x32xf32>
    %1040 = arith.addf %1037, %1039 : vector<8x32xf32>
    %1041 = vector.broadcast %115 : f32 to vector<8x32xf32>
    %1042 = arith.mulf %1041, %758 : vector<8x32xf32>
    %1043 = arith.addf %1040, %1042 : vector<8x32xf32>
    %1044 = vector.broadcast %123 : f32 to vector<8x32xf32>
    %1045 = arith.mulf %1044, %1004 : vector<8x32xf32>
    %1046 = arith.addf %1043, %1045 : vector<8x32xf32>
    %1047 = vector.broadcast %131 : f32 to vector<8x32xf32>
    %1048 = arith.mulf %1047, %1011 : vector<8x32xf32>
    %1049 = arith.addf %1046, %1048 : vector<8x32xf32>
    %1050 = vector.broadcast %139 : f32 to vector<8x32xf32>
    %1051 = arith.mulf %1050, %1018 : vector<8x32xf32>
    %1052 = arith.addf %1049, %1051 : vector<8x32xf32>
    %1053 = vector.broadcast %147 : f32 to vector<8x32xf32>
    %1054 = arith.addf %1052, %1053 : vector<8x32xf32>
    %c0_479 = arith.constant 0 : index
    %c1_480 = arith.constant 1 : index
    %c8_481 = arith.constant 8 : index
    %c32_482 = arith.constant 32 : index
    %1055 = vector.load %arg4[%c0_479, %c1_480, %c8_481, %c32_482] : memref<1x8x16x64xf32, #tpu.memory_space<vmem>>, vector<1x1x8x32xf32>
    %1056 = vector.shape_cast %1055 : vector<1x1x8x32xf32> to vector<8x32xf32>
    %1057 = vector.shape_cast %1054 : vector<8x32xf32> to vector<1x1x8x32xf32>
    tpu.vector_store %arg4[%c0_479, %c1_480, %c8_481, %c32_482], %1057 {strides = array<i32>} : memref<1x8x16x64xf32, #tpu.memory_space<vmem>>, vector<1x1x8x32xf32>,
    %1058 = vector.broadcast %76 : f32 to vector<8x32xf32>
    %1059 = arith.mulf %1058, %723 : vector<8x32xf32>
    %1060 = vector.broadcast %84 : f32 to vector<8x32xf32>
    %1061 = arith.mulf %1060, %730 : vector<8x32xf32>
    %1062 = arith.addf %1059, %1061 : vector<8x32xf32>
    %1063 = vector.broadcast %92 : f32 to vector<8x32xf32>
    %1064 = arith.mulf %1063, %737 : vector<8x32xf32>
    %1065 = arith.addf %1062, %1064 : vector<8x32xf32>
    %1066 = vector.broadcast %100 : f32 to vector<8x32xf32>
    %1067 = arith.mulf %1066, %744 : vector<8x32xf32>
    %1068 = arith.addf %1065, %1067 : vector<8x32xf32>
    %1069 = vector.broadcast %108 : f32 to vector<8x32xf32>
    %1070 = arith.mulf %1069, %751 : vector<8x32xf32>
    %1071 = arith.addf %1068, %1070 : vector<8x32xf32>
    %1072 = vector.broadcast %116 : f32 to vector<8x32xf32>
    %1073 = arith.mulf %1072, %758 : vector<8x32xf32>
    %1074 = arith.addf %1071, %1073 : vector<8x32xf32>
    %1075 = vector.broadcast %124 : f32 to vector<8x32xf32>
    %1076 = arith.mulf %1075, %1004 : vector<8x32xf32>
    %1077 = arith.addf %1074, %1076 : vector<8x32xf32>
    %1078 = vector.broadcast %132 : f32 to vector<8x32xf32>
    %1079 = arith.mulf %1078, %1011 : vector<8x32xf32>
    %1080 = arith.addf %1077, %1079 : vector<8x32xf32>
    %1081 = vector.broadcast %140 : f32 to vector<8x32xf32>
    %1082 = arith.mulf %1081, %1018 : vector<8x32xf32>
    %1083 = arith.addf %1080, %1082 : vector<8x32xf32>
    %1084 = vector.broadcast %148 : f32 to vector<8x32xf32>
    %1085 = arith.addf %1083, %1084 : vector<8x32xf32>
    %c0_483 = arith.constant 0 : index
    %c2_484 = arith.constant 2 : index
    %c8_485 = arith.constant 8 : index
    %c32_486 = arith.constant 32 : index
    %1086 = vector.load %arg4[%c0_483, %c2_484, %c8_485, %c32_486] : memref<1x8x16x64xf32, #tpu.memory_space<vmem>>, vector<1x1x8x32xf32>
    %1087 = vector.shape_cast %1086 : vector<1x1x8x32xf32> to vector<8x32xf32>
    %1088 = vector.shape_cast %1085 : vector<8x32xf32> to vector<1x1x8x32xf32>
    tpu.vector_store %arg4[%c0_483, %c2_484, %c8_485, %c32_486], %1088 {strides = array<i32>} : memref<1x8x16x64xf32, #tpu.memory_space<vmem>>, vector<1x1x8x32xf32>,
    %1089 = vector.broadcast %77 : f32 to vector<8x32xf32>
    %1090 = arith.mulf %1089, %723 : vector<8x32xf32>
    %1091 = vector.broadcast %85 : f32 to vector<8x32xf32>
    %1092 = arith.mulf %1091, %730 : vector<8x32xf32>
    %1093 = arith.addf %1090, %1092 : vector<8x32xf32>
    %1094 = vector.broadcast %93 : f32 to vector<8x32xf32>
    %1095 = arith.mulf %1094, %737 : vector<8x32xf32>
    %1096 = arith.addf %1093, %1095 : vector<8x32xf32>
    %1097 = vector.broadcast %101 : f32 to vector<8x32xf32>
    %1098 = arith.mulf %1097, %744 : vector<8x32xf32>
    %1099 = arith.addf %1096, %1098 : vector<8x32xf32>
    %1100 = vector.broadcast %109 : f32 to vector<8x32xf32>
    %1101 = arith.mulf %1100, %751 : vector<8x32xf32>
    %1102 = arith.addf %1099, %1101 : vector<8x32xf32>
    %1103 = vector.broadcast %117 : f32 to vector<8x32xf32>
    %1104 = arith.mulf %1103, %758 : vector<8x32xf32>
    %1105 = arith.addf %1102, %1104 : vector<8x32xf32>
    %1106 = vector.broadcast %125 : f32 to vector<8x32xf32>
    %1107 = arith.mulf %1106, %1004 : vector<8x32xf32>
    %1108 = arith.addf %1105, %1107 : vector<8x32xf32>
    %1109 = vector.broadcast %133 : f32 to vector<8x32xf32>
    %1110 = arith.mulf %1109, %1011 : vector<8x32xf32>
    %1111 = arith.addf %1108, %1110 : vector<8x32xf32>
    %1112 = vector.broadcast %141 : f32 to vector<8x32xf32>
    %1113 = arith.mulf %1112, %1018 : vector<8x32xf32>
    %1114 = arith.addf %1111, %1113 : vector<8x32xf32>
    %1115 = vector.broadcast %149 : f32 to vector<8x32xf32>
    %1116 = arith.addf %1114, %1115 : vector<8x32xf32>
    %c0_487 = arith.constant 0 : index
    %c3_488 = arith.constant 3 : index
    %c8_489 = arith.constant 8 : index
    %c32_490 = arith.constant 32 : index
    %1117 = vector.load %arg4[%c0_487, %c3_488, %c8_489, %c32_490] : memref<1x8x16x64xf32, #tpu.memory_space<vmem>>, vector<1x1x8x32xf32>
    %1118 = vector.shape_cast %1117 : vector<1x1x8x32xf32> to vector<8x32xf32>
    %1119 = vector.shape_cast %1116 : vector<8x32xf32> to vector<1x1x8x32xf32>
    tpu.vector_store %arg4[%c0_487, %c3_488, %c8_489, %c32_490], %1119 {strides = array<i32>} : memref<1x8x16x64xf32, #tpu.memory_space<vmem>>, vector<1x1x8x32xf32>,
    %1120 = vector.broadcast %78 : f32 to vector<8x32xf32>
    %1121 = arith.mulf %1120, %723 : vector<8x32xf32>
    %1122 = vector.broadcast %86 : f32 to vector<8x32xf32>
    %1123 = arith.mulf %1122, %730 : vector<8x32xf32>
    %1124 = arith.addf %1121, %1123 : vector<8x32xf32>
    %1125 = vector.broadcast %94 : f32 to vector<8x32xf32>
    %1126 = arith.mulf %1125, %737 : vector<8x32xf32>
    %1127 = arith.addf %1124, %1126 : vector<8x32xf32>
    %1128 = vector.broadcast %102 : f32 to vector<8x32xf32>
    %1129 = arith.mulf %1128, %744 : vector<8x32xf32>
    %1130 = arith.addf %1127, %1129 : vector<8x32xf32>
    %1131 = vector.broadcast %110 : f32 to vector<8x32xf32>
    %1132 = arith.mulf %1131, %751 : vector<8x32xf32>
    %1133 = arith.addf %1130, %1132 : vector<8x32xf32>
    %1134 = vector.broadcast %118 : f32 to vector<8x32xf32>
    %1135 = arith.mulf %1134, %758 : vector<8x32xf32>
    %1136 = arith.addf %1133, %1135 : vector<8x32xf32>
    %1137 = vector.broadcast %126 : f32 to vector<8x32xf32>
    %1138 = arith.mulf %1137, %1004 : vector<8x32xf32>
    %1139 = arith.addf %1136, %1138 : vector<8x32xf32>
    %1140 = vector.broadcast %134 : f32 to vector<8x32xf32>
    %1141 = arith.mulf %1140, %1011 : vector<8x32xf32>
    %1142 = arith.addf %1139, %1141 : vector<8x32xf32>
    %1143 = vector.broadcast %142 : f32 to vector<8x32xf32>
    %1144 = arith.mulf %1143, %1018 : vector<8x32xf32>
    %1145 = arith.addf %1142, %1144 : vector<8x32xf32>
    %1146 = vector.broadcast %150 : f32 to vector<8x32xf32>
    %1147 = arith.addf %1145, %1146 : vector<8x32xf32>
    %c0_491 = arith.constant 0 : index
    %c4_492 = arith.constant 4 : index
    %c8_493 = arith.constant 8 : index
    %c32_494 = arith.constant 32 : index
    %1148 = vector.load %arg4[%c0_491, %c4_492, %c8_493, %c32_494] : memref<1x8x16x64xf32, #tpu.memory_space<vmem>>, vector<1x1x8x32xf32>
    %1149 = vector.shape_cast %1148 : vector<1x1x8x32xf32> to vector<8x32xf32>
    %1150 = vector.shape_cast %1147 : vector<8x32xf32> to vector<1x1x8x32xf32>
    tpu.vector_store %arg4[%c0_491, %c4_492, %c8_493, %c32_494], %1150 {strides = array<i32>} : memref<1x8x16x64xf32, #tpu.memory_space<vmem>>, vector<1x1x8x32xf32>,
    %1151 = vector.broadcast %79 : f32 to vector<8x32xf32>
    %1152 = arith.mulf %1151, %723 : vector<8x32xf32>
    %1153 = vector.broadcast %87 : f32 to vector<8x32xf32>
    %1154 = arith.mulf %1153, %730 : vector<8x32xf32>
    %1155 = arith.addf %1152, %1154 : vector<8x32xf32>
    %1156 = vector.broadcast %95 : f32 to vector<8x32xf32>
    %1157 = arith.mulf %1156, %737 : vector<8x32xf32>
    %1158 = arith.addf %1155, %1157 : vector<8x32xf32>
    %1159 = vector.broadcast %103 : f32 to vector<8x32xf32>
    %1160 = arith.mulf %1159, %744 : vector<8x32xf32>
    %1161 = arith.addf %1158, %1160 : vector<8x32xf32>
    %1162 = vector.broadcast %111 : f32 to vector<8x32xf32>
    %1163 = arith.mulf %1162, %751 : vector<8x32xf32>
    %1164 = arith.addf %1161, %1163 : vector<8x32xf32>
    %1165 = vector.broadcast %119 : f32 to vector<8x32xf32>
    %1166 = arith.mulf %1165, %758 : vector<8x32xf32>
    %1167 = arith.addf %1164, %1166 : vector<8x32xf32>
    %1168 = vector.broadcast %127 : f32 to vector<8x32xf32>
    %1169 = arith.mulf %1168, %1004 : vector<8x32xf32>
    %1170 = arith.addf %1167, %1169 : vector<8x32xf32>
    %1171 = vector.broadcast %135 : f32 to vector<8x32xf32>
    %1172 = arith.mulf %1171, %1011 : vector<8x32xf32>
    %1173 = arith.addf %1170, %1172 : vector<8x32xf32>
    %1174 = vector.broadcast %143 : f32 to vector<8x32xf32>
    %1175 = arith.mulf %1174, %1018 : vector<8x32xf32>
    %1176 = arith.addf %1173, %1175 : vector<8x32xf32>
    %1177 = vector.broadcast %151 : f32 to vector<8x32xf32>
    %1178 = arith.addf %1176, %1177 : vector<8x32xf32>
    %c0_495 = arith.constant 0 : index
    %c5_496 = arith.constant 5 : index
    %c8_497 = arith.constant 8 : index
    %c32_498 = arith.constant 32 : index
    %1179 = vector.load %arg4[%c0_495, %c5_496, %c8_497, %c32_498] : memref<1x8x16x64xf32, #tpu.memory_space<vmem>>, vector<1x1x8x32xf32>
    %1180 = vector.shape_cast %1179 : vector<1x1x8x32xf32> to vector<8x32xf32>
    %1181 = vector.shape_cast %1178 : vector<8x32xf32> to vector<1x1x8x32xf32>
    tpu.vector_store %arg4[%c0_495, %c5_496, %c8_497, %c32_498], %1181 {strides = array<i32>} : memref<1x8x16x64xf32, #tpu.memory_space<vmem>>, vector<1x1x8x32xf32>,
    %1182 = vector.broadcast %80 : f32 to vector<8x32xf32>
    %1183 = arith.mulf %1182, %723 : vector<8x32xf32>
    %1184 = vector.broadcast %88 : f32 to vector<8x32xf32>
    %1185 = arith.mulf %1184, %730 : vector<8x32xf32>
    %1186 = arith.addf %1183, %1185 : vector<8x32xf32>
    %1187 = vector.broadcast %96 : f32 to vector<8x32xf32>
    %1188 = arith.mulf %1187, %737 : vector<8x32xf32>
    %1189 = arith.addf %1186, %1188 : vector<8x32xf32>
    %1190 = vector.broadcast %104 : f32 to vector<8x32xf32>
    %1191 = arith.mulf %1190, %744 : vector<8x32xf32>
    %1192 = arith.addf %1189, %1191 : vector<8x32xf32>
    %1193 = vector.broadcast %112 : f32 to vector<8x32xf32>
    %1194 = arith.mulf %1193, %751 : vector<8x32xf32>
    %1195 = arith.addf %1192, %1194 : vector<8x32xf32>
    %1196 = vector.broadcast %120 : f32 to vector<8x32xf32>
    %1197 = arith.mulf %1196, %758 : vector<8x32xf32>
    %1198 = arith.addf %1195, %1197 : vector<8x32xf32>
    %1199 = vector.broadcast %128 : f32 to vector<8x32xf32>
    %1200 = arith.mulf %1199, %1004 : vector<8x32xf32>
    %1201 = arith.addf %1198, %1200 : vector<8x32xf32>
    %1202 = vector.broadcast %136 : f32 to vector<8x32xf32>
    %1203 = arith.mulf %1202, %1011 : vector<8x32xf32>
    %1204 = arith.addf %1201, %1203 : vector<8x32xf32>
    %1205 = vector.broadcast %144 : f32 to vector<8x32xf32>
    %1206 = arith.mulf %1205, %1018 : vector<8x32xf32>
    %1207 = arith.addf %1204, %1206 : vector<8x32xf32>
    %1208 = vector.broadcast %152 : f32 to vector<8x32xf32>
    %1209 = arith.addf %1207, %1208 : vector<8x32xf32>
    %c0_499 = arith.constant 0 : index
    %c6_500 = arith.constant 6 : index
    %c8_501 = arith.constant 8 : index
    %c32_502 = arith.constant 32 : index
    %1210 = vector.load %arg4[%c0_499, %c6_500, %c8_501, %c32_502] : memref<1x8x16x64xf32, #tpu.memory_space<vmem>>, vector<1x1x8x32xf32>
    %1211 = vector.shape_cast %1210 : vector<1x1x8x32xf32> to vector<8x32xf32>
    %1212 = vector.shape_cast %1209 : vector<8x32xf32> to vector<1x1x8x32xf32>
    tpu.vector_store %arg4[%c0_499, %c6_500, %c8_501, %c32_502], %1212 {strides = array<i32>} : memref<1x8x16x64xf32, #tpu.memory_space<vmem>>, vector<1x1x8x32xf32>,
    %1213 = vector.broadcast %81 : f32 to vector<8x32xf32>
    %1214 = arith.mulf %1213, %723 : vector<8x32xf32>
    %1215 = vector.broadcast %89 : f32 to vector<8x32xf32>
    %1216 = arith.mulf %1215, %730 : vector<8x32xf32>
    %1217 = arith.addf %1214, %1216 : vector<8x32xf32>
    %1218 = vector.broadcast %97 : f32 to vector<8x32xf32>
    %1219 = arith.mulf %1218, %737 : vector<8x32xf32>
    %1220 = arith.addf %1217, %1219 : vector<8x32xf32>
    %1221 = vector.broadcast %105 : f32 to vector<8x32xf32>
    %1222 = arith.mulf %1221, %744 : vector<8x32xf32>
    %1223 = arith.addf %1220, %1222 : vector<8x32xf32>
    %1224 = vector.broadcast %113 : f32 to vector<8x32xf32>
    %1225 = arith.mulf %1224, %751 : vector<8x32xf32>
    %1226 = arith.addf %1223, %1225 : vector<8x32xf32>
    %1227 = vector.broadcast %121 : f32 to vector<8x32xf32>
    %1228 = arith.mulf %1227, %758 : vector<8x32xf32>
    %1229 = arith.addf %1226, %1228 : vector<8x32xf32>
    %1230 = vector.broadcast %129 : f32 to vector<8x32xf32>
    %1231 = arith.mulf %1230, %1004 : vector<8x32xf32>
    %1232 = arith.addf %1229, %1231 : vector<8x32xf32>
    %1233 = vector.broadcast %137 : f32 to vector<8x32xf32>
    %1234 = arith.mulf %1233, %1011 : vector<8x32xf32>
    %1235 = arith.addf %1232, %1234 : vector<8x32xf32>
    %1236 = vector.broadcast %145 : f32 to vector<8x32xf32>
    %1237 = arith.mulf %1236, %1018 : vector<8x32xf32>
    %1238 = arith.addf %1235, %1237 : vector<8x32xf32>
    %1239 = vector.broadcast %153 : f32 to vector<8x32xf32>
    %1240 = arith.addf %1238, %1239 : vector<8x32xf32>
    %c0_503 = arith.constant 0 : index
    %c7_504 = arith.constant 7 : index
    %c8_505 = arith.constant 8 : index
    %c32_506 = arith.constant 32 : index
    %1241 = vector.load %arg4[%c0_503, %c7_504, %c8_505, %c32_506] : memref<1x8x16x64xf32, #tpu.memory_space<vmem>>, vector<1x1x8x32xf32>
    %1242 = vector.shape_cast %1241 : vector<1x1x8x32xf32> to vector<8x32xf32>
    %1243 = vector.shape_cast %1240 : vector<8x32xf32> to vector<1x1x8x32xf32>
    tpu.vector_store %arg4[%c0_503, %c7_504, %c8_505, %c32_506], %1243 {strides = array<i32>} : memref<1x8x16x64xf32, #tpu.memory_space<vmem>>, vector<1x1x8x32xf32>,
    return
  }
  func.func @transform_0(%arg0: i32, %arg1: i32) -> (i32, i32, i32, i32) {
    %c0_i32 = arith.constant 0 : i32
    %c0_i32_0 = arith.constant 0 : i32
    %c0_i32_1 = arith.constant 0 : i32
    %c0_i32_2 = arith.constant 0 : i32
    return %arg0, %c0_i32, %c0_i32_0, %c0_i32_1 : i32, i32, i32, i32
  }
  func.func @transform_1(%arg0: i32, %arg1: i32) -> (i32, i32) {
    %c0_i32 = arith.constant 0 : i32
    %c0_i32_0 = arith.constant 0 : i32
    %c0_i32_1 = arith.constant 0 : i32
    return %c0_i32, %c0_i32_0 : i32, i32
  }
  func.func @transform_2(%arg0: i32, %arg1: i32) -> (i32, i32, i32, i32) {
    %c0_i32 = arith.constant 0 : i32
    %c0_i32_0 = arith.constant 0 : i32
    %c0_i32_1 = arith.constant 0 : i32
    return %arg0, %c0_i32, %arg1, %c0_i32_0 : i32, i32, i32, i32
  }
}

</mosaic_0001>

<bundles_post_ra>
// kernel: upsample_conv.1
= control target key start
LH: loop header
LB: loop body
LE: loop exit
PB: predicated region body
PF: predicated region fallthrough
CT: control target
= control target key end

     0   :  { %s4205_s0 = inlined_call_operand.vmem [shape: f32[2,2,18,34], index: 0, kind: input, shape index: {}]   ;;  %s4206_s1 = inlined_call_operand.vmem [shape: f32[19,8], index: 1, kind: input, shape index: {}]   ;;  %s4207_s2 = inlined_call_operand.vmem [shape: f32[2,8,16,64], index: 2, kind: output, shape index: {}]  }
   0x1   :  { %4429 = sst [smem:[#allocation123_spill]] %s4205_s0 }
   0x2   :  { %4430 = sst [smem:[#allocation124_spill]] %s4206_s1 }
   0x3   :  { %4431 = sst [smem:[#allocation125_spill]] %s4207_s2 }
   0x4   :  { %7 = vsyncpa [#allocation3], 0  ;;  %s2388_s9 = smov 0   ;;  %s2390_s10 = smov 0  }
   0x5   :  { %s2392_s11 = smov 0  }
   0x6 LB: > { %4432 = sst [smem:[#allocation5_spill]] %s2361_s10  ;;  %s2079_s12 = sadd.s32 4294967295, %s2365_s11   ;;  %s2365_s11 = sphi %s2392_s11, %s13_s11   ;;  %s2361_s10 = sphi %s2390_s10, %s4774_s10   ;;  %s2357_s9 = sphi %s2388_s9, %s4773_s9  }
   0x7   : > { %4433 = sst [smem:[#allocation6_spill]] %s2365_s11  ;;  %s25_s13 = sadd.s32 1, %s2361_s10 }
   0x8   : > { %p27_p0 = scmp.ge.s32.totalorder %s25_s13, 2  ;;  %p2081_p1 = scmp.ge.s32.totalorder %s2365_s11, 1 }
   0x9   : > { %p105_p2 = scmp.lt.s32.totalorder %s2365_s11, 3  ;;  %p2413_p4 = scmp.eq.s32.totalorder %s2079_s12, 0 }
   0xa   : > { %s4776_s13 = smov (%p27_p0, %s25_s13), 0  ;;  %s4437_s1 = sld [smem:[#allocation124_spill]] }
   0xb   : > { %4434 = sst [smem:[#allocation7_spill]] %s4776_s13  ;;  %p2409_p3 = pnand %p2081_p1, %p105_p2 }
   0xd   : > { %p2284_p5 = pneg %p2409_p3 }
   0xf   : > { %p2424_p6 = pnand %p2413_p4, %p2284_p5 }
  0x10   : > { %s117_s18 = sshll.u32 %s4437_s1, 4  ;;  %s118_s18 = int_to_ptr.vmem [resolvable:$true] %s117_s18 }
  0x11   : > { %s2324_s20 = scalar_lea.vmem %s118_s18, 384  ;;  %p2326_p8 = pneg %p2424_p6 }
  0x12   : > { %p2325_p7 = scmp.ne.s32.totalorder %s118_s18, %s2324_s20  ;;  %p2332_p11 = scmp.lt.s32.totalorder %s118_s18, %s118_s18 }
  0x13   : > { %p2333_p12 = scmp.lt.s32.totalorder %s2324_s20, %s2324_s20 }
  0x14   : > { %p2327_p9 = pnand %p2326_p8, %p2325_p7 }
  0x15   : > { %p2334_p13 = por %p2333_p12, %p2332_p11 }
  0x16   : > { %p2328_p10 = pneg %p2327_p9 }
  0x18   : > { %p2335_p0 = pnand %p2334_p13, %p2328_p10 }
  0x1a   : > { %2338 = shalt.err (!%p2335_p0)
}
  0x1b   : > { %s2367_s21 = smov [#allocation2]   ;;  %s2368_s22 = smov 128  }
  0x1c   : > { %s2369_s23 = smov 8   ;;  %141 = sbr.rel (%p2409_p3) target bundleno = 1374 (0x55e), region = 28 }
  0x1d   : > { %2287 = dma.vmem_to_smem (!%p2424_p6), %s118_s18, 384, %s2367_s21, [#allocation3], %s2368_s22, %s2368_s22, %s2369_s23  }
  0x23   : > { %2352 = dma.done.wait (%p2413_p4), [#allocation3], 384  }
  0x24   : > { %2354 = vsyncadd (%p2413_p4), [#allocation3], 4294966912 }
  0x25   : > { %147 = sfence }
  0x26   : > { %p168_p1 = scmp.lt.s32.totalorder %s2357_s9, 1  ;;  %s2439_s24 = sld [smem:[#allocation2 + $0x200]]  ;;  %vm397_vm0 = vcmask 261120   ;;  %vm835_vm1 = vcmask 523520  }
  0x27   : > { %s2441_s25 = sld [smem:[#allocation2 + $0x80]]  ;;  %s4442_s0 = sld [smem:[#allocation123_spill]] }
  0x28   : > { %s4778_s9 = smov (!%p168_p1, %s2357_s9), 1  ;;  %s2446_s26 = sld [smem:[#allocation2 + $0x280]] }
  0x29   : > { %s2279_s27 = smul.u32 48, %s4778_s9  ;;  %s2449_s28 = sld [smem:[#allocation2 + $0x100]] }
  0x2a   : > { %s2451_s29 = sld [smem:[#allocation2 + $0x400]]  ;;  %s2468_s6 = sld [smem:[#allocation2 + $0x101]] }
  0x2b   : > { %s2453_s30 = sld [smem:[#allocation2 + $0x380]]  ;;  %s2470_s7 = sld [smem:[#allocation2 + $0x81]] }
  0x2c   : > { %v361_v0 = vstv %s2439_s24  ;;  %s4259_s8 = smov 127   ;;  %s2493_s12 = sld [smem:[#allocation2 + $0x281]] }
  0x2d   : > { %s2458_s5 = scalar_lea.vmem %s4442_s0, %s2279_s27  ;;  %v342_v3 = vstv %s2441_s25  ;;  %s2495_s14 = sld [smem:[#allocation2 + $0x201]] }
  0x2e   : > { %4439 = sst [smem:[#allocation8_spill]] %s2446_s26  ;;  %v2462_v1 = vld [vmem:[%s2458_s5 + $0x1] sm:$0xff]  ;;  %v2465_v2 = vld [vmem:[%s2458_s5 + $0x18] sm:$0xff]  ;;  %v368_v6 = vstv %s2446_s26  ;;  %s4261_s15 = smov 126  }
  0x2f   : > { %4440 = sst [smem:[#allocation9_spill]] %s2449_s28  ;;  %v362_v4 = vmul.f32 %v2462_v1, %v361_v0  ;;  %v343_v5 = vmul.f32 %v2465_v2, %v342_v3  ;;  %v369_v7 = vmul.f32 %v2462_v1, %v368_v6  ;;  %v349_v8 = vstv %s2449_s28  ;;  %v2489_v10 = vld [vmem:[%s2458_s5 + $0x19] sm:$0xff]  ;;  %s2507_s16 = sld [smem:[#allocation2 + $0x401]] }
  0x30   : > { %4441 = sst [smem:[#allocation10_spill]] %s2451_s29  ;;  %v350_v9 = vmul.f32 %v2465_v2, %v349_v8  ;;  %v388_v11 = vstv %s2451_s29  ;;  %v408_v15 = vstv %s2468_s6  ;;  %s2509_s17 = sld [smem:[#allocation2 + $0x381]] }
  0x31   : > { %4443 = sst [smem:[#allocation11_spill]] %s2468_s6  ;;  %364 = vrot.lane.b32.xlu1 %v362_v4, %s4259_s8  ;;  %345 = vrot.lane.b32.xlu0 %v343_v5, %s4259_s8  ;;  %v381_v12 = vstv %s2453_s30  ;;  %v389_v13 = vmul.f32 %v2489_v10, %v388_v11  ;;  %v401_v16 = vstv %s2470_s7  ;;  %v409_v17 = vmul.f32 %v2465_v2, %v408_v15  ;;  %s2521_s18 = sld [smem:[#allocation2 + $0x102]] }
  0x32   : > { %4444 = sst [smem:[#allocation12_spill]] %s2493_s12  ;;  %v382_v14 = vmul.f32 %v2489_v10, %v381_v12  ;;  %v402_v18 = vmul.f32 %v2465_v2, %v401_v16  ;;  %v425_v19 = vstv %s2493_s12  ;;  %s2523_s19 = sld [smem:[#allocation2 + $0x82]] }
  0x33   : > { %v418_v20 = vstv %s2495_s14  ;;  %v426_v21 = vmul.f32 %v2462_v1, %v425_v19  ;;  %s2535_s20 = sld [smem:[#allocation2 + $0x282]]  ;;  %s2563_s27 = sld [smem:[#allocation2 + $0x103]] }
  0x34   : > { %v419_v22 = vmul.f32 %v2462_v1, %v418_v20  ;;  %s2537_s21 = sld [smem:[#allocation2 + $0x202]]  ;;  %s2565_s3 = sld [smem:[#allocation2 + $0x83]] }
  0x35   : > { %371 = vrot.lane.b32.xlu1 %v369_v7, %s4261_s15  ;;  %352 = vrot.lane.b32.xlu0 %v350_v9, %s4261_s15  ;;  %4445 = sst [smem:[#allocation13_spill]] %s2507_s16  ;;  %v4424_v23 = vstv %s2507_s16  ;;  %s2549_s22 = sld [smem:[#allocation2 + $0x402]] }
  0x36   : > { %v435_v24 = vstv %s2509_s17  ;;  %v443_v25 = vmul.f32 %v2489_v10, %v4424_v23  ;;  %s2551_s23 = sld [smem:[#allocation2 + $0x382]]  ;;  %s2577_s4 = sld [smem:[#allocation2 + $0x283]] }
  0x37   : > { %4446 = sst [smem:[#allocation14_spill]] %s2521_s18  ;;  %v436_v26 = vmul.f32 %v2489_v10, %v435_v24  ;;  %v4406_v27 = vstv %s2521_s18  ;;  %s2579_s0 = sld [smem:[#allocation2 + $0x203]] }
  0x38   : > { %v455_v28 = vstv %s2523_s19  ;;  %v463_v29 = vmul.f32 %v2465_v2, %v4406_v27  ;;  %s2591_s1 = sld [smem:[#allocation2 + $0x403]]  ;;  %s2605_s10 = sld [smem:[#allocation2 + $0x104]] }
  0x39   : > { %391 = vrot.lane.b32.xlu1 %v389_v13, %s4261_s15  ;;  %384 = vrot.lane.b32.xlu0 %v382_v14, %s4259_s8  ;;  %4447 = sst [smem:[#allocation15_spill]] %s2535_s20  ;;  %v456_v30 = vmul.f32 %v2465_v2, %v455_v28  ;;  %v4350_v31 = vstv %s2535_s20  ;;  %v4330_v39 = vstv %s2563_s27  ;;  %s2593_s13 = sld [smem:[#allocation2 + $0x383]] }
  0x3a   : > { %v472_v32 = vstv %s2537_s21  ;;  %4449 = sst [smem:[#allocation17_spill]] %s2563_s27  ;;  %v480_v33 = vmul.f32 %v2462_v1, %v4350_v31  ;;  %v509_v40 = vstv %s2565_s3  ;;  %v517_v41 = vmul.f32 %v2465_v2, %v4330_v39  ;;  %s2649_s18 = sld [smem:[#allocation2 + $0x85]] }
  0x3b   : > { %4448 = sst [smem:[#allocation16_spill]] %s2549_s22  ;;  %v473_v34 = vmul.f32 %v2462_v1, %v472_v32  ;;  %v4349_v35 = vstv %s2549_s22  ;;  %v510_v42 = vmul.f32 %v2465_v2, %v509_v40  ;;  %s2607_s11 = sld [smem:[#allocation2 + $0x84]] }
  0x3c   : > { %v489_v36 = vstv %s2551_s23  ;;  %4450 = sst [smem:[#allocation18_spill]] %s2577_s4  ;;  %v497_v37 = vmul.f32 %v2489_v10, %v4349_v35  ;;  %v4323_v43 = vstv %s2577_s4  ;;  %s2619_s27 = sld [smem:[#allocation2 + $0x284]] }
  0x3d   : > { %411 = vrot.lane.b32.xlu1 %v409_v17, %s4261_s15  ;;  %404 = vrot.lane.b32.xlu0 %v402_v18, %s4259_s8  ;;  %v490_v38 = vmul.f32 %v2489_v10, %v489_v36  ;;  %v526_v44 = vstv %s2579_s0  ;;  %v534_v45 = vmul.f32 %v2462_v1, %v4323_v43  ;;  %s2621_s22 = sld [smem:[#allocation2 + $0x204]]  ;;  %s2663_s16 = sld [smem:[#allocation2 + $0x205]] }
  0x3e   : > { %4451 = sst [smem:[#allocation19_spill]] %s2591_s1  ;;  %v527_v46 = vmul.f32 %v2462_v1, %v526_v44  ;;  %v4316_v47 = vstv %s2591_s1  ;;  %v4309_v51 = vstv %s2605_s10  ;;  %s2633_s4 = sld [smem:[#allocation2 + $0x404]] }
  0x3f   : > { %4452 = sst [smem:[#allocation20_spill]] %s2605_s10  ;;  %v543_v48 = vstv %s2593_s13  ;;  %v551_v49 = vmul.f32 %v2489_v10, %v4316_v47  ;;  %s2635_s20 = sld [smem:[#allocation2 + $0x384]]  ;;  %v571_v53 = vmul.f32 %v2465_v2, %v4309_v51 }
  0x40   : > { %v544_v50 = vmul.f32 %v2489_v10, %v543_v48  ;;  %s2647_s1 = sld [smem:[#allocation2 + $0x105]]  ;;  %4456 = sst [smem:[#allocation24_spill]] %s2649_s18  ;;  %v617_v4 = vstv %s2649_s18 }
  0x41   : > { %428 = vrot.lane.b32.xlu1 %v426_v21, %s4261_s15  ;;  %421 = vrot.lane.b32.xlu0 %v419_v22, %s4259_s8  ;;  %v563_v52 = vstv %s2607_s11  ;;  %s2661_s10 = sld [smem:[#allocation2 + $0x285]]  ;;  %v618_v7 = vmul.f32 %v2465_v2, %v617_v4  ;;  %s2691_s6 = sld [smem:[#allocation2 + $0x86]] }
  0x42   : > { %4453 = sst [smem:[#allocation21_spill]] %s2619_s27  ;;  %v564_v54 = vmul.f32 %v2465_v2, %v563_v52  ;;  %v4303_v55 = vstv %s2619_s27  ;;  %s2675_s27 = sld [smem:[#allocation2 + $0x405]] }
  0x43   : > { %v580_v56 = vstv %s2621_s22  ;;  %v588_v57 = vmul.f32 %v2462_v1, %v4303_v55  ;;  %4458 = sst [smem:[#allocation26_spill]] %s2663_s16  ;;  %v634_v13 = vstv %s2663_s16  ;;  %s2705_s29 = sld [smem:[#allocation2 + $0x206]] }
  0x44   : > { %4454 = sst [smem:[#allocation22_spill]] %s2633_s4  ;;  %v581_v58 = vmul.f32 %v2462_v1, %v580_v56  ;;  %v4291_v59 = vstv %s2633_s4  ;;  %s2677_s12 = sld [smem:[#allocation2 + $0x385]]  ;;  %v635_v17 = vmul.f32 %v2462_v1, %v634_v13 }
  0x45   : > { %445 = vrot.lane.b32.xlu1 %v443_v25, %s4261_s15  ;;  %438 = vrot.lane.b32.xlu0 %v436_v26, %s4259_s8  ;;  %v597_v60 = vstv %s2635_s20  ;;  %v605_v61 = vmul.f32 %v2489_v10, %v4291_v59  ;;  %s2689_s4 = sld [smem:[#allocation2 + $0x106]]  ;;  %s2733_s28 = sld [smem:[#allocation2 + $0x87]] }
  0x46   : > { %4455 = sst [smem:[#allocation23_spill]] %s2647_s1  ;;  %v598_v62 = vmul.f32 %v2489_v10, %v597_v60  ;;  %v4289_v63 = vstv %s2647_s1  ;;  %s2703_s1 = sld [smem:[#allocation2 + $0x286]] }
  0x47   : > { %4457 = sst [smem:[#allocation25_spill]] %s2661_s10  ;;  %v625_v5 = vmul.f32 %v2465_v2, %v4289_v63  ;;  %v4279_v9 = vstv %s2661_s10  ;;  %s2717_s10 = sld [smem:[#allocation2 + $0x406]] }
  0x48   : > { %4459 = sst [smem:[#allocation27_spill]] %s2675_s27  ;;  %v642_v14 = vmul.f32 %v2462_v1, %v4279_v9  ;;  %v4272_v18 = vstv %s2675_s27  ;;  %s2731_s27 = sld [smem:[#allocation2 + $0x107]] }
  0x49   : > { %465 = vrot.lane.b32.xlu1 %v463_v29, %s4261_s15  ;;  %458 = vrot.lane.b32.xlu0 %v456_v30, %s4259_s8  ;;  %4462 = sst [smem:[#allocation30_spill]] %s2691_s6  ;;  %v659_v22 = vmul.f32 %v2489_v10, %v4272_v18  ;;  %v671_v29 = vstv %s2691_s6  ;;  %s2719_s26 = sld [smem:[#allocation2 + $0x386]] }
  0x4a   : > { %4460 = sst [smem:[#allocation28_spill]] %s2677_s12  ;;  %v651_v21 = vstv %s2677_s12  ;;  %s2850_s12 = sld [smem:[#allocation2]] }
  0x4b   : > { %4461 = sst [smem:[#allocation29_spill]] %s2689_s4  ;;  %v652_v25 = vmul.f32 %v2489_v10, %v651_v21  ;;  %v4304_v26 = vstv %s2689_s4  ;;  %s2745_s4 = sld [smem:[#allocation2 + $0x287]] }
  0x4c   : > { %4463 = sst [smem:[#allocation31_spill]] %s2703_s1  ;;  %v679_v30 = vmul.f32 %v2465_v2, %v4304_v26  ;;  %s2747_s6 = sld [smem:[#allocation2 + $0x207]] }
  0x4d   : > { %482 = vrot.lane.b32.xlu1 %v480_v33, %s4261_s15  ;;  %475 = vrot.lane.b32.xlu0 %v473_v34, %s4259_s8  ;;  %4464 = sst [smem:[#allocation32_spill]] %s2705_s29  ;;  %v672_v33 = vmul.f32 %v2465_v2, %v671_v29  ;;  %v4290_v34 = vstv %s2703_s1  ;;  %s2759_s1 = sld [smem:[#allocation2 + $0x407]] }
  0x4e   : > { %4465 = sst [smem:[#allocation33_spill]] %s2717_s10  ;;  %s2866_s16 = sld [smem:[#allocation2 + $0x180]] }
  0x4f   : > { %4466 = sst [smem:[#allocation34_spill]] %s2719_s26  ;;  %s2920_s18 = sld [smem:[#allocation2 + $0x583]] }
  0x50   : > { %4467 = sst [smem:[#allocation35_spill]] %s2731_s27  ;;  %s4501_s2 = sld [smem:[#allocation125_spill]] }
  0x51   : > { %499 = vrot.lane.b32.xlu1 %v497_v37, %s4261_s15  ;;  %492 = vrot.lane.b32.xlu0 %v490_v38, %s4259_s8  ;;  %v4298_v37 = vstv %s2705_s29  ;;  %4468 = sst [smem:[#allocation36_spill]] %s2733_s28  ;;  %v696_v38 = vmul.f32 %v2462_v1, %v4290_v34  ;;  %s4580_s25 = sld [smem:[#allocation15_spill]] }
  0x52   : > { %4469 = sst [smem:[#allocation37_spill]] %s2745_s4  ;;  %s2761_s29 = sld [smem:[#allocation2 + $0x387]] }
  0x53   : > { %4470 = sst [smem:[#allocation38_spill]] %s2747_s6  ;;  %s3582_s11 = sld [smem:[#allocation2 + $0x487]] }
  0x54   : > { %4471 = sst [smem:[#allocation39_spill]] %s2759_s1  ;;  %s3589_s13 = sld [smem:[#allocation2 + $0x607]] }
  0x55   : > { %519 = vrot.lane.b32.xlu1 %v517_v41, %s4261_s15  ;;  %512 = vrot.lane.b32.xlu0 %v510_v42, %s4259_s8  ;;  %v689_v41 = vmul.f32 %v2462_v1, %v4298_v37  ;;  %v4276_v42 = vstv %s2717_s10  ;;  %s2773_s10 = sld [smem:[#allocation2 + $0x580]]  ;;  %4488 = sst [smem:[#allocation56_spill]] %s2866_s16 }
  0x56   : > { %4485 = sst [smem:[#allocation53_spill]] %s2850_s12  ;;  %s4587_s7 = sld [smem:[#allocation17_spill]] }
  0x57   : > { %s4591_s0 = sld [smem:[#allocation18_spill]]  ;;  %s4595_s17 = sld [smem:[#allocation19_spill]] }
  0x58   : > { %4472 = sst [smem:[#allocation40_spill]] %s2761_s29  ;;  %s4606_s20 = sld [smem:[#allocation22_spill]] }
  0x59   : > { %536 = vrot.lane.b32.xlu1 %v534_v45, %s4261_s15  ;;  %529 = vrot.lane.b32.xlu0 %v527_v46, %s4259_s8  ;;  %v4280_v45 = vstv %s2719_s26  ;;  %v713_v46 = vmul.f32 %v2489_v10, %v4276_v42  ;;  %s2775_s26 = sld [smem:[#allocation2 + $0x500]]  ;;  %s4604_s19 = sld [smem:[#allocation32_spill]] }
  0x5a   : > { %s4609_s21 = sld [smem:[#allocation23_spill]]  ;;  %s4611_s22 = sld [smem:[#allocation34_spill]] }
  0x5b   : > { %4473 = sst [smem:[#allocation41_spill]] %s2773_s10 }
  0x5c   : > { %s4615_s23 = sld [smem:[#allocation33_spill]] }
  0x5d   : > { %553 = vrot.lane.b32.xlu1 %v551_v49, %s4261_s15  ;;  %546 = vrot.lane.b32.xlu0 %v544_v50, %s4259_s8  ;;  %v706_v49 = vmul.f32 %v2489_v10, %v4280_v45  ;;  %v4254_v50 = vstv %s2731_s27  ;;  %s2787_s27 = sld [smem:[#allocation2 + $0x700]] }
  0x5f   : > { %4474 = sst [smem:[#allocation42_spill]] %s2775_s26 }
  0x61   : > { %573 = vrot.lane.b32.xlu1 %v571_v53, %s4261_s15  ;;  %566 = vrot.lane.b32.xlu0 %v564_v54, %s4259_s8  ;;  %v4257_v53 = vstv %s2733_s28  ;;  %v733_v54 = vmul.f32 %v2465_v2, %v4254_v50  ;;  %s2789_s28 = sld [smem:[#allocation2 + $0x680]]  ;;  %v4268_v50 = vstv %s2850_s12  ;;  %s2913_s12 = sld [smem:[#allocation2 + $0x181]] }
  0x63   : > { %4475 = sst [smem:[#allocation43_spill]] %s2787_s27 }
  0x65   : > { %590 = vrot.lane.b32.xlu1 %v588_v57, %s4261_s15  ;;  %583 = vrot.lane.b32.xlu0 %v581_v58, %s4259_s8  ;;  %v726_v57 = vmul.f32 %v2465_v2, %v4257_v53  ;;  %v4250_v58 = vstv %s2745_s4  ;;  %s2801_s4 = sld [smem:[#allocation2 + $0x880]]  ;;  %v341_v53 = vmul.f32 %v2465_v2, %v4268_v50 }
  0x67   : > { %4476 = sst [smem:[#allocation44_spill]] %s2789_s28 }
  0x68   : > { %4497 = sst [smem:[#allocation63_spill]] %s2913_s12 }
  0x69   : > { %607 = vrot.lane.b32.xlu1 %v605_v61, %s4261_s15  ;;  %600 = vrot.lane.b32.xlu0 %v598_v62, %s4259_s8  ;;  %v4251_v61 = vstv %s2747_s6  ;;  %v750_v62 = vmul.f32 %v2462_v1, %v4250_v58  ;;  %s2803_s6 = sld [smem:[#allocation2 + $0x800]] }
  0x6b   : > { %4477 = sst [smem:[#allocation45_spill]] %s2801_s4 }
  0x6d   : > { %627 = vrot.lane.b32.xlu1 %v625_v5, %s4261_s15  ;;  %620 = vrot.lane.b32.xlu0 %v618_v7, %s4259_s8  ;;  %v743_v5 = vmul.f32 %v2462_v1, %v4251_v61  ;;  %v4245_v7 = vstv %s2759_s1  ;;  %s2815_s1 = sld [smem:[#allocation2 + $0x501]] }
  0x6f   : > { %4478 = sst [smem:[#allocation46_spill]] %s2803_s6 }
  0x71   : > { %644 = vrot.lane.b32.xlu1 %v642_v14, %s4261_s15  ;;  %637 = vrot.lane.b32.xlu0 %v635_v17, %s4259_s8  ;;  %v4246_v14 = vstv %s2761_s29  ;;  %v767_v17 = vmul.f32 %v2489_v10, %v4245_v7  ;;  %s2817_s29 = sld [smem:[#allocation2 + $0x581]] }
  0x73   : > { %4479 = sst [smem:[#allocation47_spill]] %s2815_s1 }
  0x75   : > { %661 = vrot.lane.b32.xlu1 %v659_v22, %s4261_s15  ;;  %654 = vrot.lane.b32.xlu0 %v652_v25, %s4259_s8  ;;  %v760_v22 = vmul.f32 %v2489_v10, %v4246_v14  ;;  %v4270_v25 = vstv %s2773_s10  ;;  %s2832_s10 = sld [smem:[#allocation2 + $0x701]] }
  0x77   : > { %4480 = sst [smem:[#allocation48_spill]] %s2817_s29 }
  0x79   : > { %681 = vrot.lane.b32.xlu1 %v679_v30, %s4261_s15  ;;  %674 = vrot.lane.b32.xlu0 %v672_v33, %s4259_s8  ;;  %v4271_v30 = vstv %s2775_s26  ;;  %v787_v33 = vmul.f32 %v2462_v1, %v4270_v25  ;;  %s2834_s26 = sld [smem:[#allocation2 + $0x681]] }
  0x7b   : > { %4481 = sst [smem:[#allocation49_spill]] %s2832_s10  ;;  %v863_v7 = vstv %s2832_s10  ;;  %s2891_s10 = sld [smem:[#allocation2 + $0x300]] }
  0x7d   : > { %698 = vrot.lane.b32.xlu1 %v696_v38, %s4261_s15  ;;  %691 = vrot.lane.b32.xlu0 %v689_v41, %s4259_s8  ;;  %v780_v38 = vmul.f32 %v2462_v1, %v4271_v30  ;;  %v4264_v41 = vstv %s2787_s27  ;;  %s2846_s27 = sld [smem:[#allocation2 + $0x881]] }
  0x7f   : > { %4482 = sst [smem:[#allocation50_spill]] %s2834_s26  ;;  %v856_v14 = vstv %s2834_s26  ;;  %s2893_s26 = sld [smem:[#allocation2 + $0x1]] }
  0x81   : > { %715 = vrot.lane.b32.xlu1 %v713_v46, %s4261_s15  ;;  %708 = vrot.lane.b32.xlu0 %v706_v49, %s4259_s8  ;;  %v4267_v46 = vstv %s2789_s28  ;;  %v804_v49 = vmul.f32 %v2489_v10, %v4264_v41  ;;  %s2848_s28 = sld [smem:[#allocation2 + $0x801]]  ;;  %4491 = sst [smem:[#allocation59_spill]] %s2891_s10  ;;  %v4277_v41 = vstv %s2866_s16 }
  0x82   : > { %v359_v30 = vmul.f32 %v2462_v1, %v4277_v41  ;;  %s2936_s16 = sld [smem:[#allocation2 + $0x683]] }
  0x83   : > { %4483 = sst [smem:[#allocation51_spill]] %s2846_s27  ;;  %v4348_v58 = vstv %s2846_s27  ;;  %s4495_s27 = smov 126  }
  0x84   : > { %s4585_s30 = sld [smem:[#allocation51_spill]] }
  0x85   : > { %735 = vrot.lane.b32.xlu1 %v733_v54, %s4261_s15  ;;  %728 = vrot.lane.b32.xlu0 %v726_v57, %s4259_s8  ;;  %v797_v54 = vmul.f32 %v2489_v10, %v4267_v46  ;;  %v2828_v57 = vld [vmem:[%s2458_s5 + $0x2] sm:$0xff]  ;;  %4492 = sst [smem:[#allocation60_spill]] %s2893_s26  ;;  %v4288_v41 = vstv %s2893_s26  ;;  %s3000_s26 = sld [smem:[#allocation2 + $0x3]] }
  0x87   : > { %4484 = sst [smem:[#allocation52_spill]] %s2848_s28  ;;  %v4426_v61 = vstv %s2848_s28  ;;  %s4496_s28 = smov 127  }
  0x88   : > { %s4575_s3 = sld [smem:[#allocation52_spill]] }
  0x89   : > { %752 = vrot.lane.b32.xlu1 %v750_v62, %s4261_s15  ;;  %745 = vrot.lane.b32.xlu0 %v743_v5, %s4259_s8  ;;  %v4258_v62 = vstv %s2801_s4  ;;  %v4263_v5 = vstv %s2803_s6  ;;  %s2862_s4 = sld [smem:[#allocation2 + $0x502]] }
  0x8a   : > { %s2864_s6 = sld [smem:[#allocation2 + $0x582]] }
  0x8b   : > { %4503 = sst [smem:[#allocation68_spill]] %s3000_s26 }
  0x8d   : > { %769 = vrot.lane.b32.xlu1 %v767_v17, %s4261_s15  ;;  %762 = vrot.lane.b32.xlu0 %v760_v22, %s4259_s8  ;;  %v824_v17 = vmul.f32 %v2828_v57, %v4258_v62  ;;  %v817_v22 = vmul.f32 %v2828_v57, %v4263_v5 }
  0x8f   : > { %4486 = sst [smem:[#allocation54_spill]] %s2862_s4 }
  0x90   : > { %4487 = sst [smem:[#allocation55_spill]] %s2864_s6  ;;  %v4278_v62 = vstv %s2864_s6  ;;  %s2232_s6 = sld [smem:[#allocation2 + $0x900]] }
  0x91   : > { %789 = vrot.lane.b32.xlu1 %v787_v33, %s4261_s15  ;;  %782 = vrot.lane.b32.xlu0 %v780_v38, %s4259_s8  ;;  %v839_v33 = vstv %s2815_s1  ;;  %v846_v38 = vstv %s2817_s29  ;;  %s2878_s29 = sld [smem:[#allocation2 + $0x682]]  ;;  %v903_v50 = vmul.f32 %v2462_v1, %v4278_v62 }
  0x92   : > { %s2880_s1 = sld [smem:[#allocation2 + $0x702]] }
  0x95   : > { %806 = vrot.lane.b32.xlu1 %v804_v49, %s4261_s15  ;;  %799 = vrot.lane.b32.xlu0 %v797_v54, %s4259_s8  ;;  %v840_v49 = vmul.f32 %v2462_v1, %v839_v33  ;;  %v847_v54 = vmul.f32 %v2462_v1, %v846_v38 }
  0x97   : > { %4489 = sst [smem:[#allocation57_spill]] %s2878_s29 }
  0x98   : > { %4490 = sst [smem:[#allocation58_spill]] %s2880_s1  ;;  %v4285_v18 = vstv %s2880_s1  ;;  %s2955_s1 = sld [smem:[#allocation2 + $0x2]] }
  0x99   : > { %826 = vrot.lane.b32.xlu1 %v824_v17, %s4261_s15  ;;  %819 = vrot.lane.b32.xlu0 %v817_v22, %s4259_s8  ;;  %v864_v17 = vmul.f32 %v2489_v10, %v863_v7  ;;  %v857_v22 = vmul.f32 %v2489_v10, %v856_v14  ;;  %v920_v62 = vmul.f32 %v2489_v10, %v4285_v18 }
  0x9a   : > { %v400_v18 = vmul.f32 %v2465_v2, %v4288_v41 }
  0x9d   : > { %842 = vrot.lane.b32.xlu1 %v840_v49, %s4259_s8  ;;  %849 = vrot.lane.b32.xlu0 %v847_v54, %s4261_s15  ;;  %v881_v49 = vmul.f32 %v2828_v57, %v4348_v58  ;;  %v874_v54 = vmul.f32 %v2828_v57, %v4426_v61 }
  0x9e   : > { %4499 = sst [smem:[#allocation65_spill]] %s2955_s1  ;;  %v4302_v37 = vstv %s2955_s1  ;;  %s3181_s1 = sld [smem:[#allocation2 + $0x803]] }
  0xa1   : > { %866 = vrot.lane.b32.xlu0 %v864_v17, %s4261_s15  ;;  %859 = vrot.lane.b32.xlu1 %v857_v22, %s4259_s8  ;;  %v4275_v17 = vstv %s2862_s4  ;;  %s2900_s8 = sld [smem:[#allocation2 + $0x802]]  ;;  %s2922_s4 = sld [smem:[#allocation2 + $0x503]] }
  0xa2   : > { %s2902_s15 = sld [smem:[#allocation2 + $0x882]]  ;;  %v896_v46 = vmul.f32 %v2462_v1, %v4275_v17 }
  0xa3   : > { %v365_v22 = vpop.permute.xlu1 %364  ;;  %v346_v5 = vpop.permute.xlu0 %345 }
  0xa4   : > { %v348_v25 = vadd.f32 %v346_v5, %v341_v53  ;;  %v4287_v53 = vstv %s2891_s10  ;;  %s2992_s10 = sld [smem:[#allocation2 + $0x302]]  ;;  %4527 = sst [smem:[#allocation92_spill]] %s3181_s1 }
  0xa5   : > { %883 = vrot.lane.b32.xlu0 %v881_v49, %s4495_s27  ;;  %876 = vrot.lane.b32.xlu1 %v874_v54, %s4496_s28  ;;  %v4284_v49 = vstv %s2878_s29  ;;  %s2938_s29 = sld [smem:[#allocation2 + $0x301]] }
  0xa6   : > { %v913_v5 = vmul.f32 %v2489_v10, %v4284_v49  ;;  %v379_v49 = vmul.f32 %v2489_v10, %v4287_v53  ;;  %v958_v53 = vstv %s2920_s18  ;;  %s4602_s18 = sld [smem:[#allocation21_spill]] }
  0xa7   : > { %4493 = sst [smem:[#allocation61_spill]] %s2900_s8  ;;  %v372_v54 = vpop.permute.xlu1 %371  ;;  %v353_v17 = vpop.permute.xlu0 %352  ;;  %v4295_v45 = vstv %s2900_s8  ;;  %v951_v41 = vstv %s2922_s4  ;;  %s2278_s8 = sshll.u32 %s4778_s9, 7 }
  0xa8   : > { %4494 = sst [smem:[#allocation62_spill]] %s2902_s15  ;;  %v355_v42 = vadd.f32 %v353_v17, %v348_v25  ;;  %v4293_v25 = vstv %s2902_s15  ;;  %s2964_s15 = sld [smem:[#allocation2 + $0x182]] }
  0xa9   : > { %898 = vrot.lane.b32.xlu0 %v896_v46, %s4496_s28  ;;  %905 = vrot.lane.b32.xlu1 %v903_v50, %s4495_s27  ;;  %s2234_s9 = sld [smem:[#allocation2 + $0x902]]  ;;  %s4576_s4 = sld [smem:[#allocation13_spill]] }
  0xaa   : > { %v360_v9 = vadd.f32 %v359_v30, %v355_v42  ;;  %v4296_v42 = vstv %s2913_s12  ;;  %v930_v30 = vmul.f32 %v2828_v57, %v4295_v45  ;;  %s2233_s12 = sld [smem:[#allocation2 + $0x901]]  ;;  %4502 = sst [smem:[#allocation67_spill]] %s2992_s10 }
  0xab   : > { %v392_v46 = vpop.permute.xlu1 %391  ;;  %v385_v50 = vpop.permute.xlu0 %384  ;;  %4498 = sst [smem:[#allocation64_spill]] %s2938_s29  ;;  %v416_v59 = vmul.f32 %v2462_v1, %v4296_v42  ;;  %v4301_v45 = vstv %s2938_s29  ;;  %s3224_s29 = sld [smem:[#allocation2 + $0x804]] }
  0xac   : > { %v367_v17 = vadd.f32 %v365_v22, %v360_v9  ;;  %v937_v9 = vmul.f32 %v2828_v57, %v4293_v25 }
  0xad   : > { %915 = vrot.lane.b32.xlu0 %v913_v5, %s4496_s28  ;;  %922 = vrot.lane.b32.xlu1 %v920_v62, %s4495_s27 }
  0xae   : > { %v374_v22 = vadd.f32 %v372_v54, %v367_v17  ;;  %4500 = sst [smem:[#allocation66_spill]] %s2964_s15  ;;  %v959_v54 = vmul.f32 %v2462_v1, %v958_v53  ;;  %v952_v17 = vmul.f32 %v2462_v1, %v951_v41 }
  0xaf   : > { %v412_v63 = vpop.permute.xlu1 %411  ;;  %v405_v5 = vpop.permute.xlu0 %404 }
  0xb0   : > { %v380_v62 = vadd.f32 %v379_v49, %v374_v22  ;;  %v407_v34 = vadd.f32 %v405_v5, %v400_v18  ;;  %v968_v18 = vstv %s2936_s16  ;;  %v2974_v22 = vstv %s2232_s6  ;;  %s2986_s6 = scalar_lea.vmem %s4501_s2, %s2278_s8  ;;  %s3008_s8 = sld [smem:[#allocation2 + $0x183]] }
  0xb1   : > { %932 = vrot.lane.b32.xlu0 %v930_v30, %s4496_s28  ;;  %939 = vrot.lane.b32.xlu1 %v937_v9, %s4495_s27  ;;  %s3024_s2 = sld [smem:[#allocation2 + $0x4]]  ;;  %s4607_s16 = sld [smem:[#allocation31_spill]] }
  0xb2   : > { %v387_v25 = vadd.f32 %v385_v50, %v380_v62  ;;  %v414_v49 = vadd.f32 %v412_v63, %v407_v34  ;;  %v969_v63 = vmul.f32 %v2489_v10, %v968_v18  ;;  %4533 = sst [smem:[#allocation97_spill]] %s3224_s29 }
  0xb3   : > { %v429_v30 = vpop.permute.xlu1 %428  ;;  %v422_v5 = vpop.permute.xlu0 %421 }
  0xb4   : > { %v394_v9 = vadd.f32 %v392_v46, %v387_v25  ;;  %v417_v42 = vadd.f32 %v416_v59, %v414_v49  ;;  %v433_v25 = vmul.f32 %v2489_v10, %v4301_v45 }
  0xb5   : > { %961 = vrot.lane.b32.xlu0 %v959_v54, %s4495_s27  ;;  %954 = vrot.lane.b32.xlu1 %v952_v17, %s4496_s28  ;;  %v454_v54 = vmul.f32 %v2465_v2, %v4302_v37  ;;  %v4308_v17 = vstv %s2964_s15  ;;  %s3179_s15 = sld [smem:[#allocation2 + $0x782]] }
  0xb6   : > { %v396_v34 = vadd.f32 %v2974_v22, %v394_v9  ;;  %v424_v59 = vadd.f32 %v422_v5, %v417_v42  ;;  %4504 = sst [smem:[#allocation69_spill]] %s3008_s8 }
  0xb7   : > { %v446_v46 = vpop.permute.xlu1 %445  ;;  %v439_v50 = vpop.permute.xlu0 %438  ;;  %4506 = sst [smem:[#allocation71_spill]] %s3024_s2 }
  0xb8   : > { %v431_v62 = vadd.f32 %v429_v30, %v424_v59  ;;  %398 = vst.msk [vmem:[%s2986_s6] sm:$0xff] %vm397_vm0, %v396_v34  ;;  %v470_v30 = vmul.f32 %v2462_v1, %v4308_v17  ;;  %v3006_v59 = vstv %s2233_s12  ;;  %s3018_s12 = sld [smem:[#allocation2 + $0x303]] }
  0xb9   : > { %971 = vrot.lane.b32.xlu1 %v969_v63, %s4496_s28 }
  0xba   : > { %v434_v42 = vadd.f32 %v433_v25, %v431_v62  ;;  %v4305_v62 = vstv %s2992_s10  ;;  %s2235_s10 = sld [smem:[#allocation2 + $0x903]] }
  0xbb   : > { %v466_v49 = vpop.permute.xlu1 %465  ;;  %v459_v5 = vpop.permute.xlu0 %458  ;;  %4526 = sst [smem:[#allocation91_spill]] %s3179_s15 }
  0xbc   : > { %v441_v9 = vadd.f32 %v439_v50, %v434_v42  ;;  %v461_v45 = vadd.f32 %v459_v5, %v454_v54  ;;  %v4307_v50 = vstv %s3000_s26  ;;  %v487_v42 = vmul.f32 %v2489_v10, %v4305_v62  ;;  %s3031_s26 = sld [smem:[#allocation2 + $0x184]] }
  0xbd   : > { %v3029_v62 = vstv %s2234_s9  ;;  %s3041_s9 = sld [smem:[#allocation2 + $0x304]] }
  0xbe   : > { %v448_v34 = vadd.f32 %v446_v46, %v441_v9  ;;  %v468_v37 = vadd.f32 %v466_v49, %v461_v45  ;;  %4505 = sst [smem:[#allocation70_spill]] %s3018_s12  ;;  %v508_v49 = vmul.f32 %v2465_v2, %v4307_v50  ;;  %v4315_v9 = vstv %s3008_s8  ;;  %s3047_s8 = sld [smem:[#allocation2 + $0x5]] }
  0xbf   : > { %v483_v63 = vpop.permute.xlu1 %482  ;;  %v476_v25 = vpop.permute.xlu0 %475 }
  0xc0   : > { %v450_v55 = vadd.f32 %v3006_v59, %v448_v34  ;;  %v471_v26 = vadd.f32 %v470_v30, %v468_v37 }
  0xc2   : > { %v478_v54 = vadd.f32 %v476_v25, %v471_v26  ;;  %2243 = vst.msk [vmem:[%s2986_s6 + $0x10] sm:$0xff] %vm397_vm0, %v450_v55  ;;  %v524_v25 = vmul.f32 %v2462_v1, %v4315_v9  ;;  %4507 = sst [smem:[#allocation72_spill]] %s3031_s26 }
  0xc3   : > { %v500_v5 = vpop.permute.xlu1 %499  ;;  %v493_v46 = vpop.permute.xlu0 %492  ;;  %4508 = sst [smem:[#allocation73_spill]] %s3041_s9 }
  0xc4   : > { %v485_v45 = vadd.f32 %v483_v63, %v478_v54  ;;  %4509 = sst [smem:[#allocation74_spill]] %s3047_s8 }
  0xc6   : > { %v488_v37 = vadd.f32 %v487_v42, %v485_v45  ;;  %v4312_v45 = vstv %s3018_s12  ;;  %s2236_s12 = sld [smem:[#allocation2 + $0x904]] }
  0xc7   : > { %v520_v26 = vpop.permute.xlu1 %519  ;;  %v513_v30 = vpop.permute.xlu0 %512 }
  0xc8   : > { %v495_v34 = vadd.f32 %v493_v46, %v488_v37  ;;  %v515_v55 = vadd.f32 %v513_v30, %v508_v49  ;;  %v4314_v46 = vstv %s3024_s2  ;;  %v541_v37 = vmul.f32 %v2489_v10, %v4312_v45  ;;  %s3054_s2 = sld [smem:[#allocation2 + $0x185]] }
  0xc9   : > { %v3052_v45 = vstv %s2235_s10  ;;  %s3064_s10 = sld [smem:[#allocation2 + $0x305]] }
  0xca   : > { %v502_v63 = vadd.f32 %v500_v5, %v495_v34  ;;  %v522_v54 = vadd.f32 %v520_v26, %v515_v55  ;;  %v562_v34 = vmul.f32 %v2465_v2, %v4314_v46  ;;  %v4322_v55 = vstv %s3031_s26  ;;  %s3070_s26 = sld [smem:[#allocation2 + $0x6]] }
  0xcb   : > { %v537_v50 = vpop.permute.xlu1 %536  ;;  %v530_v42 = vpop.permute.xlu0 %529 }
  0xcc   : > { %v504_v17 = vadd.f32 %v3029_v62, %v502_v63  ;;  %v525_v51 = vadd.f32 %v524_v25, %v522_v54 }
  0xce   : > { %v532_v49 = vadd.f32 %v530_v42, %v525_v51  ;;  %2244 = vst.msk [vmem:[%s2986_s6 + $0x20] sm:$0xff] %vm397_vm0, %v504_v17  ;;  %v578_v42 = vmul.f32 %v2462_v1, %v4322_v55  ;;  %4510 = sst [smem:[#allocation75_spill]] %s3054_s2 }
  0xcf   : > { %v554_v30 = vpop.permute.xlu1 %553  ;;  %v547_v5 = vpop.permute.xlu0 %546  ;;  %4511 = sst [smem:[#allocation76_spill]] %s3064_s10 }
  0xd0   : > { %v539_v26 = vadd.f32 %v537_v50, %v532_v49  ;;  %4512 = sst [smem:[#allocation77_spill]] %s3070_s26 }
  0xd2   : > { %v542_v25 = vadd.f32 %v541_v37, %v539_v26  ;;  %v4319_v26 = vstv %s3041_s9  ;;  %s2237_s9 = sld [smem:[#allocation2 + $0x905]] }
  0xd3   : > { %v574_v51 = vpop.permute.xlu1 %573  ;;  %v567_v63 = vpop.permute.xlu0 %566 }
  0xd4   : > { %v549_v54 = vadd.f32 %v547_v5, %v542_v25  ;;  %v569_v17 = vadd.f32 %v567_v63, %v562_v34  ;;  %v4321_v5 = vstv %s3047_s8  ;;  %v595_v25 = vmul.f32 %v2489_v10, %v4319_v26  ;;  %s3077_s8 = sld [smem:[#allocation2 + $0x186]] }
  0xd5   : > { %v3075_v26 = vstv %s2236_s12  ;;  %s3087_s12 = sld [smem:[#allocation2 + $0x306]] }
  0xd6   : > { %v556_v50 = vadd.f32 %v554_v30, %v549_v54  ;;  %v576_v49 = vadd.f32 %v574_v51, %v569_v17  ;;  %v616_v54 = vmul.f32 %v2465_v2, %v4321_v5  ;;  %v4328_v17 = vstv %s3054_s2  ;;  %s3093_s2 = sld [smem:[#allocation2 + $0x7]] }
  0xd7   : > { %v591_v46 = vpop.permute.xlu1 %590  ;;  %v584_v37 = vpop.permute.xlu0 %583 }
  0xd8   : > { %v558_v9 = vadd.f32 %v3052_v45, %v556_v50  ;;  %v579_v47 = vadd.f32 %v578_v42, %v576_v49 }
  0xda   : > { %v586_v34 = vadd.f32 %v584_v37, %v579_v47  ;;  %2245 = vst.msk [vmem:[%s2986_s6 + $0x30] sm:$0xff] %vm397_vm0, %v558_v9  ;;  %v632_v37 = vmul.f32 %v2462_v1, %v4328_v17  ;;  %4513 = sst [smem:[#allocation78_spill]] %s3077_s8 }
  0xdb   : > { %v608_v63 = vpop.permute.xlu1 %607  ;;  %v601_v30 = vpop.permute.xlu0 %600  ;;  %4514 = sst [smem:[#allocation79_spill]] %s3087_s12 }
  0xdc   : > { %v593_v51 = vadd.f32 %v591_v46, %v586_v34  ;;  %4515 = sst [smem:[#allocation80_spill]] %s3093_s2 }
  0xde   : > { %v596_v42 = vadd.f32 %v595_v25, %v593_v51  ;;  %v4326_v51 = vstv %s3064_s10  ;;  %s3100_s10 = sld [smem:[#allocation2 + $0x187]] }
  0xdf   : > { %v628_v47 = vpop.permute.xlu1 %627  ;;  %v621_v50 = vpop.permute.xlu0 %620 }
  0xe0   : > { %v603_v49 = vadd.f32 %v601_v30, %v596_v42  ;;  %v623_v9 = vadd.f32 %v621_v50, %v616_v54  ;;  %v4329_v30 = vstv %s3070_s26  ;;  %v649_v42 = vmul.f32 %v2489_v10, %v4326_v51  ;;  %s2238_s26 = sld [smem:[#allocation2 + $0x906]] }
  0xe1   : > { %v3098_v51 = vstv %s2237_s9  ;;  %s3110_s9 = sld [smem:[#allocation2 + $0x307]] }
  0xe2   : > { %v610_v46 = vadd.f32 %v608_v63, %v603_v49  ;;  %v630_v34 = vadd.f32 %v628_v47, %v623_v9  ;;  %v670_v49 = vmul.f32 %v2465_v2, %v4329_v30  ;;  %v4336_v9 = vstv %s3077_s8  ;;  %s3116_s8 = sld [smem:[#allocation2 + $0x480]] }
  0xe3   : > { %v645_v5 = vpop.permute.xlu1 %644  ;;  %v638_v25 = vpop.permute.xlu0 %637 }
  0xe4   : > { %v612_v55 = vadd.f32 %v3075_v26, %v610_v46  ;;  %v633_v43 = vadd.f32 %v632_v37, %v630_v34  ;;  %4516 = sst [smem:[#allocation81_spill]] %s3100_s10 }
  0xe6   : > { %v640_v54 = vadd.f32 %v638_v25, %v633_v43  ;;  %2246 = vst.msk [vmem:[%s2986_s6 + $0x40] sm:$0xff] %vm397_vm0, %v612_v55  ;;  %v686_v25 = vmul.f32 %v2462_v1, %v4336_v9 }
  0xe7   : > { %v662_v50 = vpop.permute.xlu1 %661  ;;  %v655_v63 = vpop.permute.xlu0 %654  ;;  %4517 = sst [smem:[#allocation82_spill]] %s3110_s9 }
  0xe8   : > { %v647_v47 = vadd.f32 %v645_v5, %v640_v54  ;;  %4518 = sst [smem:[#allocation83_spill]] %s3116_s8 }
  0xea   : > { %v650_v37 = vadd.f32 %v649_v42, %v647_v47  ;;  %v4333_v47 = vstv %s3087_s12  ;;  %s2239_s12 = sld [smem:[#allocation2 + $0x907]] }
  0xeb   : > { %v682_v43 = vpop.permute.xlu1 %681  ;;  %v675_v46 = vpop.permute.xlu0 %674 }
  0xec   : > { %v657_v34 = vadd.f32 %v655_v63, %v650_v37  ;;  %v677_v55 = vadd.f32 %v675_v46, %v670_v49  ;;  %v4335_v63 = vstv %s3093_s2  ;;  %v703_v37 = vmul.f32 %v2489_v10, %v4333_v47  ;;  %s3123_s2 = sld [smem:[#allocation2 + $0x600]] }
  0xed   : > { %v3121_v47 = vstv %s2238_s26  ;;  %s3133_s26 = sld [smem:[#allocation2 + $0x780]] }
  0xee   : > { %v664_v5 = vadd.f32 %v662_v50, %v657_v34  ;;  %v684_v54 = vadd.f32 %v682_v43, %v677_v55  ;;  %v724_v34 = vmul.f32 %v2465_v2, %v4335_v63  ;;  %v4341_v55 = vstv %s3100_s10  ;;  %s3139_s10 = sld [smem:[#allocation2 + $0x481]] }
  0xef   : > { %v699_v17 = vpop.permute.xlu1 %698  ;;  %v692_v42 = vpop.permute.xlu0 %691 }
  0xf0   : > { %v666_v30 = vadd.f32 %v3098_v51, %v664_v5  ;;  %v687_v39 = vadd.f32 %v686_v25, %v684_v54 }
  0xf2   : > { %v694_v49 = vadd.f32 %v692_v42, %v687_v39  ;;  %2247 = vst.msk [vmem:[%s2986_s6 + $0x50] sm:$0xff] %vm397_vm0, %v666_v30  ;;  %v740_v42 = vmul.f32 %v2462_v1, %v4341_v55  ;;  %4519 = sst [smem:[#allocation84_spill]] %s3123_s2 }
  0xf3   : > { %v716_v46 = vpop.permute.xlu1 %715  ;;  %v709_v50 = vpop.permute.xlu0 %708  ;;  %4520 = sst [smem:[#allocation85_spill]] %s3133_s26 }
  0xf4   : > { %v701_v43 = vadd.f32 %v699_v17, %v694_v49  ;;  %4521 = sst [smem:[#allocation86_spill]] %s3139_s10 }
  0xf6   : > { %v704_v25 = vadd.f32 %v703_v37, %v701_v43  ;;  %v4339_v43 = vstv %s3110_s9  ;;  %s3146_s9 = sld [smem:[#allocation2 + $0x601]] }
  0xf7   : > { %v736_v39 = vpop.permute.xlu1 %735  ;;  %v729_v5 = vpop.permute.xlu0 %728 }
  0xf8   : > { %v711_v54 = vadd.f32 %v709_v50, %v704_v25  ;;  %v731_v30 = vadd.f32 %v729_v5, %v724_v34  ;;  %v4342_v50 = vstv %s3116_s8  ;;  %v757_v25 = vmul.f32 %v2489_v10, %v4339_v43  ;;  %s4359_s8 = smov 32  }
  0xf9   : > { %v3144_v43 = vstv %s2239_s12  ;;  %s3156_s12 = sld [smem:[#allocation2 + $0x781]] }
  0xfa   : > { %v718_v17 = vadd.f32 %v716_v46, %v711_v54  ;;  %v738_v2 = vadd.f32 %v736_v39, %v731_v30  ;;  %v778_v54 = vmul.f32 %v2462_v1, %v4342_v50  ;;  %v4343_v30 = vstv %s3123_s2  ;;  %s3165_s2 = sld [smem:[#allocation2 + $0x482]] }
  0xfb   : > { %v753_v49 = vpop.permute.xlu1 %752  ;;  %v746_v37 = vpop.permute.xlu0 %745 }
  0xfc   : > { %v720_v63 = vadd.f32 %v3121_v47, %v718_v17  ;;  %v741_v9 = vadd.f32 %v740_v42, %v738_v2  ;;  %4522 = sst [smem:[#allocation87_spill]] %s3146_s9 }
  0xfe   : > { %v748_v34 = vadd.f32 %v746_v37, %v741_v9  ;;  %2248 = vst.msk [vmem:[%s2986_s6 + $0x60] sm:$0xff] %vm397_vm0, %v720_v63  ;;  %v794_v37 = vmul.f32 %v2489_v10, %v4343_v30 }
  0xff   : > { %v770_v5 = vpop.permute.xlu1 %769  ;;  %v763_v46 = vpop.permute.xlu0 %762  ;;  %4523 = sst [smem:[#allocation88_spill]] %s3156_s12  ;;  %v4354_v58 = vstv %s3156_s12  ;;  %s3217_s12 = sld [smem:[#allocation2 + $0x684]] }
 0x100   : > { %v755_v39 = vadd.f32 %v753_v49, %v748_v34  ;;  %4524 = sst [smem:[#allocation89_spill]] %s3165_s2 }
 0x102   : > { %v758_v42 = vadd.f32 %v757_v25, %v755_v39  ;;  %v4346_v39 = vstv %s3133_s26  ;;  %s3170_s26 = sld [smem:[#allocation2 + $0x602]] }
 0x103   : > { %v790_v9 = vpop.permute.xlu1 %789  ;;  %v783_v17 = vpop.permute.xlu0 %782 }
 0x104   : > { %v765_v2 = vadd.f32 %v763_v46, %v758_v42  ;;  %v785_v63 = vadd.f32 %v783_v17, %v778_v54  ;;  %v4347_v46 = vstv %s3139_s10  ;;  %v814_v42 = vmul.f32 %v2828_v57, %v4346_v39  ;;  %s3270_s10 = sld [smem:[#allocation2 + $0x884]] }
 0x105   : > { %4532 = sst [smem:[#allocation96_spill]] %s3217_s12 }
 0x106   : > { %v772_v1 = vadd.f32 %v770_v5, %v765_v2  ;;  %v792_v49 = vadd.f32 %v790_v9, %v785_v63  ;;  %v3159_v9 = vld [vmem:[%s2458_s5 + $0x1] sm:$0xff]  ;;  %v4355_v63 = vstv %s3146_s9  ;;  %s3241_s9 = sld [smem:[#allocation2 + $0x483]] }
 0x107   : > { %v807_v34 = vpop.permute.xlu1 %806  ;;  %v800_v25 = vpop.permute.xlu0 %799  ;;  %v838_v2 = vmul.f32 %v3159_v9, %v4347_v46 }
 0x108   : > { %v774_v55 = vadd.f32 %v3144_v43, %v772_v1  ;;  %v795_v50 = vadd.f32 %v794_v37, %v792_v49  ;;  %4525 = sst [smem:[#allocation90_spill]] %s3170_s26 }
 0x10a   : > { %v802_v54 = vadd.f32 %v800_v25, %v795_v50  ;;  %2249 = vst.msk [vmem:[%s2986_s6 + $0x70] sm:$0xff] %vm397_vm0, %v774_v55  ;;  %v854_v25 = vmul.f32 %v2489_v10, %v4355_v63  ;;  %v871_v10 = vmul.f32 %v2828_v57, %v4354_v58  ;;  %4539 = sst [smem:[#allocation103_spill]] %s3270_s10 }
 0x10b   : > { %v827_v17 = vpop.permute.xlu1 %826  ;;  %v820_v30 = vpop.permute.xlu0 %819 }
 0x10c   : > { %v809_v5 = vadd.f32 %v807_v34, %v802_v54  ;;  %4534 = sst [smem:[#allocation98_spill]] %s3241_s9 }
 0x10e   : > { %v815_v50 = vadd.f32 %v814_v42, %v809_v5  ;;  %v4356_v5 = vstv %s3165_s2  ;;  %s3206_s2 = sld [smem:[#allocation2 + $0x883]] }
 0x10f   : > { %v843_v37 = vpop.permute.xlu1 %842  ;;  %v850_v1 = vpop.permute.xlu0 %849 }
 0x110   : > { %v822_v55 = vadd.f32 %v820_v30, %v815_v50  ;;  %v845_v49 = vadd.f32 %v843_v37, %v838_v2 }
 0x112   : > { %v829_v34 = vadd.f32 %v827_v17, %v822_v55  ;;  %v852_v54 = vadd.f32 %v850_v1, %v845_v49 }
 0x113   : > { %v867_v39 = vpop.permute.xlu0 %866  ;;  %v860_v46 = vpop.permute.xlu1 %859 }
 0x114   : > { %v855_v35 = vadd.f32 %v854_v25, %v852_v54  ;;  %v830_v42 = vadd.f32 %v829_v34, %v2974_v22  ;;  %v3188_v25 = vld [vmem:[%s2458_s5 + $0x19] sm:$0xff]  ;;  %4529 = sst [smem:[#allocation94_spill]] %s3206_s2 }
 0x115   : > { %s4589_s14 = sld [smem:[#allocation94_spill]] }
 0x116   : > { %v862_v31 = vadd.f32 %v860_v46, %v855_v35  ;;  %832 = vrot.lane.b32.xlu0 %v830_v42, %s4359_s8  ;;  %v894_v35 = vmul.f32 %v3159_v9, %v4356_v5  ;;  %v4368_v46 = vstv %s3170_s26  ;;  %s3203_s26 = sld [smem:[#allocation2 + $0x703]] }
 0x117   : > { %v884_v30 = vpop.permute.xlu0 %883  ;;  %v877_v17 = vpop.permute.xlu1 %876  ;;  %v910_v34 = vmul.f32 %v3188_v25, %v4368_v46 }
 0x118   : > { %v869_v2 = vadd.f32 %v867_v39, %v862_v31  ;;  %v4367_v31 = vstv %s3179_s15  ;;  %v4408_v39 = vstv %s3181_s1  ;;  %s4531_s15 = smov 32   ;;  %s3349_s1 = sld [smem:[#allocation2 + $0x686]] }
 0x11a   : > { %v872_v50 = vadd.f32 %v871_v10, %v869_v2 }
 0x11b   : > { %v899_v37 = vpop.permute.xlu0 %898  ;;  %v906_v1 = vpop.permute.xlu1 %905 }
 0x11c   : > { %v879_v55 = vadd.f32 %v877_v17, %v872_v50  ;;  %v901_v49 = vadd.f32 %v899_v37, %v894_v35  ;;  %v927_v17 = vmul.f32 %v2828_v57, %v4367_v31  ;;  %v986_v35 = vmul.f32 %v2828_v57, %v4408_v39  ;;  %4528 = sst [smem:[#allocation93_spill]] %s3203_s26 }
 0x11e   : > { %v886_v54 = vadd.f32 %v884_v30, %v879_v55  ;;  %v908_v42 = vadd.f32 %v906_v1, %v901_v49  ;;  %4547 = sst [smem:[#allocation111_spill]] %s3349_s1 }
 0x11f   : > { %v916_v58 = vpop.permute.xlu0 %915  ;;  %v923_v10 = vpop.permute.xlu1 %922 }
 0x120   : > { %v911_v63 = vadd.f32 %v910_v34, %v908_v42  ;;  %v887_v5 = vadd.f32 %v886_v54, %v3006_v59  ;;  %v4388_v34 = vstv %s3206_s2  ;;  %s3317_s2 = sld [smem:[#allocation2 + $0x784]] }
 0x121   : > { %v993_v54 = vmul.f32 %v2828_v57, %v4388_v34 }
 0x122   : > { %v918_v2 = vadd.f32 %v916_v58, %v911_v63  ;;  %889 = vrot.lane.b32.xlu1 %v887_v5, %s4359_s8  ;;  %v975_v5 = vstv %s3203_s26  ;;  %s3209_s8 = sld [smem:[#allocation2 + $0x504]]  ;;  %s3360_s26 = sld [smem:[#allocation2 + $0x806]] }
 0x123   : > { %v933_v50 = vpop.permute.xlu0 %932  ;;  %v940_v1 = vpop.permute.xlu1 %939  ;;  %v976_v49 = vmul.f32 %v3188_v25, %v975_v5 }
 0x124   : > { %v925_v30 = vadd.f32 %v923_v10, %v918_v2  ;;  %v4370_v2 = vstv %s3217_s12  ;;  %s3246_s12 = sld [smem:[#allocation2 + $0x603]] }
 0x126   : > { %v928_v37 = vadd.f32 %v927_v17, %v925_v30  ;;  %988 = vrot.lane.b32.xlu1 %v986_v35, %s4496_s28  ;;  %v1025_v17 = vmul.f32 %v3188_v25, %v4370_v2  ;;  %v4369_v35 = vstv %s3224_s29  ;;  %s3254_s29 = sld [smem:[#allocation2 + $0x783]]  ;;  %4543 = sst [smem:[#allocation107_spill]] %s3317_s2 }
 0x127   : > { %v1042_v30 = vmul.f32 %v2828_v57, %v4369_v35 }
 0x128   : > { %v935_v58 = vadd.f32 %v933_v50, %v928_v37  ;;  %4530 = sst [smem:[#allocation95_spill]] %s3209_s8  ;;  %v4386_v42 = vstv %s3209_s8  ;;  %v962_v50 = vpop.permute.xlu0 %961  ;;  %s3285_s8 = sld [smem:[#allocation2 + $0x685]] }
 0x129   : > { %v1008_v10 = vmul.f32 %v3159_v9, %v4386_v42  ;;  %4548 = sst [smem:[#allocation112_spill]] %s3360_s26 }
 0x12a   : > { %v942_v63 = vadd.f32 %v940_v1, %v935_v58  ;;  %v955_v1 = vpop.permute.xlu1 %954  ;;  %4535 = sst [smem:[#allocation99_spill]] %s3246_s12 }
 0x12c   : > { %v943_v55 = vadd.f32 %v942_v63, %v3029_v62  ;;  %v4385_v63 = vstv %s3241_s9  ;;  %4536 = sst [smem:[#allocation100_spill]] %s3254_s29  ;;  %v4380_v46 = vstv %s3254_s29  ;;  %s3265_s9 = sld [smem:[#allocation2 + $0x584]] }
 0x12d   : > { %v983_v2 = vmul.f32 %v2828_v57, %v4380_v46  ;;  %s3278_s29 = sld [smem:[#allocation2 + $0x505]] }
 0x12e   : > { %945 = vrot.lane.b32.xlu0 %v943_v55, %s4531_s15  ;;  %v972_v58 = vpop.permute.xlu1 %971  ;;  %v950_v55 = vmul.f32 %v3159_v9, %v4385_v63 }
 0x132   : > { %978 = vrot.lane.b32.xlu0 %v976_v49, %s4495_s27  ;;  %4537 = sst [smem:[#allocation101_spill]] %s3265_s9 }
 0x136   : > { %995 = vrot.lane.b32.xlu0 %v993_v54, %s4495_s27  ;;  %v957_v54 = vadd.f32 %v955_v1, %v950_v55 }
 0x13a   : > { %1010 = vrot.lane.b32.xlu0 %v1008_v10, %s4496_s28  ;;  %v4383_v10 = vstv %s3246_s12  ;;  %s3267_s12 = sld [smem:[#allocation2 + $0x704]] }
 0x13e   : > { %1027 = vrot.lane.b32.xlu0 %v1025_v17, %s4496_s28  ;;  %v964_v17 = vadd.f32 %v962_v50, %v957_v54 }
 0x140   : > { %4538 = sst [smem:[#allocation102_spill]] %s3267_s12 }
 0x142   : > { %1044 = vrot.lane.b32.xlu0 %v1042_v30, %s4496_s28  ;;  %v966_v30 = vmul.f32 %v3188_v25, %v4383_v10 }
 0x188   : > { %v833_v37 = vpop.permute.xlu0 %832 }
 0x189   : > { %836 = vst.msk [vmem:[%s2986_s6] sm:$0xff] %vm835_vm1, %v833_v37  ;;  %v967_v37 = vadd.f32 %v966_v30, %v964_v17 }
 0x18b   : > { %v974_v35 = vadd.f32 %v972_v58, %v967_v37 }
 0x194   : > { %v890_v49 = vpop.permute.xlu1 %889 }
 0x195   : > { %2251 = vst.msk [vmem:[%s2986_s6 + $0x10] sm:$0xff] %vm835_vm1, %v890_v49 }
 0x198   : > { %v989_v55 = vpop.permute.xlu1 %988 }
 0x1a0   : > { %v946_v31 = vpop.permute.xlu0 %945 }
 0x1a1   : > { %2252 = vst.msk [vmem:[%s2986_s6 + $0x20] sm:$0xff] %vm835_vm1, %v946_v31  ;;  %v4384_v31 = vstv %s3265_s9  ;;  %s3296_s9 = sld [smem:[#allocation2 + $0x805]] }
 0x1a4   : > { %v979_v49 = vpop.permute.xlu0 %978 }
 0x1a5   : > { %v981_v1 = vadd.f32 %v979_v49, %v974_v35  ;;  %v1015_v35 = vmul.f32 %v3159_v9, %v4384_v31  ;;  %v4381_v49 = vstv %s3270_s10  ;;  %s3309_s10 = sld [smem:[#allocation2 + $0x484]]  ;;  %v4399_v31 = vstv %s3317_s2  ;;  %s3342_s2 = sld [smem:[#allocation2 + $0x506]] }
 0x1a6   : > { %v1039_v34 = vmul.f32 %v2828_v57, %v4399_v31 }
 0x1a7   : > { %v984_v50 = vadd.f32 %v983_v2, %v981_v1  ;;  %v4382_v2 = vstv %s3267_s12  ;;  %v1049_v1 = vmul.f32 %v2828_v57, %v4381_v49  ;;  %4540 = sst [smem:[#allocation104_spill]] %s3296_s9  ;;  %s3311_s12 = sld [smem:[#allocation2 + $0x604]] }
 0x1a8   : > { %v996_v54 = vpop.permute.xlu0 %995  ;;  %v1032_v37 = vmul.f32 %v3188_v25, %v4382_v2  ;;  %s4579_s24 = sld [smem:[#allocation104_spill]] }
 0x1a9   : > { %v991_v17 = vadd.f32 %v989_v55, %v984_v50  ;;  %v1063_v55 = vstv %s3278_s29  ;;  %s3602_s29 = sld [smem:[#allocation2 + $0x787]] }
 0x1aa   : > { %v1064_v50 = vmul.f32 %v3159_v9, %v1063_v55 }
 0x1ab   : > { %v998_v30 = vadd.f32 %v996_v54, %v991_v17  ;;  %v1080_v54 = vstv %s3285_s8  ;;  %4541 = sst [smem:[#allocation105_spill]] %s3309_s10  ;;  %s4577_s8 = sld [smem:[#allocation92_spill]] }
 0x1ac   : > { %v1081_v17 = vmul.f32 %v3188_v25, %v1080_v54  ;;  %4546 = sst [smem:[#allocation110_spill]] %s3342_s2 }
 0x1ad   : > { %v999_v58 = vadd.f32 %v998_v30, %v3052_v45  ;;  %v4390_v30 = vstv %s3296_s9  ;;  %4542 = sst [smem:[#allocation106_spill]] %s3311_s12 }
 0x1ae   : > { %s3334_s9 = sld [smem:[#allocation2 + $0x885]] }
 0x1af   : > { %1001 = vrot.lane.b32.xlu1 %v999_v58, %s4531_s15  ;;  %v1098_v58 = vmul.f32 %v2828_v57, %v4390_v30 }
 0x1b3   : > { %1017 = vrot.lane.b32.xlu1 %v1015_v35, %s4495_s27  ;;  %v4387_v35 = vstv %s3309_s10  ;;  %s3329_s10 = sld [smem:[#allocation2 + $0x585]] }
 0x1b4   : > { %4545 = sst [smem:[#allocation109_spill]] %s3334_s9 }
 0x1b7   : > { %1034 = vrot.lane.b32.xlu1 %v1032_v37, %s4495_s27  ;;  %v1006_v37 = vmul.f32 %v3159_v9, %v4387_v35 }
 0x1bb   : > { %1051 = vrot.lane.b32.xlu1 %v1049_v1, %s4495_s27  ;;  %v1011_v1 = vpop.permute.xlu0 %1010 }
 0x1bf   : > { %1066 = vrot.lane.b32.xlu1 %v1064_v50, %s4496_s28  ;;  %v1028_v10 = vpop.permute.xlu0 %1027 }
 0x1c3   : > { %1083 = vrot.lane.b32.xlu1 %v1081_v17, %s4496_s28  ;;  %v4400_v17 = vstv %s3311_s12  ;;  %s3331_s12 = sld [smem:[#allocation2 + $0x705]] }
 0x1c4   : > { %v1022_v46 = vmul.f32 %v3188_v25, %v4400_v17 }
 0x1c7   : > { %1100 = vrot.lane.b32.xlu1 %v1098_v58, %s4496_s28  ;;  %v1013_v58 = vadd.f32 %v1011_v1, %v1006_v37 }
 0x1c9   : > { %4544 = sst [smem:[#allocation108_spill]] %s3331_s12 }
 0x221   : > { %v1002_v50 = vpop.permute.xlu1 %1001 }
 0x222   : > { %2253 = vst.msk [vmem:[%s2986_s6 + $0x30] sm:$0xff] %vm835_vm1, %v1002_v50  ;;  %v1045_v50 = vpop.permute.xlu0 %1044 }
 0x225   : > { %v1018_v49 = vpop.permute.xlu1 %1017 }
 0x226   : > { %v1020_v2 = vadd.f32 %v1018_v49, %v1013_v58 }
 0x228   : > { %v1023_v63 = vadd.f32 %v1022_v46, %v1020_v2  ;;  %v1070_v46 = vstv %s3329_s10  ;;  %v4404_v2 = vstv %s3334_s9  ;;  %s3375_s9 = sld [smem:[#allocation2 + $0x605]]  ;;  %s4578_s10 = sld [smem:[#allocation14_spill]] }
 0x229   : > { %v1035_v42 = vpop.permute.xlu1 %1034 }
 0x22a   : > { %v1030_v35 = vadd.f32 %v1028_v10, %v1023_v63 }
 0x22c   : > { %v1037_v30 = vadd.f32 %v1035_v42, %v1030_v35  ;;  %v1071_v42 = vmul.f32 %v3159_v9, %v1070_v46  ;;  %v4403_v35 = vstv %s3342_s2  ;;  %s3373_s2 = sld [smem:[#allocation2 + $0x485]] }
 0x22d   : > { %v1052_v1 = vpop.permute.xlu1 %1051 }
 0x22e   : > { %v1040_v37 = vadd.f32 %v1039_v34, %v1037_v30  ;;  %v1087_v34 = vstv %s3331_s12  ;;  %v1105_v30 = vmul.f32 %v2828_v57, %v4404_v2  ;;  %4550 = sst [smem:[#allocation114_spill]] %s3375_s9  ;;  %s3413_s12 = sld [smem:[#allocation2 + $0x687]] }
 0x22f   : > { %v1088_v10 = vmul.f32 %v3188_v25, %v1087_v34 }
 0x230   : > { %v1047_v49 = vadd.f32 %v1045_v50, %v1040_v37  ;;  %v1120_v50 = vmul.f32 %v3159_v9, %v4403_v35  ;;  %v4402_v37 = vstv %s3349_s1  ;;  %s3381_s1 = sld [smem:[#allocation2 + $0x785]] }
 0x232   : > { %v1054_v58 = vadd.f32 %v1052_v1, %v1047_v49  ;;  %v1137_v1 = vmul.f32 %v3188_v25, %v4402_v37  ;;  %v4401_v49 = vstv %s3360_s26  ;;  %4549 = sst [smem:[#allocation113_spill]] %s3373_s2  ;;  %s3393_s26 = sld [smem:[#allocation2 + $0x586]] }
 0x234   : > { %v1055_v63 = vadd.f32 %v1054_v58, %v3075_v26  ;;  %v1154_v58 = vmul.f32 %v2828_v57, %v4401_v49  ;;  %4555 = sst [smem:[#allocation119_spill]] %s3413_s12 }
 0x236   : > { %1057 = vrot.lane.b32.xlu0 %v1055_v63, %s4531_s15  ;;  %v4405_v63 = vstv %s3373_s2  ;;  %4551 = sst [smem:[#allocation115_spill]] %s3381_s1  ;;  %v4417_v37 = vstv %s3381_s1  ;;  %s3406_s1 = sld [smem:[#allocation2 + $0x507]] }
 0x237   : > { %v1095_v27 = vmul.f32 %v2828_v57, %v4417_v37  ;;  %s3398_s2 = sld [smem:[#allocation2 + $0x886]] }
 0x238   : > { %4552 = sst [smem:[#allocation116_spill]] %s3393_s26 }
 0x23a   : > { %1073 = vrot.lane.b32.xlu0 %v1071_v42, %s4495_s27  ;;  %v1062_v42 = vmul.f32 %v3159_v9, %v4405_v63 }
 0x23d   : > { %4554 = sst [smem:[#allocation118_spill]] %s3398_s2 }
 0x23e   : > { %1090 = vrot.lane.b32.xlu0 %v1088_v10, %s4495_s27  ;;  %v1067_v10 = vpop.permute.xlu1 %1066 }
 0x242   : > { %1107 = vrot.lane.b32.xlu0 %v1105_v30, %s4495_s27  ;;  %v1084_v49 = vpop.permute.xlu1 %1083 }
 0x246   : > { %1122 = vrot.lane.b32.xlu0 %v1120_v50, %s4496_s28  ;;  %v4420_v50 = vstv %s3375_s9  ;;  %s3395_s9 = sld [smem:[#allocation2 + $0x706]] }
 0x24a   : > { %1139 = vrot.lane.b32.xlu0 %v1137_v1, %s4496_s28  ;;  %v1069_v1 = vadd.f32 %v1067_v10, %v1062_v42 }
 0x24c   : > { %4553 = sst [smem:[#allocation117_spill]] %s3395_s9 }
 0x24e   : > { %1156 = vrot.lane.b32.xlu0 %v1154_v58, %s4496_s28  ;;  %v1078_v58 = vmul.f32 %v3188_v25, %v4420_v50 }
 0x2a8   : > { %v1058_v30 = vpop.permute.xlu0 %1057 }
 0x2a9   : > { %2254 = vst.msk [vmem:[%s2986_s6 + $0x40] sm:$0xff] %vm835_vm1, %v1058_v30  ;;  %v1101_v30 = vpop.permute.xlu1 %1100 }
 0x2ac   : > { %v1074_v31 = vpop.permute.xlu0 %1073 }
 0x2ad   : > { %v1076_v17 = vadd.f32 %v1074_v31, %v1069_v1  ;;  %v4421_v1 = vstv %s3393_s26  ;;  %s3442_s26 = sld [smem:[#allocation2 + $0x606]] }
 0x2af   : > { %v1079_v35 = vadd.f32 %v1078_v58, %v1076_v17  ;;  %v1175_v58 = vstv %s3406_s1  ;;  %s4592_s1 = sld [smem:[#allocation109_spill]] }
 0x2b0   : > { %v1091_v2 = vpop.permute.xlu0 %1090 }
 0x2b1   : > { %v1086_v63 = vadd.f32 %v1084_v49, %v1079_v35  ;;  %v4418_v35 = vstv %s3398_s2  ;;  %v3417_v49 = vld [vmem:[%s2458_s5 + $0x2] sm:$0xff]  ;;  %s3440_s2 = sld [smem:[#allocation2 + $0x486]] }
 0x2b3   : > { %v1093_v39 = vadd.f32 %v1091_v2, %v1086_v63  ;;  %v1161_v63 = vmul.f32 %v3417_v49, %v4418_v35  ;;  %4557 = sst [smem:[#allocation121_spill]] %s3442_s26 }
 0x2b4   : > { %v1108_v10 = vpop.permute.xlu0 %1107 }
 0x2b5   : > { %v1096_v42 = vadd.f32 %v1095_v27, %v1093_v39  ;;  %v1127_v27 = vmul.f32 %v3159_v9, %v4421_v1  ;;  %v4419_v39 = vstv %s3395_s9  ;;  %s3427_s9 = sld [smem:[#allocation2 + $0x807]] }
 0x2b6   : > { %v1144_v2 = vmul.f32 %v3188_v25, %v4419_v39 }
 0x2b7   : > { %v1103_v31 = vadd.f32 %v1101_v30, %v1096_v42  ;;  %v1176_v30 = vmul.f32 %v3159_v9, %v1175_v58  ;;  %v1192_v42 = vstv %s3413_s12  ;;  %4556 = sst [smem:[#allocation120_spill]] %s3440_s2  ;;  %s3448_s12 = sld [smem:[#allocation2 + $0x786]] }
 0x2b9   : > { %v1110_v17 = vadd.f32 %v1108_v10, %v1103_v31  ;;  %v1193_v10 = vmul.f32 %v3188_v25, %v1192_v42 }
 0x2bb   : > { %v1111_v57 = vadd.f32 %v1110_v17, %v3098_v51  ;;  %v4422_v31 = vstv %s3427_s9 }
 0x2bc   : > { %v1210_v17 = vmul.f32 %v3417_v49, %v4422_v31 }
 0x2bd   : > { %1113 = vrot.lane.b32.xlu1 %v1111_v57, %s4531_s15  ;;  %v4423_v57 = vstv %s3440_s2  ;;  %4558 = sst [smem:[#allocation122_spill]] %s3448_s12  ;;  %v1150_v50 = vstv %s3448_s12  ;;  %s3460_s2 = sld [smem:[#allocation2 + $0x587]] }
 0x2be   : > { %v1151_v23 = vmul.f32 %v3417_v49, %v1150_v50  ;;  %s3465_s12 = sld [smem:[#allocation2 + $0x887]] }
 0x2c1   : > { %1129 = vrot.lane.b32.xlu1 %v1127_v27, %s4495_s27  ;;  %v1118_v27 = vmul.f32 %v3159_v9, %v4423_v57 }
 0x2c5   : > { %1146 = vrot.lane.b32.xlu1 %v1144_v2, %s4495_s27  ;;  %v1123_v2 = vpop.permute.xlu0 %1122 }
 0x2c9   : > { %1163 = vrot.lane.b32.xlu1 %v1161_v63, %s4495_s27  ;;  %v1140_v39 = vpop.permute.xlu0 %1139 }
 0x2cd   : > { %1178 = vrot.lane.b32.xlu1 %v1176_v30, %s4496_s28  ;;  %v1133_v30 = vstv %s3442_s26  ;;  %s3462_s26 = sld [smem:[#allocation2 + $0x707]] }
 0x2d1   : > { %1195 = vrot.lane.b32.xlu1 %v1193_v10, %s4496_s28  ;;  %v1125_v10 = vadd.f32 %v1123_v2, %v1118_v27 }
 0x2d5   : > { %1212 = vrot.lane.b32.xlu1 %v1210_v17, %s4496_s28  ;;  %v1134_v17 = vmul.f32 %v3188_v25, %v1133_v30 }
 0x32f   : > { %v1114_v63 = vpop.permute.xlu1 %1113 }
 0x330   : > { %2255 = vst.msk [vmem:[%s2986_s6 + $0x50] sm:$0xff] %vm835_vm1, %v1114_v63  ;;  %v1157_v63 = vpop.permute.xlu0 %1156 }
 0x333   : > { %v1130_v37 = vpop.permute.xlu1 %1129 }
 0x334   : > { %v1132_v35 = vadd.f32 %v1130_v37, %v1125_v10 }
 0x336   : > { %v1135_v1 = vadd.f32 %v1134_v17, %v1132_v35  ;;  %v3483_v17 = vld [vmem:[%s2458_s5 + $0x20] sm:$0xff] }
 0x337   : > { %v1147_v31 = vpop.permute.xlu1 %1146 }
 0x338   : > { %v1142_v57 = vadd.f32 %v1140_v39, %v1135_v1  ;;  %v1182_v39 = vstv %s3460_s2  ;;  %s4600_s2 = sld [smem:[#allocation29_spill]] }
 0x33a   : > { %v1149_v61 = vadd.f32 %v1147_v31, %v1142_v57  ;;  %v1216_v57 = vstv %s3465_s12  ;;  %s4613_s12 = sld [smem:[#allocation25_spill]] }
 0x33b   : > { %v1164_v2 = vpop.permute.xlu1 %1163  ;;  %v1217_v10 = vmul.f32 %v3417_v49, %v1216_v57 }
 0x33c   : > { %v1152_v27 = vadd.f32 %v1151_v23, %v1149_v61  ;;  %v1183_v23 = vmul.f32 %v3159_v9, %v1182_v39  ;;  %v1199_v61 = vstv %s3462_s26  ;;  %s4583_s26 = sld [smem:[#allocation16_spill]] }
 0x33d   : > { %v1200_v31 = vmul.f32 %v3188_v25, %v1199_v61 }
 0x33e   : > { %v1159_v37 = vadd.f32 %v1157_v63, %v1152_v27  ;;  %v1235_v63 = vmul.f32 %v3483_v17, %v342_v3  ;;  %v3490_v27 = vld [vmem:[%s2458_s5 + $0x9] sm:$0xff]  ;;  %v1283_v3 = vmul.f32 %v3483_v17, %v401_v16 }
 0x33f   : > { %v1340_v16 = vmul.f32 %v3490_v27, %v472_v32 }
 0x340   : > { %v1166_v1 = vadd.f32 %v1164_v2, %v1159_v37  ;;  %v1251_v2 = vmul.f32 %v3490_v27, %v361_v0  ;;  %v3497_v37 = vld [vmem:[%s2458_s5 + $0x21] sm:$0xff]  ;;  %v1297_v0 = vmul.f32 %v3490_v27, %v418_v20 }
 0x341   : > { %v1354_v20 = vmul.f32 %v3497_v37, %v489_v36  ;;  %v1397_v32 = vmul.f32 %v3497_v37, %v543_v48  ;;  %v1412_v36 = vmul.f32 %v3483_v17, %v563_v52  ;;  %v1455_v48 = vmul.f32 %v3483_v17, %v617_v4 }
 0x342   : > { %v1167_v35 = vadd.f32 %v1166_v1, %v3121_v47  ;;  %v1268_v1 = vmul.f32 %v3497_v37, %v381_v12  ;;  %v1326_v12 = vmul.f32 %v3483_v17, %v455_v28  ;;  %v1383_v28 = vmul.f32 %v3490_v27, %v526_v44 }
 0x343   : > { %v1440_v44 = vmul.f32 %v3497_v37, %v597_v60  ;;  %v1469_v52 = vmul.f32 %v3490_v27, %v634_v13  ;;  %v1498_v60 = vmul.f32 %v3483_v17, %v671_v29  ;;  %v1634_v4 = vmul.f32 %v3490_v27, %v839_v33 }
 0x344   : > { %1169 = vrot.lane.b32.xlu0 %v1167_v35, %s4531_s15  ;;  %v1311_v35 = vmul.f32 %v3497_v37, %v435_v24  ;;  %v1369_v24 = vmul.f32 %v3483_v17, %v509_v40  ;;  %v1426_v40 = vmul.f32 %v3490_v27, %v580_v56  ;;  %v1483_v56 = vmul.f32 %v3497_v37, %v651_v21 }
 0x345   : > { %v1728_v13 = vmul.f32 %v3490_v27, %v951_v41  ;;  %v1822_v21 = vmul.f32 %v3490_v27, %v1063_v55  ;;  %v1916_v29 = vmul.f32 %v3490_v27, %v1175_v58  ;;  %v1640_v41 = vmul.f32 %v3490_v27, %v846_v38 }
 0x346   : > { %v1734_v33 = vmul.f32 %v3490_v27, %v958_v53  ;;  %v1173_v55 = vstv %s3582_s11  ;;  %v1828_v38 = vmul.f32 %v3490_v27, %v1070_v46  ;;  %s4652_s11 = sld [smem:[#allocation96_spill]] }
 0x347   : > { %v1174_v58 = vmul.f32 %v3159_v9, %v1173_v55  ;;  %v1922_v9 = vmul.f32 %v3490_v27, %v1182_v39 }
 0x348   : > { %1185 = vrot.lane.b32.xlu0 %v1183_v23, %s4495_s27  ;;  %v1179_v23 = vpop.permute.xlu1 %1178 }
 0x349   : > { %v1181_v53 = vadd.f32 %v1179_v23, %v1174_v58  ;;  %v4584_v58 = vstv %s4577_s8  ;;  %v4586_v23 = vstv %s4578_s10  ;;  %s4622_s8 = sld [smem:[#allocation54_spill]]  ;;  %s4624_s10 = sld [smem:[#allocation95_spill]] }
 0x34c   : > { %1202 = vrot.lane.b32.xlu0 %v1200_v31, %s4495_s27 }
 0x350   : > { %1219 = vrot.lane.b32.xlu0 %v1217_v10, %s4495_s27  ;;  %v1189_v10 = vstv %s3589_s13  ;;  %s4665_s13 = sld [smem:[#allocation58_spill]] }
 0x351   : > { %v1190_v46 = vmul.f32 %v3188_v25, %v1189_v10  ;;  %v1742_v25 = vmul.f32 %v3497_v37, %v968_v18  ;;  %v1930_v18 = vmul.f32 %v3497_v37, %v1192_v42  ;;  %v1257_v42 = vmul.f32 %v3490_v27, %v368_v6 }
 0x352   : > { %v1842_v6 = vmul.f32 %v3497_v37, %v1087_v34 }
 0x354   : > { %1237 = vrot.lane.b32.xlu0 %v1235_v63, %s4496_s28 }
 0x358   : > { %1253 = vrot.lane.b32.xlu0 %v1251_v2, %s4496_s28 }
 0x35c   : > { %1270 = vrot.lane.b32.xlu0 %v1268_v1, %s4496_s28  ;;  %v1648_v1 = vmul.f32 %v3497_v37, %v856_v14 }
 0x360   : > { %1285 = vrot.lane.b32.xlu0 %v1283_v3, %s4496_s28  ;;  %v1196_v3 = vpop.permute.xlu1 %1195 }
 0x364   : > { %1299 = vrot.lane.b32.xlu0 %v1297_v0, %s4496_s28  ;;  %v1206_v0 = vstv %s3602_s29  ;;  %v1213_v14 = vpop.permute.xlu1 %1212  ;;  %s4746_s29 = sld [smem:[#allocation84_spill]] }
 0x365   : > { %v1207_v39 = vmul.f32 %v3417_v49, %v1206_v0 }
 0x368   : > { %1313 = vrot.lane.b32.xlu0 %v1311_v35, %s4496_s28 }
 0x36c   : > { %1328 = vrot.lane.b32.xlu0 %v1326_v12, %s4496_s28 }
 0x370   : > { %1342 = vrot.lane.b32.xlu0 %v1340_v16, %s4496_s28 }
 0x374   : > { %1356 = vrot.lane.b32.xlu0 %v1354_v20, %s4496_s28 }
 0x378   : > { %1371 = vrot.lane.b32.xlu0 %v1369_v24, %s4496_s28 }
 0x37c   : > { %1385 = vrot.lane.b32.xlu0 %v1383_v28, %s4496_s28 }
 0x380   : > { %1399 = vrot.lane.b32.xlu0 %v1397_v32, %s4496_s28  ;;  %v1836_v32 = vmul.f32 %v3497_v37, %v1080_v54  ;;  %v1241_v54 = vmul.f32 %v3483_v17, %v349_v8  ;;  %v1748_v8 = vmul.f32 %v3497_v37, %v975_v5  ;;  %v1289_v5 = vmul.f32 %v3483_v17, %v408_v15 }
 0x381   : > { %v4581_v15 = vstv %s4575_s3  ;;  %s4617_s3 = sld [smem:[#allocation27_spill]] }
 0x384   : > { %1414 = vrot.lane.b32.xlu0 %v1412_v36, %s4496_s28 }
 0x388   : > { %1428 = vrot.lane.b32.xlu0 %v1426_v40, %s4496_s28 }
 0x38c   : > { %1442 = vrot.lane.b32.xlu0 %v1440_v44, %s4496_s28 }
 0x390   : > { %1457 = vrot.lane.b32.xlu0 %v1455_v48, %s4496_s28 }
 0x394   : > { %1471 = vrot.lane.b32.xlu0 %v1469_v52, %s4496_s28  ;;  %v1654_v52 = vmul.f32 %v3497_v37, %v863_v7  ;;  %v1274_v7 = vmul.f32 %v3497_v37, %v388_v11  ;;  %v1936_v11 = vmul.f32 %v3497_v37, %v1199_v61 }
 0x398   : > { %1485 = vrot.lane.b32.xlu0 %v1483_v56, %s4496_s28 }
 0x39c   : > { %1500 = vrot.lane.b32.xlu0 %v1498_v60, %s4496_s28 }
 0x3a0   : > { %1636 = vrot.lane.b32.xlu0 %v1634_v4, %s4496_s28 }
 0x3a4   : > { %1730 = vrot.lane.b32.xlu0 %v1728_v13, %s4496_s28  ;;  %v3679_v13 = vld [vmem:[%s2458_s5 + $0xa] sm:$0xff] }
 0x3a8   : > { %1824 = vrot.lane.b32.xlu0 %v1822_v21, %s4496_s28  ;;  %v1303_v21 = vmul.f32 %v3490_v27, %v425_v19  ;;  %v1756_v19 = vmul.f32 %v3679_v13, %v4584_v58 }
 0x3ac   : > { %1918 = vrot.lane.b32.xlu0 %v1916_v29, %s4496_s28  ;;  %v1662_v29 = vmul.f32 %v3679_v13, %v4581_v15 }
 0x3b0   : > { %1642 = vrot.lane.b32.xlu0 %v1640_v41, %s4495_s27 }
 0x3b4   : > { %1736 = vrot.lane.b32.xlu0 %v1734_v33, %s4495_s27  ;;  %v4582_v33 = vstv %s4576_s4  ;;  %s4619_s4 = sld [smem:[#allocation42_spill]] }
 0x3b5   : > { %v1317_v61 = vmul.f32 %v3497_v37, %v4582_v33  ;;  %v4612_v33 = vstv %s4602_s18  ;;  %s4648_s18 = sld [smem:[#allocation114_spill]] }
 0x3b6   : > { %v1170_v31 = vpop.permute.xlu0 %1169 }
 0x3b7   : > { %2256 = vst.msk [vmem:[%s2986_s6 + $0x60] sm:$0xff] %vm835_vm1, %v1170_v31  ;;  %v1332_v31 = vmul.f32 %v3483_v17, %v4586_v23  ;;  %v4616_v23 = vstv %s4606_s20  ;;  %s4655_s20 = sld [smem:[#allocation53_spill]] }
 0x3b8   : > { %1830 = vrot.lane.b32.xlu0 %v1828_v38, %s4495_s27 }
 0x3ba   : > { %v1186_v63 = vpop.permute.xlu0 %1185 }
 0x3bb   : > { %v1188_v2 = vadd.f32 %v1186_v63, %v1181_v53  ;;  %v4588_v53 = vstv %s4579_s24  ;;  %v4590_v63 = vstv %s4580_s25  ;;  %s4626_s24 = sld [smem:[#allocation86_spill]] }
 0x3bc   : > { %1924 = vrot.lane.b32.xlu0 %v1922_v9, %s4495_s27  ;;  %v1850_v9 = vmul.f32 %v3679_v13, %v4588_v53  ;;  %v4618_v53 = vstv %s4607_s16  ;;  %s4627_s25 = sld [smem:[#allocation110_spill]]  ;;  %s4657_s16 = sld [smem:[#allocation111_spill]] }
 0x3bd   : > { %v1191_v35 = vadd.f32 %v1190_v46, %v1188_v2  ;;  %v1346_v2 = vmul.f32 %v3490_v27, %v4590_v63 }
 0x3be   : > { %v1203_v12 = vpop.permute.xlu0 %1202 }
 0x3bf   : > { %v1198_v16 = vadd.f32 %v1196_v3, %v1191_v35 }
 0x3c0   : > { %1650 = vrot.lane.b32.xlu0 %v1648_v1, %s4496_s28  ;;  %v4593_v1 = vstv %s3427_s9  ;;  %s4598_s9 = sld [smem:[#allocation20_spill]] }
 0x3c1   : > { %v1205_v20 = vadd.f32 %v1203_v12, %v1198_v16  ;;  %v1944_v3 = vmul.f32 %v3679_v13, %v4593_v1  ;;  %v4594_v12 = vstv %s4583_s26  ;;  %s4629_s26 = sld [smem:[#allocation98_spill]] }
 0x3c2   : > { %v1220_v24 = vpop.permute.xlu0 %1219  ;;  %v1360_v16 = vmul.f32 %v3497_v37, %v4594_v12 }
 0x3c3   : > { %v1208_v28 = vadd.f32 %v1207_v39, %v1205_v20  ;;  %v4596_v39 = vstv %s4585_s30  ;;  %s4631_s30 = sld [smem:[#allocation41_spill]] }
 0x3c4   : > { %1744 = vrot.lane.b32.xlu0 %v1742_v25, %s4496_s28  ;;  %v1668_v25 = vmul.f32 %v3679_v13, %v4596_v39  ;;  %v4623_v39 = vstv %s4613_s12  ;;  %s4663_s12 = sld [smem:[#allocation59_spill]] }
 0x3c5   : > { %v1215_v36 = vadd.f32 %v1213_v14, %v1208_v28  ;;  %v4597_v14 = vstv %s4587_s7  ;;  %v4599_v28 = vstv %s4589_s14  ;;  %s4633_s7 = sld [smem:[#allocation113_spill]]  ;;  %s4635_s14 = sld [smem:[#allocation55_spill]] }
 0x3c6   : > { %v3631_v49 = vpop.permute.xlu0 %1237 }
 0x3c7   : > { %v1222_v40 = vadd.f32 %v1220_v24, %v1215_v36  ;;  %v1375_v24 = vmul.f32 %v3483_v17, %v4597_v14  ;;  %v4625_v14 = vstv %s4615_s23  ;;  %s4667_s23 = sld [smem:[#allocation60_spill]] }
 0x3c8   : > { %1838 = vrot.lane.b32.xlu0 %v1836_v32, %s4496_s28  ;;  %v1762_v32 = vmul.f32 %v3679_v13, %v4599_v28 }
 0x3c9   : > { %v1223_v44 = vadd.f32 %v1222_v40, %v3144_v43  ;;  %v4601_v40 = vstv %s4591_s0  ;;  %s4638_s0 = sld [smem:[#allocation101_spill]] }
 0x3ca   : > { %v3638_v48 = vpop.permute.xlu0 %1253 }
 0x3cb   : > { %1225 = vrot.lane.b32.xlu1 %v1223_v44, %s4531_s15  ;;  %v4603_v44 = vstv %s4592_s1  ;;  %s4641_s1 = sld [smem:[#allocation87_spill]] }
 0x3cc   : > { %1932 = vrot.lane.b32.xlu0 %v1930_v18, %s4496_s28  ;;  %v1389_v18 = vmul.f32 %v3490_v27, %v4601_v40 }
 0x3ce   : > { %v3648_v56 = vpop.permute.xlu0 %1270 }
 0x3cf   : > { %1243 = vrot.lane.b32.xlu1 %v1241_v54, %s4495_s27  ;;  %v1856_v54 = vmul.f32 %v3679_v13, %v4603_v44  ;;  %v4630_v44 = vstv %s4619_s4  ;;  %s4671_s4 = sld [smem:[#allocation63_spill]] }
 0x3d0   : > { %1656 = vrot.lane.b32.xlu0 %v1654_v52, %s4495_s27 }
 0x3d2   : > { %v3658_v60 = vpop.permute.xlu0 %1285 }
 0x3d3   : > { %1259 = vrot.lane.b32.xlu1 %v1257_v42, %s4495_s27  ;;  %v4605_v42 = vstv %s4595_s17  ;;  %s4643_s17 = sld [smem:[#allocation116_spill]] }
 0x3d4   : > { %1750 = vrot.lane.b32.xlu0 %v1748_v8, %s4495_s27  ;;  %v1403_v8 = vmul.f32 %v3497_v37, %v4605_v42 }
 0x3d6   : > { %v3668_v4 = vpop.permute.xlu0 %1299 }
 0x3d7   : > { %1276 = vrot.lane.b32.xlu1 %v1274_v7, %s4495_s27  ;;  %v1950_v7 = vmul.f32 %v3679_v13, %v1216_v57  ;;  %v1432_v57 = vmul.f32 %v3490_v27, %v4612_v33 }
 0x3d8   : > { %1844 = vrot.lane.b32.xlu0 %v1842_v6, %s4495_s27 }
 0x3da   : > { %v3681_v34 = vpop.permute.xlu0 %1313 }
 0x3db   : > { %1291 = vrot.lane.b32.xlu1 %v1289_v5, %s4495_s27  ;;  %v4608_v5 = vstv %s4598_s9  ;;  %s4645_s9 = sld [smem:[#allocation99_spill]] }
 0x3dc   : > { %1938 = vrot.lane.b32.xlu0 %v1936_v11, %s4495_s27  ;;  %v1418_v11 = vmul.f32 %v3483_v17, %v4608_v5 }
 0x3de   : > { %v3691_v41 = vpop.permute.xlu0 %1328 }
 0x3df   : > { %1305 = vrot.lane.b32.xlu1 %v1303_v21, %s4495_s27  ;;  %v4610_v21 = vstv %s4600_s2  ;;  %s4646_s2 = sld [smem:[#allocation44_spill]] }
 0x3e0   : > { %1664 = vrot.lane.b32.xlu0 %v1662_v29, %s4496_s28  ;;  %v1504_v15 = vmul.f32 %v3483_v17, %v4610_v21 }
 0x3e2   : > { %v3701_v38 = vpop.permute.xlu0 %1342 }
 0x3e3   : > { %1319 = vrot.lane.b32.xlu1 %v1317_v61, %s4495_s27  ;;  %v4614_v61 = vstv %s4604_s19  ;;  %s4649_s19 = sld [smem:[#allocation57_spill]] }
 0x3e4   : > { %1758 = vrot.lane.b32.xlu0 %v1756_v19, %s4496_s28  ;;  %v1512_v58 = vmul.f32 %v3490_v27, %v4614_v61  ;;  %v4637_v61 = vstv %s4627_s25  ;;  %s4679_s25 = sld [smem:[#allocation65_spill]] }
 0x3e6   : > { %v3711_v46 = vpop.permute.xlu0 %1356 }
 0x3e7   : > { %1334 = vrot.lane.b32.xlu1 %v1332_v31, %s4495_s27  ;;  %v1446_v31 = vmul.f32 %v3497_v37, %v4616_v23 }
 0x3e8   : > { %1852 = vrot.lane.b32.xlu0 %v1850_v9, %s4496_s28  ;;  %v1518_v9 = vmul.f32 %v3490_v27, %v4618_v53 }
 0x3ea   : > { %v3721_v35 = vpop.permute.xlu0 %1371 }
 0x3eb   : > { %1348 = vrot.lane.b32.xlu1 %v1346_v2, %s4495_s27  ;;  %v4620_v2 = vstv %s4609_s21  ;;  %s4659_s21 = sld [smem:[#allocation56_spill]] }
 0x3ec   : > { %1946 = vrot.lane.b32.xlu0 %v1944_v3, %s4496_s28  ;;  %v1461_v1 = vmul.f32 %v3483_v17, %v4620_v2  ;;  %v4621_v3 = vstv %s4611_s22  ;;  %v4640_v2 = vstv %s4631_s30  ;;  %s4661_s22 = sld [smem:[#allocation43_spill]]  ;;  %s4682_s30 = sld [smem:[#allocation66_spill]] }
 0x3ed   : > { %v1526_v12 = vmul.f32 %v3497_v37, %v4621_v3 }
 0x3ee   : > { %v3731_v20 = vpop.permute.xlu0 %1385 }
 0x3ef   : > { %1362 = vrot.lane.b32.xlu1 %v1360_v16, %s4495_s27 }
 0x3f0   : > { %1670 = vrot.lane.b32.xlu0 %v1668_v25, %s4495_s27  ;;  %v1475_v25 = vmul.f32 %v3490_v27, %v4623_v39 }
 0x3f2   : > { %v3741_v36 = vpop.permute.xlu0 %1399 }
 0x3f3   : > { %1377 = vrot.lane.b32.xlu1 %v1375_v24, %s4495_s27  ;;  %v1532_v24 = vmul.f32 %v3497_v37, %v4625_v14 }
 0x3f4   : > { %1764 = vrot.lane.b32.xlu0 %v1762_v32, %s4495_s27  ;;  %v4628_v32 = vstv %s4617_s3  ;;  %s4669_s3 = sld [smem:[#allocation102_spill]] }
 0x3f5   : > { %v1489_v40 = vmul.f32 %v3497_v37, %v4628_v32 }
 0x3f6   : > { %v3751_v52 = vpop.permute.xlu0 %1414 }
 0x3f7   : > { %1391 = vrot.lane.b32.xlu1 %v1389_v18, %s4495_s27 }
 0x3f8   : > { %1858 = vrot.lane.b32.xlu0 %v1856_v54, %s4495_s27  ;;  %v1584_v54 = vmul.f32 %v3490_v27, %v4630_v44 }
 0x3fa   : > { %v3761_v6 = vpop.permute.xlu0 %1428 }
 0x3fb   : > { %1405 = vrot.lane.b32.xlu1 %v1403_v8, %s4495_s27  ;;  %v4632_v8 = vstv %s4622_s8  ;;  %s4674_s8 = sld [smem:[#allocation117_spill]] }
 0x3fc   : > { %1952 = vrot.lane.b32.xlu0 %v1950_v7, %s4495_s27  ;;  %v1681_v7 = vmul.f32 %v3490_v27, %v4632_v8 }
 0x3fe   : > { %v3771_v29 = vpop.permute.xlu0 %1442 }
 0x3ff   : > { %1420 = vrot.lane.b32.xlu1 %v1418_v11, %s4495_s27  ;;  %v4634_v11 = vstv %s4624_s10  ;;  %s4676_s10 = sld [smem:[#allocation64_spill]] }
 0x400   : > { %1506 = vrot.lane.b32.xlu0 %v1504_v15, %s4495_s27  ;;  %v1775_v21 = vmul.f32 %v3490_v27, %v4634_v11  ;;  %v4636_v15 = vstv %s4626_s24  ;;  %s4678_s24 = sld [smem:[#allocation46_spill]] }
 0x401   : > { %v1633_v33 = vmul.f32 %v3490_v27, %v4636_v15 }
 0x402   : > { %v3781_v19 = vpop.permute.xlu0 %1457 }
 0x403   : > { %1434 = vrot.lane.b32.xlu1 %v1432_v57, %s4495_s27 }
 0x404   : > { %1514 = vrot.lane.b32.xlu0 %v1512_v58, %s4496_s28  ;;  %v1869_v58 = vmul.f32 %v3490_v27, %v4637_v61 }
 0x406   : > { %v3791_v63 = vpop.permute.xlu0 %1471 }
 0x407   : > { %1448 = vrot.lane.b32.xlu1 %v1446_v31, %s4495_s27  ;;  %v4639_v31 = vstv %s4629_s26  ;;  %s4681_s26 = sld [smem:[#allocation61_spill]] }
 0x408   : > { %1520 = vrot.lane.b32.xlu0 %v1518_v9, %s4495_s27  ;;  %v1727_v53 = vmul.f32 %v3490_v27, %v4639_v31 }
 0x40a   : > { %v3801_v16 = vpop.permute.xlu0 %1485 }
 0x40b   : > { %1463 = vrot.lane.b32.xlu1 %v1461_v1, %s4495_s27  ;;  %v1590_v1 = vmul.f32 %v3490_v27, %v4640_v2 }
 0x40c   : > { %1528 = vrot.lane.b32.xlu0 %v1526_v12, %s4496_s28  ;;  %v4642_v12 = vstv %s4633_s7  ;;  %s4685_s7 = sld [smem:[#allocation97_spill]] }
 0x40d   : > { %v1821_v39 = vmul.f32 %v3490_v27, %v4642_v12 }
 0x40e   : > { %v3811_v28 = vpop.permute.xlu0 %1500 }
 0x40f   : > { %1477 = vrot.lane.b32.xlu1 %v1475_v25, %s4495_s27 }
 0x410   : > { %1534 = vrot.lane.b32.xlu0 %v1532_v24, %s4495_s27  ;;  %v4644_v24 = vstv %s4635_s14  ;;  %s4688_s14 = sld [smem:[#allocation67_spill]] }
 0x411   : > { %v1687_v32 = vmul.f32 %v3490_v27, %v4644_v24 }
 0x412   : > { %v1637_v18 = vpop.permute.xlu0 %1636 }
 0x413   : > { %1491 = vrot.lane.b32.xlu1 %v1489_v40, %s4495_s27  ;;  %v1639_v23 = vadd.f32 %v1637_v18, %v1633_v33  ;;  %v1915_v18 = vmul.f32 %v3490_v27, %v1173_v55 }
 0x416   : > { %v1731_v42 = vpop.permute.xlu0 %1730 }
 0x417   : > { %1586 = vrot.lane.b32.xlu1 %v1584_v54, %s4496_s28  ;;  %v1733_v3 = vadd.f32 %v1731_v42, %v1727_v53  ;;  %v4647_v42 = vstv %s4638_s0  ;;  %s4689_s0 = sld [smem:[#allocation112_spill]] }
 0x418   : > { %v1781_v8 = vmul.f32 %v3490_v27, %v4647_v42 }
 0x41a   : > { %v1825_v5 = vpop.permute.xlu0 %1824 }
 0x41b   : > { %1683 = vrot.lane.b32.xlu1 %v1681_v7, %s4496_s28  ;;  %v1827_v40 = vadd.f32 %v1825_v5, %v1821_v39  ;;  %v4651_v5 = vstv %s4643_s17  ;;  %s4693_s17 = sld [smem:[#allocation45_spill]] }
 0x41c   : > { %v1875_v61 = vmul.f32 %v3490_v27, %v4651_v5 }
 0x41e   : > { %v1919_v57 = vpop.permute.xlu0 %1918 }
 0x41f   : > { %1777 = vrot.lane.b32.xlu1 %v1775_v21, %s4496_s28  ;;  %v1921_v7 = vadd.f32 %v1919_v57, %v1915_v18  ;;  %v4650_v21 = vstv %s4641_s1  ;;  %v4654_v57 = vstv %s4646_s2  ;;  %s4691_s1 = sld [smem:[#allocation68_spill]]  ;;  %s4697_s2 = sld [smem:[#allocation62_spill]] }
 0x420   : > { %v1646_v15 = vmul.f32 %v3497_v37, %v4650_v21 }
 0x422   : > { %v1643_v9 = vpop.permute.xlu0 %1642 }
 0x423   : > { %1871 = vrot.lane.b32.xlu1 %v1869_v58, %s4496_s28  ;;  %v1645_v25 = vadd.f32 %v1643_v9, %v1639_v23  ;;  %v4653_v23 = vstv %s4645_s9  ;;  %v1598_v9 = vmul.f32 %v3497_v37, %v4654_v57  ;;  %v4668_v57 = vstv %s4661_s22  ;;  %s4694_s9 = sld [smem:[#allocation69_spill]]  ;;  %s4710_s22 = sld [smem:[#allocation78_spill]] }
 0x424   : > { %v1740_v31 = vmul.f32 %v3497_v37, %v4653_v23 }
 0x425   : > { %v1647_v58 = vadd.f32 %v1646_v15, %v1645_v25 }
 0x426   : > { %v1737_v14 = vpop.permute.xlu0 %1736 }
 0x427   : > { %1592 = vrot.lane.b32.xlu1 %v1590_v1, %s4495_s27  ;;  %v1739_v44 = vadd.f32 %v1737_v14, %v1733_v3  ;;  %v4656_v3 = vstv %s4648_s18  ;;  %v4658_v14 = vstv %s4649_s19  ;;  %s4700_s18 = sld [smem:[#allocation70_spill]]  ;;  %s4701_s19 = sld [smem:[#allocation103_spill]] }
 0x428   : > { %v1834_v12 = vmul.f32 %v3497_v37, %v4656_v3  ;;  %v1695_v25 = vmul.f32 %v3497_v37, %v4658_v14 }
 0x429   : > { %v1741_v1 = vadd.f32 %v1740_v31, %v1739_v44 }
 0x42a   : > { %v1831_v54 = vpop.permute.xlu0 %1830 }
 0x42b   : > { %1689 = vrot.lane.b32.xlu1 %v1687_v32, %s4495_s27  ;;  %v1833_v11 = vadd.f32 %v1831_v54, %v1827_v40  ;;  %v1928_v40 = vmul.f32 %v3497_v37, %v1189_v10  ;;  %v4660_v54 = vstv %s4652_s11  ;;  %s4703_s11 = sld [smem:[#allocation77_spill]] }
 0x42c   : > { %v1789_v44 = vmul.f32 %v3497_v37, %v4660_v54  ;;  %v4673_v54 = vstv %s4667_s23  ;;  %s4718_s23 = sld [smem:[#allocation35_spill]] }
 0x42d   : > { %v1835_v32 = vadd.f32 %v1834_v12, %v1833_v11 }
 0x42e   : > { %v1925_v33 = vpop.permute.xlu0 %1924 }
 0x42f   : > { %1783 = vrot.lane.b32.xlu1 %v1781_v8, %s4495_s27  ;;  %v1927_v55 = vadd.f32 %v1925_v33, %v1921_v7  ;;  %v4662_v7 = vstv %s4655_s20  ;;  %v4664_v33 = vstv %s4657_s16  ;;  %s4704_s20 = sld [smem:[#allocation71_spill]]  ;;  %s4706_s16 = sld [smem:[#allocation118_spill]] }
 0x430   : > { %v1234_v21 = vmul.f32 %v3483_v17, %v4662_v7  ;;  %v1883_v10 = vmul.f32 %v3497_v37, %v4664_v33 }
 0x431   : > { %v1929_v8 = vadd.f32 %v1928_v40, %v1927_v55 }
 0x432   : > { %v1651_v53 = vpop.permute.xlu0 %1650 }
 0x433   : > { %1877 = vrot.lane.b32.xlu1 %v1875_v61, %s4495_s27  ;;  %v1653_v2 = vadd.f32 %v1651_v53, %v1647_v58  ;;  %v1240_v61 = vadd.f32 %v3631_v49, %v1234_v21  ;;  %v4666_v58 = vstv %s4659_s21  ;;  %s4708_s21 = sld [smem:[#allocation72_spill]] }
 0x434   : > { %v1249_v55 = vmul.f32 %v3490_v27, %v4666_v58 }
 0x436   : > { %v1745_v39 = vpop.permute.xlu0 %1744 }
 0x437   : > { %1600 = vrot.lane.b32.xlu1 %v1598_v9, %s4496_s28  ;;  %v1747_v24 = vadd.f32 %v1745_v39, %v1741_v1  ;;  %v1604_v9 = vmul.f32 %v3497_v37, %v4668_v57  ;;  %v4670_v39 = vstv %s4663_s12  ;;  %s4713_s12 = sld [smem:[#allocation36_spill]] }
 0x438   : > { %v1266_v49 = vmul.f32 %v3497_v37, %v4670_v39 }
 0x43a   : > { %v1839_v18 = vpop.permute.xlu0 %1838 }
 0x43b   : > { %1697 = vrot.lane.b32.xlu1 %v1695_v25, %s4496_s28  ;;  %v1841_v42 = vadd.f32 %v1839_v18, %v1835_v32  ;;  %v4672_v32 = vstv %s4665_s13  ;;  %s4715_s13 = sld [smem:[#allocation73_spill]] }
 0x43c   : > { %v1701_v40 = vmul.f32 %v3497_v37, %v4672_v32 }
 0x43d   : > { %v1226_v15 = vpop.permute.xlu1 %1225 }
 0x43e   : > { %2257 = vst.msk [vmem:[%s2986_s6 + $0x70] sm:$0xff] %vm835_vm1, %v1226_v15  ;;  %v1933_v11 = vpop.permute.xlu0 %1932  ;;  %v4675_v15 = vstv %s4669_s3  ;;  %s4719_s3 = sld [smem:[#allocation74_spill]] }
 0x43f   : > { %1791 = vrot.lane.b32.xlu1 %v1789_v44, %s4496_s28  ;;  %v1935_v5 = vadd.f32 %v1933_v11, %v1929_v8  ;;  %v1795_v11 = vmul.f32 %v3497_v37, %v4675_v15  ;;  %v4690_v15 = vstv %s4682_s30  ;;  %s4733_s30 = sld [smem:[#allocation40_spill]] }
 0x441   : > { %v1244_v23 = vpop.permute.xlu1 %1243 }
 0x442   : > { %v1246_v31 = vadd.f32 %v1244_v23, %v1240_v61  ;;  %v1657_v53 = vpop.permute.xlu0 %1656 }
 0x443   : > { %1885 = vrot.lane.b32.xlu1 %v1883_v10, %s4496_s28  ;;  %v3903_v1 = vadd.f32 %v1657_v53, %v1653_v2  ;;  %v1282_v2 = vmul.f32 %v3483_v17, %v4673_v54  ;;  %v4677_v10 = vstv %s4671_s4  ;;  %v4680_v53 = vstv %s4674_s8  ;;  %s4721_s4 = sld [smem:[#allocation79_spill]]  ;;  %s4722_s8 = sld [smem:[#allocation38_spill]] }
 0x444   : > { %v1250_v3 = vadd.f32 %v1249_v55, %v1246_v31  ;;  %v1295_v61 = vmul.f32 %v3490_v27, %v4677_v10  ;;  %v1889_v57 = vmul.f32 %v3497_v37, %v4680_v53 }
 0x445   : > { %v1260_v12 = vpop.permute.xlu1 %1259 }
 0x446   : > { %v1256_v14 = vadd.f32 %v3638_v48, %v1250_v3  ;;  %v1751_v25 = vpop.permute.xlu0 %1750  ;;  %v4683_v3 = vstv %s4676_s10  ;;  %s4723_s10 = sld [smem:[#allocation88_spill]] }
 0x447   : > { %1606 = vrot.lane.b32.xlu1 %v1604_v9, %s4495_s27  ;;  %v3913_v18 = vadd.f32 %v1751_v25, %v1747_v24  ;;  %v1288_v24 = vadd.f32 %v3658_v60, %v1282_v2 }
 0x448   : > { %v1262_v44 = vadd.f32 %v1260_v12, %v1256_v14  ;;  %v1309_v12 = vmul.f32 %v3497_v37, %v4683_v3  ;;  %v4684_v14 = vstv %s4678_s24  ;;  %v4698_v3 = vstv %s4691_s1  ;;  %s4726_s24 = sld [smem:[#allocation75_spill]]  ;;  %s4747_s1 = sld [smem:[#allocation105_spill]] }
 0x449   : > { %v1277_v8 = vpop.permute.xlu1 %1276  ;;  %v1615_v25 = vmul.f32 %v3679_v13, %v4684_v14 }
 0x44a   : > { %v1267_v7 = vadd.f32 %v1266_v49, %v1262_v44  ;;  %v1845_v21 = vpop.permute.xlu0 %1844 }
 0x44b   : > { %1703 = vrot.lane.b32.xlu1 %v1701_v40, %s4495_s27  ;;  %v3922_v48 = vadd.f32 %v1845_v21, %v1841_v42 }
 0x44c   : > { %v1273_v33 = vadd.f32 %v3648_v56, %v1267_v7 }
 0x44d   : > { %v1292_v58 = vpop.permute.xlu1 %1291 }
 0x44e   : > { %v1279_v55 = vadd.f32 %v1277_v8, %v1273_v33  ;;  %v1294_v23 = vadd.f32 %v1292_v58, %v1288_v24  ;;  %v1939_v31 = vpop.permute.xlu0 %1938  ;;  %v4687_v8 = vstv %s4681_s26  ;;  %v4692_v58 = vstv %s4685_s7  ;;  %s4730_s26 = sld [smem:[#allocation100_spill]] }
 0x44f   : > { %1797 = vrot.lane.b32.xlu1 %v1795_v11, %s4495_s27  ;;  %v3933_v42 = vadd.f32 %v1939_v31, %v1935_v5  ;;  %v4686_v5 = vstv %s4679_s25  ;;  %v1338_v11 = vmul.f32 %v3490_v27, %v4690_v15  ;;  %s4729_s25 = sld [smem:[#allocation37_spill]]  ;;  %s4735_s7 = sld [smem:[#allocation76_spill]] }
 0x450   : > { %v1280_v60 = vadd.f32 %v1279_v55, %v2974_v22  ;;  %v1296_v56 = vadd.f32 %v1295_v61, %v1294_v23  ;;  %v1325_v32 = vmul.f32 %v3483_v17, %v4686_v5  ;;  %v1803_v55 = vmul.f32 %v3679_v13, %v4692_v58 }
 0x451   : > { %v1306_v9 = vpop.permute.xlu1 %1305 }
 0x452   : > { %1281 = vst.msk [vmem:[%s2986_s6 + $0x8] sm:$0xff] %vm397_vm0, %v1280_v60  ;;  %v1302_v39 = vadd.f32 %v3668_v4, %v1296_v56  ;;  %v3942_v49 = vpop.permute.xlu0 %1664  ;;  %v1709_v4 = vmul.f32 %v3679_v13, %v4687_v8  ;;  %v1331_v7 = vadd.f32 %v3691_v41, %v1325_v32  ;;  %v4696_v56 = vstv %s4689_s0  ;;  %s4739_s0 = sld [smem:[#allocation39_spill]] }
 0x453   : > { %1891 = vrot.lane.b32.xlu1 %v1889_v57, %s4495_s27  ;;  %v4699_v32 = vstv %s4693_s17  ;;  %s4748_s17 = sld [smem:[#allocation90_spill]] }
 0x454   : > { %v1308_v40 = vadd.f32 %v1306_v9, %v1302_v39  ;;  %v1897_v9 = vmul.f32 %v3679_v13, %v4696_v56 }
 0x455   : > { %v1320_v54 = vpop.permute.xlu1 %1319 }
 0x456   : > { %v1310_v2 = vadd.f32 %v1309_v12, %v1308_v40  ;;  %v3951_v44 = vpop.permute.xlu0 %1758  ;;  %v1368_v12 = vmul.f32 %v3483_v17, %v4698_v3 }
 0x457   : > { %1617 = vrot.lane.b32.xlu1 %v1615_v25, %s4496_s28 }
 0x458   : > { %v1316_v21 = vadd.f32 %v3681_v34, %v1310_v2  ;;  %v4695_v34 = vstv %s4688_s14  ;;  %v1374_v40 = vadd.f32 %v3721_v35, %v1368_v12  ;;  %v4702_v2 = vstv %s4694_s9  ;;  %s4737_s14 = sld [smem:[#allocation115_spill]]  ;;  %s4749_s9 = sld [smem:[#allocation120_spill]] }
 0x459   : > { %v1335_v24 = vpop.permute.xlu1 %1334  ;;  %v1352_v53 = vmul.f32 %v3497_v37, %v4695_v34  ;;  %v1381_v8 = vmul.f32 %v3490_v27, %v4702_v2  ;;  %v4711_v34 = vstv %s4703_s11  ;;  %s4757_s11 = sld [smem:[#allocation91_spill]] }
 0x45a   : > { %v1322_v33 = vadd.f32 %v1320_v54, %v1316_v21  ;;  %v1337_v10 = vadd.f32 %v1335_v24, %v1331_v7  ;;  %v3962_v61 = vpop.permute.xlu0 %1852 }
 0x45b   : > { %1711 = vrot.lane.b32.xlu1 %v1709_v4, %s4496_s28 }
 0x45c   : > { %v1323_v41 = vadd.f32 %v1322_v33, %v3006_v59  ;;  %v1339_v23 = vadd.f32 %v1338_v11, %v1337_v10  ;;  %v4705_v11 = vstv %s4697_s2  ;;  %v4707_v10 = vstv %s4700_s18  ;;  %s4751_s2 = sld [smem:[#allocation106_spill]]  ;;  %s4754_s18 = sld [smem:[#allocation85_spill]] }
 0x45d   : > { %v1349_v31 = vpop.permute.xlu1 %1348  ;;  %v1715_v24 = vmul.f32 %v3679_v13, %v4705_v11  ;;  %v1395_v58 = vmul.f32 %v3497_v37, %v4707_v10  ;;  %v4720_v11 = vstv %s4713_s12  ;;  %v4724_v10 = vstv %s4715_s13  ;;  %s4768_s12 = sld [smem:[#allocation82_spill]] }
 0x45e   : > { %2261 = vst.msk [vmem:[%s2986_s6 + $0x18] sm:$0xff] %vm397_vm0, %v1323_v41  ;;  %v1345_v57 = vadd.f32 %v3701_v38, %v1339_v23  ;;  %v3975_v60 = vpop.permute.xlu0 %1946  ;;  %v1621_v38 = vmul.f32 %v3679_v13, %v4699_v32  ;;  %v4709_v23 = vstv %s4701_s19 }
 0x45f   : > { %1805 = vrot.lane.b32.xlu1 %v1803_v55, %s4496_s28 }
 0x460   : > { %v1351_v39 = vadd.f32 %v1349_v31, %v1345_v57  ;;  %v1809_v31 = vmul.f32 %v3679_v13, %v4709_v23  ;;  %v4712_v57 = vstv %s4704_s20  ;;  %s4761_s20 = sld [smem:[#allocation107_spill]] }
 0x461   : > { %v1363_v14 = vpop.permute.xlu1 %1362  ;;  %v1411_v56 = vmul.f32 %v3483_v17, %v4712_v57  ;;  %v4727_v57 = vstv %s4719_s3 }
 0x462   : > { %v1353_v25 = vadd.f32 %v1352_v53, %v1351_v39  ;;  %v3984_v5 = vpop.permute.xlu0 %1670  ;;  %v1497_v53 = vmul.f32 %v3483_v17, %v4711_v34 }
 0x463   : > { %1899 = vrot.lane.b32.xlu1 %v1897_v9, %s4496_s28  ;;  %v1417_v32 = vadd.f32 %v3751_v52, %v1411_v56  ;;  %v1454_v56 = vmul.f32 %v3483_v17, %v4727_v57 }
 0x464   : > { %v1359_v54 = vadd.f32 %v3711_v46, %v1353_v25  ;;  %v1503_v25 = vadd.f32 %v3811_v28, %v1497_v53 }
 0x465   : > { %v1378_v4 = vpop.permute.xlu1 %1377 }
 0x466   : > { %v1365_v7 = vadd.f32 %v1363_v14, %v1359_v54  ;;  %v1380_v21 = vadd.f32 %v1378_v4, %v1374_v40  ;;  %v3995_v15 = vpop.permute.xlu0 %1764  ;;  %v4716_v40 = vstv %s4708_s21  ;;  %s4766_s21 = sld [smem:[#allocation80_spill]] }
 0x467   : > { %1623 = vrot.lane.b32.xlu1 %v1621_v38, %s4495_s27  ;;  %v1424_v54 = vmul.f32 %v3490_v27, %v4716_v40 }
 0x468   : > { %v1366_v35 = vadd.f32 %v1365_v7, %v3029_v62  ;;  %v1382_v33 = vadd.f32 %v1381_v8, %v1380_v21  ;;  %v4717_v8 = vstv %s4710_s22  ;;  %s4767_s22 = sld [smem:[#allocation81_spill]] }
 0x469   : > { %v1392_v46 = vpop.permute.xlu1 %1391  ;;  %v1510_v4 = vmul.f32 %v3490_v27, %v4717_v8 }
 0x46a   : > { %2262 = vst.msk [vmem:[%s2986_s6 + $0x28] sm:$0xff] %vm397_vm0, %v1366_v35  ;;  %v1388_v55 = vadd.f32 %v3731_v20, %v1382_v33  ;;  %v4008_v41 = vpop.permute.xlu0 %1858  ;;  %v4714_v20 = vstv %s4706_s16 }
 0x46b   : > { %1717 = vrot.lane.b32.xlu1 %v1715_v24, %s4495_s27  ;;  %v1903_v14 = vmul.f32 %v3679_v13, %v4714_v20  ;;  %v1541_v24 = vmul.f32 %v3483_v17, %v4720_v11 }
 0x46c   : > { %v1394_v9 = vadd.f32 %v1392_v46, %v1388_v55 }
 0x46d   : > { %v1406_v3 = vpop.permute.xlu1 %1405 }
 0x46e   : > { %v1396_v12 = vadd.f32 %v1395_v58, %v1394_v9  ;;  %v4020_v39 = vpop.permute.xlu0 %1952  ;;  %v1438_v58 = vmul.f32 %v3497_v37, %v4724_v10 }
 0x46f   : > { %1811 = vrot.lane.b32.xlu1 %v1809_v31, %s4495_s27  ;;  %v4725_v31 = vstv %s4718_s23 }
 0x470   : > { %v1402_v38 = vadd.f32 %v3741_v36, %v1396_v12  ;;  %v1547_v34 = vmul.f32 %v3483_v17, %v4725_v31  ;;  %v4728_v12 = vstv %s4721_s4 }
 0x471   : > { %v1421_v2 = vpop.permute.xlu1 %1420  ;;  %v1524_v20 = vmul.f32 %v3497_v37, %v4728_v12 }
 0x472   : > { %v1408_v7 = vadd.f32 %v1406_v3, %v1402_v38  ;;  %v1423_v21 = vadd.f32 %v1421_v2, %v1417_v32  ;;  %v1507_v28 = vpop.permute.xlu0 %1506  ;;  %v4732_v38 = vstv %s4723_s10  ;;  %v1460_v2 = vadd.f32 %v3781_v19, %v1454_v56 }
 0x473   : > { %1905 = vrot.lane.b32.xlu1 %v1903_v14, %s4495_s27  ;;  %v1509_v52 = vadd.f32 %v1507_v28, %v1503_v25  ;;  %v4731_v25 = vstv %s4722_s8  ;;  %v1660_v40 = vmul.f32 %v3679_v13, %v4732_v38  ;;  %v4738_v19 = vstv %s4730_s26 }
 0x474   : > { %v1409_v36 = vadd.f32 %v1408_v7, %v3052_v45  ;;  %v1425_v35 = vadd.f32 %v1424_v54, %v1423_v21  ;;  %v1555_v32 = vmul.f32 %v3490_v27, %v4731_v25 }
 0x475   : > { %v1435_v33 = vpop.permute.xlu1 %1434  ;;  %v1511_v46 = vadd.f32 %v1510_v4, %v1509_v52  ;;  %v4734_v4 = vstv %s4726_s24 }
 0x476   : > { %2263 = vst.msk [vmem:[%s2986_s6 + $0x38] sm:$0xff] %vm397_vm0, %v1409_v36  ;;  %v1431_v55 = vadd.f32 %v3761_v6, %v1425_v35  ;;  %v1515_v23 = vpop.permute.xlu0 %1514  ;;  %v1467_v7 = vmul.f32 %v3490_v27, %v4734_v4  ;;  %v4736_v36 = vstv %s4729_s25 }
 0x477   : > { %1543 = vrot.lane.b32.xlu1 %v1541_v24, %s4496_s28  ;;  %v1517_v53 = vadd.f32 %v1515_v23, %v1511_v46  ;;  %v1561_v35 = vmul.f32 %v3490_v27, %v4736_v36  ;;  %v1754_v46 = vmul.f32 %v3679_v13, %v4738_v19  ;;  %v4740_v23 = vstv %s4733_s30 }
 0x478   : > { %v1437_v9 = vadd.f32 %v1435_v33, %v1431_v55  ;;  %v1661_v33 = vadd.f32 %v1660_v40, %v3903_v1  ;;  %v1569_v31 = vmul.f32 %v3497_v37, %v4740_v23 }
 0x479   : > { %v1449_v3 = vpop.permute.xlu1 %1448 }
 0x47a   : > { %v1439_v14 = vadd.f32 %v1438_v58, %v1437_v9  ;;  %v1521_v6 = vpop.permute.xlu0 %1520  ;;  %v1667_v56 = vadd.f32 %v3942_v49, %v1661_v33  ;;  %v1755_v9 = vadd.f32 %v1754_v46, %v3913_v18  ;;  %v1942_v18 = vmul.f32 %v3679_v13, %v1206_v0 }
 0x47b   : > { %1549 = vrot.lane.b32.xlu1 %v1547_v34, %s4495_s27  ;;  %v1523_v54 = vadd.f32 %v1521_v6, %v1517_v53  ;;  %v4741_v34 = vstv %s4735_s7 }
 0x47c   : > { %v1445_v8 = vadd.f32 %v3771_v29, %v1439_v14  ;;  %v1481_v1 = vmul.f32 %v3497_v37, %v4741_v34  ;;  %v1761_v40 = vadd.f32 %v3951_v44, %v1755_v9  ;;  %v1943_v44 = vadd.f32 %v1942_v18, %v3933_v42 }
 0x47d   : > { %v1464_v21 = vpop.permute.xlu1 %1463  ;;  %v1525_v28 = vadd.f32 %v1524_v20, %v1523_v54  ;;  %v1673_v54 = vadd.f32 %v3984_v5, %v1667_v56  ;;  %v4755_v9 = vstv %s4747_s1 }
 0x47e   : > { %v1451_v11 = vadd.f32 %v1449_v3, %v1445_v8  ;;  %v1466_v24 = vadd.f32 %v1464_v21, %v1460_v2  ;;  %v1529_v52 = vpop.permute.xlu0 %1528  ;;  %v4742_v3 = vstv %s4737_s14 }
 0x47f   : > { %1557 = vrot.lane.b32.xlu1 %v1555_v32, %s4496_s28  ;;  %v1531_v29 = vadd.f32 %v1529_v52, %v1525_v28  ;;  %v1848_v12 = vmul.f32 %v3679_v13, %v4742_v3  ;;  %v4743_v32 = vstv %s4739_s0  ;;  %v1674_v21 = vadd.f32 %v1673_v54, %v3006_v59 }
 0x480   : > { %v1452_v10 = vadd.f32 %v1451_v11, %v3075_v26  ;;  %v1468_v58 = vadd.f32 %v1467_v7, %v1466_v24  ;;  %v1575_v38 = vmul.f32 %v3497_v37, %v4743_v32  ;;  %v1949_v28 = vadd.f32 %v3975_v60, %v1943_v44 }
 0x481   : > { %v1478_v55 = vpop.permute.xlu1 %1477  ;;  %v1849_v49 = vadd.f32 %v1848_v12, %v3922_v48  ;;  %v1767_v48 = vadd.f32 %v3995_v15, %v1761_v40  ;;  %v1774_v3 = vmul.f32 %v3490_v27, %v4755_v9 }
 0x482   : > { %2264 = vst.msk [vmem:[%s2986_s6 + $0x48] sm:$0xff] %vm397_vm0, %v1452_v10  ;;  %v1474_v53 = vadd.f32 %v3791_v63, %v1468_v58  ;;  %v1535_v57 = vpop.permute.xlu0 %1534 }
 0x483   : > { %1563 = vrot.lane.b32.xlu1 %v1561_v35, %s4495_s27  ;;  %v1537_v20 = vadd.f32 %v1535_v57, %v1531_v29  ;;  %v1855_v7 = vadd.f32 %v3962_v61, %v1849_v49  ;;  %v1955_v61 = vadd.f32 %v4020_v39, %v1949_v28  ;;  %v4760_v49 = vstv %s4751_s2 }
 0x484   : > { %v1480_v14 = vadd.f32 %v1478_v55, %v1474_v53  ;;  %v4753_v53 = vstv %s4746_s29  ;;  %v1787_v18 = vmul.f32 %v3497_v37, %v4760_v49 }
 0x485   : > { %v1492_v6 = vpop.permute.xlu1 %1491  ;;  %v1538_v25 = vadd.f32 %v1537_v20, %v3121_v47  ;;  %v1861_v11 = vadd.f32 %v4008_v41, %v1855_v7  ;;  %v1956_v24 = vadd.f32 %v1955_v61, %v3144_v43  ;;  %v1596_v57 = vmul.f32 %v3497_v37, %v4753_v53 }
 0x486   : > { %v1482_v63 = vadd.f32 %v1481_v1, %v1480_v14  ;;  %v4762_v7 = vstv %s4754_s18 }
 0x487   : > { %2266 = vst.msk [vmem:[%s2986_s6 + $0x68] sm:$0xff] %vm397_vm0, %v1538_v25  ;;  %1571 = vrot.lane.b32.xlu1 %v1569_v31, %s4496_s28  ;;  %v1862_v59 = vadd.f32 %v1861_v11, %v3098_v51  ;;  %s4744_s28 = sld [smem:[#allocation83_spill]]  ;;  %v1613_v44 = vmul.f32 %v3679_v13, %v4762_v7 }
 0x488   : > { %v1488_v2 = vadd.f32 %v3801_v16, %v1482_v63  ;;  %v1768_v16 = vadd.f32 %v1767_v48, %v3052_v45 }
 0x489   : > { %v1587_v8 = vpop.permute.xlu1 %1586 }
 0x48a   : > { %v1494_v4 = vadd.f32 %v1492_v6, %v1488_v2  ;;  %v4758_v6 = vstv %s4748_s17 }
 0x48b   : > { %1577 = vrot.lane.b32.xlu1 %v1575_v38, %s4495_s27  ;;  %s4745_s27 = sld [smem:[#allocation89_spill]]  ;;  %v1693_v25 = vmul.f32 %v3497_v37, %v4758_v6  ;;  %v4759_v38 = vstv %s4749_s9 }
 0x48c   : > { %v1495_v0 = vadd.f32 %v1494_v4, %v3098_v51  ;;  %v1868_v63 = vmul.f32 %v3490_v27, %v4759_v38  ;;  %v4771_v38 = vstv %s4768_s12 }
 0x48d   : > { %v1684_v5 = vpop.permute.xlu1 %1683  ;;  %v4750_v29 = vstv %s4744_s28 }
 0x48e   : > { %2265 = vst.msk [vmem:[%s2986_s6 + $0x58] sm:$0xff] %vm397_vm0, %v1495_v0  ;;  %v1583_v10 = vmul.f32 %v3490_v27, %v4750_v29  ;;  %v1881_v0 = vmul.f32 %v3497_v37, %v1133_v30 }
 0x48f   : > { %1676 = vrot.lane.b32.xlu1 %v1674_v21, %s4531_s15 }
 0x490   : > { %v1589_v55 = vadd.f32 %v1587_v8, %v1583_v10 }
 0x491   : > { %v1778_v42 = vpop.permute.xlu1 %1777  ;;  %v4752_v23 = vstv %s4745_s27 }
 0x492   : > { %v1680_v31 = vmul.f32 %v3490_v27, %v4752_v23  ;;  %v1780_v32 = vadd.f32 %v1778_v42, %v1774_v3  ;;  %v4770_v3 = vstv %s4767_s22 }
 0x493   : > { %1770 = vrot.lane.b32.xlu1 %v1768_v16, %s4531_s15 }
 0x494   : > { %v1686_v56 = vadd.f32 %v1684_v5, %v1680_v31  ;;  %v4763_v5 = vstv %s4757_s11 }
 0x495   : > { %v1872_v15 = vpop.permute.xlu1 %1871  ;;  %v1707_v28 = vmul.f32 %v3679_v13, %v4763_v5 }
 0x496   : > { %v1874_v21 = vadd.f32 %v1872_v15, %v1868_v63 }
 0x497   : > { %1864 = vrot.lane.b32.xlu1 %v1862_v59, %s4531_s15 }
 0x499   : > { %v1593_v60 = vpop.permute.xlu1 %1592 }
 0x49a   : > { %v1595_v1 = vadd.f32 %v1593_v60, %v1589_v55 }
 0x49b   : > { %1958 = vrot.lane.b32.xlu1 %v1956_v24, %s4531_s15 }
 0x49c   : > { %v1597_v14 = vadd.f32 %v1596_v57, %v1595_v1 }
 0x49d   : > { %v1690_v45 = vpop.permute.xlu1 %1689 }
 0x49e   : > { %v1692_v20 = vadd.f32 %v1690_v45, %v1686_v56  ;;  %v4765_v45 = vstv %s4761_s20 }
 0x4a0   : > { %v1694_v8 = vadd.f32 %v1693_v25, %v1692_v20 }
 0x4a1   : > { %v1784_v41 = vpop.permute.xlu1 %1783 }
 0x4a2   : > { %v1786_v2 = vadd.f32 %v1784_v41, %v1780_v32  ;;  %v1801_v41 = vmul.f32 %v3679_v13, %v4765_v45  ;;  %v2323_v32 = vld [vmem:[%s2458_s5 + $0x21] sm:$0xff] }
 0x4a4   : > { %v1788_v42 = vadd.f32 %v1787_v18, %v1786_v2 }
 0x4a5   : > { %v1878_v52 = vpop.permute.xlu1 %1877 }
 0x4a6   : > { %v1880_v11 = vadd.f32 %v1878_v52, %v1874_v21 }
 0x4a8   : > { %v1882_v15 = vadd.f32 %v1881_v0, %v1880_v11 }
 0x4a9   : > { %v1601_v51 = vpop.permute.xlu1 %1600 }
 0x4aa   : > { %v1603_v40 = vadd.f32 %v1601_v51, %v1597_v14 }
 0x4ad   : > { %v1698_v36 = vpop.permute.xlu1 %1697 }
 0x4ae   : > { %v1700_v48 = vadd.f32 %v1698_v36, %v1694_v8 }
 0x4b1   : > { %v1792_v39 = vpop.permute.xlu1 %1791 }
 0x4b2   : > { %v1794_v24 = vadd.f32 %v1792_v39, %v1788_v42  ;;  %v1895_v39 = vmul.f32 %v3679_v13, %v1150_v50  ;;  %v4769_v50 = vstv %s4766_s21 }
 0x4b3   : > { %v1540_v13 = vmul.f32 %v3483_v17, %v4769_v50  ;;  %v1567_v17 = vmul.f32 %v2323_v32, %v4771_v38 }
 0x4b5   : > { %v1886_v35 = vpop.permute.xlu1 %1885 }
 0x4b6   : > { %v1888_v30 = vadd.f32 %v1886_v35, %v1882_v15 }
 0x4b9   : > { %v1607_v33 = vpop.permute.xlu1 %1606 }
 0x4ba   : > { %v1609_v4 = vadd.f32 %v1607_v33, %v1603_v40 }
 0x4bc   : > { %v1614_v61 = vadd.f32 %v1613_v44, %v1609_v4 }
 0x4bd   : > { %v1704_v19 = vpop.permute.xlu1 %1703 }
 0x4be   : > { %v1706_v59 = vadd.f32 %v1704_v19, %v1700_v48 }
 0x4c0   : > { %v1708_v33 = vadd.f32 %v1707_v28, %v1706_v59 }
 0x4c1   : > { %v1798_v46 = vpop.permute.xlu1 %1797 }
 0x4c2   : > { %v1800_v36 = vadd.f32 %v1798_v46, %v1794_v24 }
 0x4c4   : > { %v1802_v19 = vadd.f32 %v1801_v41, %v1800_v36 }
 0x4c5   : > { %v1892_v58 = vpop.permute.xlu1 %1891 }
 0x4c6   : > { %v1894_v52 = vadd.f32 %v1892_v58, %v1888_v30 }
 0x4c8   : > { %v1896_v1 = vadd.f32 %v1895_v39, %v1894_v52 }
 0x4c9   : > { %v1618_v34 = vpop.permute.xlu1 %1617 }
 0x4ca   : > { %v1620_v60 = vadd.f32 %v1618_v34, %v1614_v61 }
 0x4cd   : > { %v1712_v12 = vpop.permute.xlu1 %1711 }
 0x4ce   : > { %v1714_v37 = vadd.f32 %v1712_v12, %v1708_v33  ;;  %v1553_v12 = vmul.f32 %v3490_v27, %v4770_v3 }
 0x4d1   : > { %v1806_v54 = vpop.permute.xlu1 %1805 }
 0x4d2   : > { %v1808_v31 = vadd.f32 %v1806_v54, %v1802_v19 }
 0x4d5   : > { %v1900_v16 = vpop.permute.xlu1 %1899 }
 0x4d9   : > { %v1624_v51 = vpop.permute.xlu1 %1623 }
 0x4da   : > { %v1626_v29 = vadd.f32 %v1624_v51, %v1620_v60 }
 0x4dc   : > { %v1627_v10 = vadd.f32 %v1626_v29, %v2974_v22  ;;  %v1902_v22 = vadd.f32 %v1900_v16, %v1896_v1 }
 0x4dd   : > { %v1718_v55 = vpop.permute.xlu1 %1717 }
 0x4de   : > { %v1720_v23 = vadd.f32 %v1718_v55, %v1714_v37  ;;  %1629 = vrot.lane.b32.xlu0 %v1627_v10, %s4531_s15 }
 0x4e0   : > { %v1721_v46 = vadd.f32 %v1720_v23, %v3029_v62 }
 0x4e1   : > { %v1812_v34 = vpop.permute.xlu1 %1811 }
 0x4e2   : > { %v1814_v35 = vadd.f32 %v1812_v34, %v1808_v31  ;;  %1723 = vrot.lane.b32.xlu0 %v1721_v46, %s4531_s15 }
 0x4e4   : > { %v1815_v58 = vadd.f32 %v1814_v35, %v3075_v26 }
 0x4e5   : > { %v1906_v53 = vpop.permute.xlu1 %1905 }
 0x4e6   : > { %v1908_v57 = vadd.f32 %v1906_v53, %v1902_v22  ;;  %1817 = vrot.lane.b32.xlu0 %v1815_v58, %s4531_s15 }
 0x4e8   : > { %v1909_v56 = vadd.f32 %v1908_v57, %v3121_v47 }
 0x4e9   : > { %v1544_v62 = vpop.permute.xlu1 %1543 }
 0x4ea   : > { %1911 = vrot.lane.b32.xlu0 %v1909_v56, %s4531_s15  ;;  %v1546_v9 = vadd.f32 %v1544_v62, %v1540_v13 }
 0x4ed   : > { %v1550_v20 = vpop.permute.xlu1 %1549 }
 0x4ee   : > { %v1552_v26 = vadd.f32 %v1550_v20, %v1546_v9 }
 0x4f0   : > { %v1554_v14 = vadd.f32 %v1553_v12, %v1552_v26 }
 0x4f1   : > { %v1558_v6 = vpop.permute.xlu1 %1557 }
 0x4f2   : > { %v1560_v25 = vadd.f32 %v1558_v6, %v1554_v14 }
 0x4f5   : > { %v1564_v47 = vpop.permute.xlu1 %1563 }
 0x4f6   : > { %v1566_v63 = vadd.f32 %v1564_v47, %v1560_v25 }
 0x4f8   : > { %v1568_v40 = vadd.f32 %v1567_v17, %v1566_v63 }
 0x4f9   : > { %v1572_v49 = vpop.permute.xlu1 %1571 }
 0x4fa   : > { %v1574_v18 = vadd.f32 %v1572_v49, %v1568_v40 }
 0x4fd   : > { %v1578_v27 = vpop.permute.xlu1 %1577 }
 0x4fe   : > { %v1580_v54 = vadd.f32 %v1578_v27, %v1574_v18 }
 0x500   : > { %v1581_v2 = vadd.f32 %v1580_v54, %v3144_v43 }
 0x501   : > { %v1677_v8 = vpop.permute.xlu1 %1676 }
 0x502   : > { %2267 = vst.msk [vmem:[%s2986_s6 + $0x78] sm:$0xff] %vm397_vm0, %v1581_v2 }
 0x503   : > { %2269 = vst.msk [vmem:[%s2986_s6 + $0x18] sm:$0xff] %vm835_vm1, %v1677_v8 }
 0x505   : > { %v1771_v4 = vpop.permute.xlu1 %1770 }
 0x506   : > { %2271 = vst.msk [vmem:[%s2986_s6 + $0x38] sm:$0xff] %vm835_vm1, %v1771_v4 }
 0x509   : > { %v1865_v7 = vpop.permute.xlu1 %1864 }
 0x50a   : > { %2273 = vst.msk [vmem:[%s2986_s6 + $0x58] sm:$0xff] %vm835_vm1, %v1865_v7 }
 0x50d   : > { %v1959_v44 = vpop.permute.xlu1 %1958 }
 0x50e   : > { %2275 = vst.msk [vmem:[%s2986_s6 + $0x78] sm:$0xff] %vm835_vm1, %v1959_v44 }
 0x550   : > { %v1630_v21 = vpop.permute.xlu0 %1629 }
 0x551   : > { %1632 = vst.msk [vmem:[%s2986_s6 + $0x8] sm:$0xff] %vm835_vm1, %v1630_v21 }
 0x554   : > { %v1724_v48 = vpop.permute.xlu0 %1723 }
 0x555   : > { %2270 = vst.msk [vmem:[%s2986_s6 + $0x28] sm:$0xff] %vm835_vm1, %v1724_v48 }
 0x558   : > { %v1818_v43 = vpop.permute.xlu0 %1817 }
 0x559   : > { %2272 = vst.msk [vmem:[%s2986_s6 + $0x48] sm:$0xff] %vm835_vm1, %v1818_v43 }
 0x55c   : > { %v1912_v0 = vpop.permute.xlu0 %1911 }
 0x55d   : > { %2274 = vst.msk [vmem:[%s2986_s6 + $0x68] sm:$0xff] %vm835_vm1, %v1912_v0 }
 0x55e PF: > { %s4772_s5 = sld [smem:[#allocation6_spill]]  ;;  %s4773_s9 = sld [smem:[#allocation5_spill]] }
 0x55f   : > { %s4774_s10 = sld [smem:[#allocation7_spill]] }
 0x564   : > { %s13_s11 = sadd.s32 1, %s4772_s5  }
 0x565   : > { %p10_p2 = scmp.ge.s32.totalorder %s13_s11, 4  }
 0x567   :  { %12 = sbr.rel (!%p10_p2) target bundleno = 6 (0x6), region = 78 }
 0x56e   :  { %1992 = vsyncpa [#allocation3], 1 }
 0x56f   :  { %1994 = vsyncpa [#allocation3 + $0x1], 1 }

</bundles_post_ra>
